<compile_context>
chip_gen: v7x
topology: tpu7x:2x2x1
jax: 0.10.0
libtpu: 0.0.40
codegen_flags: <defaults>
</compile_context>

<pallas_src>
import jax
import jax.numpy as jnp
from jax.experimental import pallas as pl
from jax.experimental.pallas import tpu as pltpu

# ---- static model dimensions (dataset == 50 => fc1 in-features = 129) ----
SEQ_LEN = 27          # raw input length; last element is the class/rate feature
L0 = SEQ_LEN - 1      # 26 : conv input length
L1 = L0 - 6           # 20 : after cnn1 (k=7)
L1P = 24              # L1 padded up to a multiple of 8 (sublane-friendly stride)
L2 = L1 - 4           # 16 : after cnn2 (k=5)
L3 = L2 // 2          # 8  : after maxpool (k=2)
L4 = L3 - 2           # 6  : after cnn3 (k=3)  (kernel computes 8 positions, last 2 unused)
L5 = L4 - 2           # 4  : after cnn4 (k=3)  (kernel computes 8 positions, last 4 unused)
C1 = 256              # cnn1/2/3 out channels
C4 = 32               # cnn4 out channels
FLAT = C4 * L5        # 128 flattened conv features
FC1_OUT = 64


def cnn_kernel(p_ref, xc_ref, w1_ref, b1_ref, w2_ref, b2_ref, w3_ref, b3_ref,
               w4_ref, b4_ref, m8_ref, rs_ref, wf_ref, wfc_ref, bf_ref,
               wo_ref, bo_ref, out_ref):
    bt = out_ref.shape[0]                                  # samples in this batch tile
    bf16 = jnp.bfloat16

    # ---- cnn1: Conv1d(1 -> 256, k=7) + ReLU as one im2col matmul ----
    patches = p_ref[0].astype(bf16)                        # (bt*L1P, 8): 7 taps + zero pad
    y1 = jnp.dot(patches, w1_ref[...], preferred_element_type=jnp.float32)
    y1 = jnp.maximum(y1 + b1_ref[...], 0.0)                # (bt*L1P, C1) f32
    y1b = y1.astype(bf16).reshape(bt, L1P, C1)             # rows 0..L1-1 valid per sample

    # ---- cnn2: Conv1d(256 -> 256, k=5) + ReLU, taps fused along K (K = 5*256) ----
    lhs2 = jnp.concatenate([y1b[:, k:k + L2, :] for k in range(5)],
                           axis=2).reshape(bt * L2, 5 * C1)            # (bt*16, 1280) bf16
    y2 = jnp.dot(lhs2, w2_ref[...], preferred_element_type=jnp.float32)
    y2 = jnp.maximum(y2 + b2_ref[...], 0.0).reshape(bt, L2, C1)        # f32

    # ---- MaxPool1d(k=2): pairwise max + even-row gather (unit-stride slices only) ----
    pm = jnp.maximum(y2[:, 0:L2 - 1, :], y2[:, 1:L2, :])               # (bt, 15, C1)
    y3 = jnp.concatenate([pm[:, 2 * t:2 * t + 1, :] for t in range(L3)],
                         axis=1)                                       # (bt, 8, C1)
    y3b = y3.astype(bf16).reshape(bt * L3, C1)

    # ---- cnn3: Conv1d(256 -> 256, k=3) + ReLU, taps via uniform sublane shifts ----
    # Positions 6,7 of each sample use the next sample's rows (or the zero tail); they are
    # garbage but finite and are never consumed by any valid downstream position.
    zpad = jnp.zeros((8, C1), bf16)
    y3p = jnp.concatenate([y3b, zpad], axis=0)                         # (bt*8+8, C1)
    lhs3 = jnp.concatenate([y3p[k:k + bt * L3, :] for k in range(3)], axis=1)
    y4 = jnp.dot(lhs3, w3_ref[...], preferred_element_type=jnp.float32)
    y4 = jnp.maximum(y4 + b3_ref[...], 0.0)                            # (bt*8, C1) f32
    y4b = y4.astype(bf16)

    # ---- cnn4: Conv1d(256 -> 32, k=3) + ReLU (positions 0..3 valid) ----
    y4p = jnp.concatenate([y4b, zpad], axis=0)
    lhs4 = jnp.concatenate([y4p[k:k + bt * L3, :] for k in range(3)], axis=1)
    y5 = jnp.dot(lhs4, w4_ref[...], preferred_element_type=jnp.float32)
    y5 = jnp.maximum(y5 + b4_ref[...], 0.0)                            # (bt*8, C4) f32
    y5b = y5.astype(bf16)

    # ---- flatten + dropout(identity) + fc1 + ReLU (x_class as a rank-1 update) ----
    # masked row r keeps y5[r] only in lane block (r % 8) and zeroes blocks >= 4 (garbage
    # time steps).  (masked @ wf_main) then the per-sample rsum selection matmul gives the
    # exact flat @ fc1 contribution; x_class enters as a cheap broadcast multiply-add.
    masked = jnp.tile(y5b, (1, L5)) * jnp.tile(m8_ref[...], (bt, 1))   # (bt*8, 128) bf16
    tmp = jnp.dot(masked, wf_ref[...], preferred_element_type=jnp.float32)  # (bt*8, 64)
    hmain = jnp.dot(rs_ref[...], tmp.astype(bf16),
                    preferred_element_type=jnp.float32)                # (bt, 64)
    h = jnp.maximum(hmain + xc_ref[0] * wfc_ref[...] + bf_ref[...], 0.0)

    # ---- fc2 ----
    out_ref[...] = (jnp.dot(h.astype(bf16), wo_ref[...],
                            preferred_element_type=jnp.float32) + bo_ref[...])


def init_params(key):
    ks = jax.random.split(key, 12)
    s = 0.05
    return {
        "w1": s * jax.random.normal(ks[0], (C1, 1, 7), jnp.float32),
        "b1": s * jax.random.normal(ks[1], (C1,), jnp.float32),
        "w2": s * jax.random.normal(ks[2], (C1, C1, 5), jnp.float32),
        "b2": s * jax.random.normal(ks[3], (C1,), jnp.float32),
        "w3": s * jax.random.normal(ks[4], (C1, C1, 3), jnp.float32),
        "b3": s * jax.random.normal(ks[5], (C1,), jnp.float32),
        "w4": s * jax.random.normal(ks[6], (C4, C1, 3), jnp.float32),
        "b4": s * jax.random.normal(ks[7], (C4,), jnp.float32),
        "fc1_w": s * jax.random.normal(ks[8], (FC1_OUT, FLAT + 1), jnp.float32),
        "fc1_b": s * jax.random.normal(ks[9], (FC1_OUT,), jnp.float32),
        "fc2_w": s * jax.random.normal(ks[10], (1, FC1_OUT), jnp.float32),
        "fc2_b": s * jax.random.normal(ks[11], (1,), jnp.float32),
    }


def cnn_forward(x, p, b_tile=None):
    B = x.shape[0]
    x = x.astype(jnp.float32)
    if b_tile is None:
        # Cap at 32: keeps live intermediates small (v5e store slot / v7x 64 MiB VMEM)
        # and gives >= 2 grid steps for megacore sharding once B > 32.
        b_tile = min(32, max(8, ((B + 7) // 8) * 8))
    nb = -(-B // b_tile)
    Bp = nb * b_tile
    if Bp != B:
        x = jnp.concatenate([x, jnp.zeros((Bp - B, SEQ_LEN), jnp.float32)], axis=0)

    bf16 = jnp.bfloat16
    xm = x[:, :L0]                                              # (Bp, 26)
    xcr = x[:, L0:L0 + 1].reshape(nb, b_tile, 1)                # class/rate feature

    # im2col for cnn1 (plain XLA): patches[b, t, k] = x[b, t+k], padded to 8 taps and
    # L1P=24 rows, laid out as one dense (b_tile*L1P, 8) slab per grid step.
    cols = [xm[:, k:k + L1] for k in range(7)] + [jnp.zeros((Bp, L1), jnp.float32)]
    patches = jnp.stack(cols, axis=-1)                          # (Bp, L1, 8)
    patches = jnp.pad(patches, ((0, 0), (0, L1P - L1), (0, 0)))
    patches = patches.reshape(nb, b_tile * L1P, 8)

    # Re-layout PyTorch weights (C_out, C_in, K) -> fused (K*C_in, C_out), cast to bf16.
    w1p = jnp.concatenate([p["w1"][:, 0, :].T,
                           jnp.zeros((1, C1), jnp.float32)], axis=0).astype(bf16)  # (8,256)
    b1 = p["b1"].reshape(1, C1)
    w2f = jnp.transpose(p["w2"], (2, 1, 0)).reshape(5 * C1, C1).astype(bf16)
    b2 = p["b2"].reshape(1, C1)
    w3f = jnp.transpose(p["w3"], (2, 1, 0)).reshape(3 * C1, C1).astype(bf16)
    b3 = p["b3"].reshape(1, C1)
    w4f = jnp.transpose(p["w4"], (2, 1, 0)).reshape(3 * C1, C4).astype(bf16)
    b4 = p["b4"].reshape(1, C4)
    # fc1: torch flatten order is [c*L5 + l]; kernel features are ordered [l*C4 + c].
    wf_main = jnp.transpose(p["fc1_w"][:, :FLAT].reshape(FC1_OUT, C4, L5),
                            (2, 1, 0)).reshape(FLAT, FC1_OUT).astype(bf16)  # (128, 64)
    wfc = p["fc1_w"][:, FLAT:].T.reshape(1, FC1_OUT)                        # (1, 64) f32
    bf_ = p["fc1_b"].reshape(1, FC1_OUT)
    wo = p["fc2_w"].T.astype(bf16)                                          # (64, 1)
    bo = p["fc2_b"].reshape(1, 1)

    # Flatten helpers: m8 keeps only time step l in lane block l (l < 4); rsum is the
    # block-diagonal 0/1 matrix that sums the 8 rows belonging to each sample.
    m8 = (jnp.arange(FLAT)[None, :] // C4
          == jnp.arange(L3)[:, None]).astype(bf16)                          # (8, 128)
    rsum = (jnp.arange(b_tile * L3)[None, :] // L3
            == jnp.arange(b_tile)[:, None]).astype(bf16)                    # (bt, bt*8)

    def const_spec(shape):
        zero = (0,) * len(shape)
        return pl.BlockSpec(shape, lambda i, z=zero: z)

    in_specs = [
        pl.BlockSpec((1, b_tile * L1P, 8), lambda i: (i, 0, 0)),   # im2col patches
        pl.BlockSpec((1, b_tile, 1), lambda i: (i, 0, 0)),         # x_class
        const_spec((8, C1)), const_spec((1, C1)),
        const_spec((5 * C1, C1)), const_spec((1, C1)),
        const_spec((3 * C1, C1)), const_spec((1, C1)),
        const_spec((3 * C1, C4)), const_spec((1, C4)),
        const_spec((L3, FLAT)), const_spec((b_tile, b_tile * L3)),
        const_spec((FLAT, FC1_OUT)), const_spec((1, FC1_OUT)), const_spec((1, FC1_OUT)),
        const_spec((FC1_OUT, 1)), const_spec((1, 1)),
    ]

    out = pl.pallas_call(
        cnn_kernel,
        out_shape=jax.ShapeDtypeStruct((Bp, 1), jnp.float32),
        grid=(nb,),
        in_specs=in_specs,
        out_specs=pl.BlockSpec((b_tile, 1), lambda i: (i, 0)),
        compiler_params=pltpu.CompilerParams(
            dimension_semantics=("parallel",),
            vmem_limit_bytes=32 * 1024 * 1024),
    )(patches, xcr, w1p, b1, w2f, b2, w3f, b3, w4f, b4, m8, rsum,
      wf_main, wfc, bf_, wo, bo)
    return out[:B]


def reference_forward(x, p):
    """Pure-JAX f32 replica of the PyTorch forward (dropout = identity)."""
    a = x[:, None, :]                                     # (B, 1, L)
    x_class = a[:, :, -1]                                 # (B, 1)
    a = a[:, :, :-1]

    def conv1d(v, w, b):
        K = w.shape[2]
        lout = v.shape[2] - K + 1
        y = jnp.zeros((v.shape[0], w.shape[0], lout), jnp.float32)
        for k in range(K):
            y = y + jnp.einsum("bcl,oc->bol", v[:, :, k:k + lout], w[:, :, k])
        return y + b[None, :, None]

    a = jax.nn.relu(conv1d(a, p["w1"], p["b1"]))
    a = jax.nn.relu(conv1d(a, p["w2"], p["b2"]))
    Bn, C, L = a.shape
    a = jnp.max(a.reshape(Bn, C, L // 2, 2), axis=-1)
    a = jax.nn.relu(conv1d(a, p["w3"], p["b3"]))
    a = jax.nn.relu(conv1d(a, p["w4"], p["b4"]))
    a = a.reshape(Bn, -1)
    a = jnp.concatenate([a, x_class], axis=1)
    a = jax.nn.relu(a @ p["fc1_w"].T + p["fc1_b"])
    a = a @ p["fc2_w"].T + p["fc2_b"]
    return a


if __name__ == "__main__":
    key = jax.random.PRNGKey(0)
    pkey, xkey = jax.random.split(key)
    params = init_params(pkey)

    B = 2
    x = jax.random.normal(xkey, (B, SEQ_LEN), jnp.float32)

    out = jax.jit(cnn_forward)(x, params)
    out = jax.block_until_ready(out)

    ref = reference_forward(x, params)
    err = float(jnp.max(jnp.abs(out - ref)))
    assert out.shape == (B, 1), out.shape
    # Tolerance relaxed vs the f32-only version: matmul operands are bf16 (f32 accum).
    assert err < 1e-2, f"max abs error vs f32 reference: {err}"
    print("KERNEL_OK")
</pallas_src>

<mosaic_0001>
module attributes {stable_mosaic.version = 11 : i64} {
  func.func @cnn_kernel(%arg0: i32, %arg1: memref<1x192x8xf32, #tpu.memory_space<vmem>>, %arg2: memref<1x8x1xf32, #tpu.memory_space<vmem>>, %arg3: memref<8x256xbf16, #tpu.memory_space<vmem>>, %arg4: memref<1x256xf32, #tpu.memory_space<vmem>>, %arg5: memref<1280x256xbf16, #tpu.memory_space<vmem>>, %arg6: memref<1x256xf32, #tpu.memory_space<vmem>>, %arg7: memref<768x256xbf16, #tpu.memory_space<vmem>>, %arg8: memref<1x256xf32, #tpu.memory_space<vmem>>, %arg9: memref<768x32xbf16, #tpu.memory_space<vmem>>, %arg10: memref<1x32xf32, #tpu.memory_space<vmem>>, %arg11: memref<8x128xbf16, #tpu.memory_space<vmem>>, %arg12: memref<8x64xbf16, #tpu.memory_space<vmem>>, %arg13: memref<128x64xbf16, #tpu.memory_space<vmem>>, %arg14: memref<1x64xf32, #tpu.memory_space<vmem>>, %arg15: memref<1x64xf32, #tpu.memory_space<vmem>>, %arg16: memref<64x1xbf16, #tpu.memory_space<vmem>>, %arg17: memref<1x1xf32, #tpu.memory_space<vmem>>, %arg18: memref<8x1xf32, #tpu.memory_space<vmem>>) attributes {dimension_semantics = [#tpu.dimension_semantics<parallel>], iteration_bounds = array<i64: 1>, scalar_prefetch = 0 : i64, scratch_operands = 0 : i64, tpu.core_type = #tpu.core_type<tc>, window_params = [{transform_indices = @transform_0, window_bounds = array<i64: 1, 192, 8>}, {transform_indices = @transform_1, window_bounds = array<i64: 1, 8, 1>}, {pipeline_mode = #tpu.pipeline_mode<synchronous>, transform_indices = @transform_2, window_bounds = array<i64: 8, 256>}, {pipeline_mode = #tpu.pipeline_mode<synchronous>, transform_indices = @transform_3, window_bounds = array<i64: 1, 256>}, {pipeline_mode = #tpu.pipeline_mode<synchronous>, transform_indices = @transform_4, window_bounds = array<i64: 1280, 256>}, {pipeline_mode = #tpu.pipeline_mode<synchronous>, transform_indices = @transform_5, window_bounds = array<i64: 1, 256>}, {pipeline_mode = #tpu.pipeline_mode<synchronous>, transform_indices = @transform_6, window_bounds = array<i64: 768, 256>}, {pipeline_mode = #tpu.pipeline_mode<synchronous>, transform_indices = @transform_7, window_bounds = array<i64: 1, 256>}, {pipeline_mode = #tpu.pipeline_mode<synchronous>, transform_indices = @transform_8, window_bounds = array<i64: 768, 32>}, {pipeline_mode = #tpu.pipeline_mode<synchronous>, transform_indices = @transform_9, window_bounds = array<i64: 1, 32>}, {pipeline_mode = #tpu.pipeline_mode<synchronous>, transform_indices = @transform_10, window_bounds = array<i64: 8, 128>}, {pipeline_mode = #tpu.pipeline_mode<synchronous>, transform_indices = @transform_11, window_bounds = array<i64: 8, 64>}, {pipeline_mode = #tpu.pipeline_mode<synchronous>, transform_indices = @transform_12, window_bounds = array<i64: 128, 64>}, {pipeline_mode = #tpu.pipeline_mode<synchronous>, transform_indices = @transform_13, window_bounds = array<i64: 1, 64>}, {pipeline_mode = #tpu.pipeline_mode<synchronous>, transform_indices = @transform_14, window_bounds = array<i64: 1, 64>}, {pipeline_mode = #tpu.pipeline_mode<synchronous>, transform_indices = @transform_15, window_bounds = array<i64: 64, 1>}, {pipeline_mode = #tpu.pipeline_mode<synchronous>, transform_indices = @transform_16, window_bounds = array<i64: 1, 1>}, {transform_indices = @transform_17, window_bounds = array<i64: 8, 1>}]} {
    %c0 = arith.constant 0 : index
    %c0_0 = arith.constant 0 : index
    %c0_1 = arith.constant 0 : index
    %0 = vector.load %arg1[%c0, %c0_0, %c0_1] : memref<1x192x8xf32, #tpu.memory_space<vmem>>, vector<1x192x8xf32>
    %1 = vector.shape_cast %0 : vector<1x192x8xf32> to vector<192x8xf32>
    %2 = arith.truncf %1 : vector<192x8xf32> to vector<192x8xbf16>
    %c0_2 = arith.constant 0 : index
    %c0_3 = arith.constant 0 : index
    %3 = vector.load %arg3[%c0_2, %c0_3] : memref<8x256xbf16, #tpu.memory_space<vmem>>, vector<8x256xbf16>
    %cst = arith.constant dense<0.000000e+00> : vector<192x256xf32>
    %4 = tpu.matmul %2, %3, %cst {dimension_numbers = #tpu.dot_dimension_numbers<[1], [0], [0], [1], [0, 0, 1, 1], [], []>} : vector<192x8xbf16>, vector<8x256xbf16>, vector<192x256xf32> -> vector<192x256xf32>
    %c0_4 = arith.constant 0 : index
    %c0_5 = arith.constant 0 : index
    %5 = vector.load %arg4[%c0_4, %c0_5] : memref<1x256xf32, #tpu.memory_space<vmem>>, vector<1x256xf32>
    %6 = vector.broadcast %5 : vector<1x256xf32> to vector<192x256xf32>
    %7 = arith.addf %4, %6 : vector<192x256xf32>
    %cst_6 = arith.constant 0.000000e+00 : f32
    %8 = vector.broadcast %cst_6 : f32 to vector<192x256xf32>
    %9 = arith.maximumf %7, %8 : vector<192x256xf32>
    %10 = arith.truncf %9 : vector<192x256xf32> to vector<192x256xbf16>
    %11 = vector.shape_cast %10 : vector<192x256xbf16> to vector<8x24x256xbf16>
    %12 = vector.extract_strided_slice %11 {offsets = [0, 0, 0], sizes = [8, 16, 256], strides = [1, 1, 1]} : vector<8x24x256xbf16> to vector<8x16x256xbf16>
    %13 = vector.extract_strided_slice %11 {offsets = [0, 1, 0], sizes = [8, 16, 256], strides = [1, 1, 1]} : vector<8x24x256xbf16> to vector<8x16x256xbf16>
    %14 = vector.extract_strided_slice %11 {offsets = [0, 2, 0], sizes = [8, 16, 256], strides = [1, 1, 1]} : vector<8x24x256xbf16> to vector<8x16x256xbf16>
    %15 = vector.extract_strided_slice %11 {offsets = [0, 3, 0], sizes = [8, 16, 256], strides = [1, 1, 1]} : vector<8x24x256xbf16> to vector<8x16x256xbf16>
    %16 = vector.extract_strided_slice %11 {offsets = [0, 4, 0], sizes = [8, 16, 256], strides = [1, 1, 1]} : vector<8x24x256xbf16> to vector<8x16x256xbf16>
    %17 = tpu.concatenate %12, %13, %14, %15, %16 in 2 : vector<8x16x256xbf16>, vector<8x16x256xbf16>, vector<8x16x256xbf16>, vector<8x16x256xbf16>, vector<8x16x256xbf16> -> vector<8x16x1280xbf16>
    %18 = vector.shape_cast %17 : vector<8x16x1280xbf16> to vector<128x1280xbf16>
    %c0_7 = arith.constant 0 : index
    %c0_8 = arith.constant 0 : index
    %19 = vector.load %arg5[%c0_7, %c0_8] : memref<1280x256xbf16, #tpu.memory_space<vmem>>, vector<1280x256xbf16>
    %cst_9 = arith.constant dense<0.000000e+00> : vector<128x256xf32>
    %20 = tpu.matmul %18, %19, %cst_9 {dimension_numbers = #tpu.dot_dimension_numbers<[1], [0], [0], [1], [0, 0, 1, 1], [], []>} : vector<128x1280xbf16>, vector<1280x256xbf16>, vector<128x256xf32> -> vector<128x256xf32>
    %c0_10 = arith.constant 0 : index
    %c0_11 = arith.constant 0 : index
    %21 = vector.load %arg6[%c0_10, %c0_11] : memref<1x256xf32, #tpu.memory_space<vmem>>, vector<1x256xf32>
    %22 = vector.broadcast %21 : vector<1x256xf32> to vector<128x256xf32>
    %23 = arith.addf %20, %22 : vector<128x256xf32>
    %cst_12 = arith.constant 0.000000e+00 : f32
    %24 = vector.broadcast %cst_12 : f32 to vector<128x256xf32>
    %25 = arith.maximumf %23, %24 : vector<128x256xf32>
    %26 = vector.shape_cast %25 : vector<128x256xf32> to vector<8x16x256xf32>
    %27 = vector.extract_strided_slice %26 {offsets = [0, 0, 0], sizes = [8, 15, 256], strides = [1, 1, 1]} : vector<8x16x256xf32> to vector<8x15x256xf32>
    %28 = vector.extract_strided_slice %26 {offsets = [0, 1, 0], sizes = [8, 15, 256], strides = [1, 1, 1]} : vector<8x16x256xf32> to vector<8x15x256xf32>
    %29 = arith.maximumf %27, %28 : vector<8x15x256xf32>
    %30 = vector.extract_strided_slice %29 {offsets = [0, 0, 0], sizes = [8, 1, 256], strides = [1, 1, 1]} : vector<8x15x256xf32> to vector<8x1x256xf32>
    %31 = vector.extract_strided_slice %29 {offsets = [0, 2, 0], sizes = [8, 1, 256], strides = [1, 1, 1]} : vector<8x15x256xf32> to vector<8x1x256xf32>
    %32 = vector.extract_strided_slice %29 {offsets = [0, 4, 0], sizes = [8, 1, 256], strides = [1, 1, 1]} : vector<8x15x256xf32> to vector<8x1x256xf32>
    %33 = vector.extract_strided_slice %29 {offsets = [0, 6, 0], sizes = [8, 1, 256], strides = [1, 1, 1]} : vector<8x15x256xf32> to vector<8x1x256xf32>
    %34 = vector.extract_strided_slice %29 {offsets = [0, 8, 0], sizes = [8, 1, 256], strides = [1, 1, 1]} : vector<8x15x256xf32> to vector<8x1x256xf32>
    %35 = vector.extract_strided_slice %29 {offsets = [0, 10, 0], sizes = [8, 1, 256], strides = [1, 1, 1]} : vector<8x15x256xf32> to vector<8x1x256xf32>
    %36 = vector.extract_strided_slice %29 {offsets = [0, 12, 0], sizes = [8, 1, 256], strides = [1, 1, 1]} : vector<8x15x256xf32> to vector<8x1x256xf32>
    %37 = vector.extract_strided_slice %29 {offsets = [0, 14, 0], sizes = [8, 1, 256], strides = [1, 1, 1]} : vector<8x15x256xf32> to vector<8x1x256xf32>
    %38 = tpu.concatenate %30, %31, %32, %33, %34, %35, %36, %37 in 1 : vector<8x1x256xf32>, vector<8x1x256xf32>, vector<8x1x256xf32>, vector<8x1x256xf32>, vector<8x1x256xf32>, vector<8x1x256xf32>, vector<8x1x256xf32>, vector<8x1x256xf32> -> vector<8x8x256xf32>
    %39 = arith.truncf %38 : vector<8x8x256xf32> to vector<8x8x256xbf16>
    %40 = vector.shape_cast %39 : vector<8x8x256xbf16> to vector<64x256xbf16>
    %cst_13 = arith.constant 0.000000e+00 : bf16
    %41 = vector.broadcast %cst_13 : bf16 to vector<8x256xbf16>
    %42 = tpu.concatenate %40, %41 in 0 : vector<64x256xbf16>, vector<8x256xbf16> -> vector<72x256xbf16>
    %43 = vector.extract_strided_slice %42 {offsets = [0, 0], sizes = [64, 256], strides = [1, 1]} : vector<72x256xbf16> to vector<64x256xbf16>
    %44 = vector.extract_strided_slice %42 {offsets = [1, 0], sizes = [64, 256], strides = [1, 1]} : vector<72x256xbf16> to vector<64x256xbf16>
    %45 = vector.extract_strided_slice %42 {offsets = [2, 0], sizes = [64, 256], strides = [1, 1]} : vector<72x256xbf16> to vector<64x256xbf16>
    %46 = tpu.concatenate %43, %44, %45 in 1 : vector<64x256xbf16>, vector<64x256xbf16>, vector<64x256xbf16> -> vector<64x768xbf16>
    %c0_14 = arith.constant 0 : index
    %c0_15 = arith.constant 0 : index
    %47 = vector.load %arg7[%c0_14, %c0_15] : memref<768x256xbf16, #tpu.memory_space<vmem>>, vector<768x256xbf16>
    %cst_16 = arith.constant dense<0.000000e+00> : vector<64x256xf32>
    %48 = tpu.matmul %46, %47, %cst_16 {dimension_numbers = #tpu.dot_dimension_numbers<[1], [0], [0], [1], [0, 0, 1, 1], [], []>} : vector<64x768xbf16>, vector<768x256xbf16>, vector<64x256xf32> -> vector<64x256xf32>
    %c0_17 = arith.constant 0 : index
    %c0_18 = arith.constant 0 : index
    %49 = vector.load %arg8[%c0_17, %c0_18] : memref<1x256xf32, #tpu.memory_space<vmem>>, vector<1x256xf32>
    %50 = vector.broadcast %49 : vector<1x256xf32> to vector<64x256xf32>
    %51 = arith.addf %48, %50 : vector<64x256xf32>
    %cst_19 = arith.constant 0.000000e+00 : f32
    %52 = vector.broadcast %cst_19 : f32 to vector<64x256xf32>
    %53 = arith.maximumf %51, %52 : vector<64x256xf32>
    %54 = arith.truncf %53 : vector<64x256xf32> to vector<64x256xbf16>
    %55 = tpu.concatenate %54, %41 in 0 : vector<64x256xbf16>, vector<8x256xbf16> -> vector<72x256xbf16>
    %56 = vector.extract_strided_slice %55 {offsets = [0, 0], sizes = [64, 256], strides = [1, 1]} : vector<72x256xbf16> to vector<64x256xbf16>
    %57 = vector.extract_strided_slice %55 {offsets = [1, 0], sizes = [64, 256], strides = [1, 1]} : vector<72x256xbf16> to vector<64x256xbf16>
    %58 = vector.extract_strided_slice %55 {offsets = [2, 0], sizes = [64, 256], strides = [1, 1]} : vector<72x256xbf16> to vector<64x256xbf16>
    %59 = tpu.concatenate %56, %57, %58 in 1 : vector<64x256xbf16>, vector<64x256xbf16>, vector<64x256xbf16> -> vector<64x768xbf16>
    %c0_20 = arith.constant 0 : index
    %c0_21 = arith.constant 0 : index
    %60 = vector.load %arg9[%c0_20, %c0_21] : memref<768x32xbf16, #tpu.memory_space<vmem>>, vector<768x32xbf16>
    %cst_22 = arith.constant dense<0.000000e+00> : vector<64x32xf32>
    %61 = tpu.matmul %59, %60, %cst_22 {dimension_numbers = #tpu.dot_dimension_numbers<[1], [0], [0], [1], [0, 0, 1, 1], [], []>} : vector<64x768xbf16>, vector<768x32xbf16>, vector<64x32xf32> -> vector<64x32xf32>
    %c0_23 = arith.constant 0 : index
    %c0_24 = arith.constant 0 : index
    %62 = vector.load %arg10[%c0_23, %c0_24] : memref<1x32xf32, #tpu.memory_space<vmem>>, vector<1x32xf32>
    %63 = vector.broadcast %62 : vector<1x32xf32> to vector<64x32xf32>
    %64 = arith.addf %61, %63 : vector<64x32xf32>
    %cst_25 = arith.constant 0.000000e+00 : f32
    %65 = vector.broadcast %cst_25 : f32 to vector<64x32xf32>
    %66 = arith.maximumf %64, %65 : vector<64x32xf32>
    %67 = arith.truncf %66 : vector<64x32xf32> to vector<64x32xbf16>
    %68 = tpu.concatenate %67, %67, %67, %67 in 1 : vector<64x32xbf16>, vector<64x32xbf16>, vector<64x32xbf16>, vector<64x32xbf16> -> vector<64x128xbf16>
    %c0_26 = arith.constant 0 : index
    %c0_27 = arith.constant 0 : index
    %69 = vector.load %arg11[%c0_26, %c0_27] : memref<8x128xbf16, #tpu.memory_space<vmem>>, vector<8x128xbf16>
    %70 = tpu.concatenate %69, %69, %69, %69, %69, %69, %69, %69 in 0 : vector<8x128xbf16>, vector<8x128xbf16>, vector<8x128xbf16>, vector<8x128xbf16>, vector<8x128xbf16>, vector<8x128xbf16>, vector<8x128xbf16>, vector<8x128xbf16> -> vector<64x128xbf16>
    %71 = arith.mulf %68, %70 : vector<64x128xbf16>
    %c0_28 = arith.constant 0 : index
    %c0_29 = arith.constant 0 : index
    %72 = vector.load %arg13[%c0_28, %c0_29] : memref<128x64xbf16, #tpu.memory_space<vmem>>, vector<128x64xbf16>
    %cst_30 = arith.constant dense<0.000000e+00> : vector<64x64xf32>
    %73 = tpu.matmul %71, %72, %cst_30 {dimension_numbers = #tpu.dot_dimension_numbers<[1], [0], [0], [1], [0, 0, 1, 1], [], []>} : vector<64x128xbf16>, vector<128x64xbf16>, vector<64x64xf32> -> vector<64x64xf32>
    %c0_31 = arith.constant 0 : index
    %c0_32 = arith.constant 0 : index
    %74 = vector.load %arg12[%c0_31, %c0_32] : memref<8x64xbf16, #tpu.memory_space<vmem>>, vector<8x64xbf16>
    %75 = arith.truncf %73 : vector<64x64xf32> to vector<64x64xbf16>
    %cst_33 = arith.constant dense<0.000000e+00> : vector<8x64xf32>
    %76 = tpu.matmul %74, %75, %cst_33 {dimension_numbers = #tpu.dot_dimension_numbers<[1], [0], [0], [1], [0, 0, 1, 1], [], []>} : vector<8x64xbf16>, vector<64x64xbf16>, vector<8x64xf32> -> vector<8x64xf32>
    %c0_34 = arith.constant 0 : index
    %c0_35 = arith.constant 0 : index
    %c0_36 = arith.constant 0 : index
    %77 = vector.load %arg2[%c0_34, %c0_35, %c0_36] : memref<1x8x1xf32, #tpu.memory_space<vmem>>, vector<1x8x1xf32>
    %78 = vector.shape_cast %77 : vector<1x8x1xf32> to vector<8x1xf32>
    %c0_37 = arith.constant 0 : index
    %c0_38 = arith.constant 0 : index
    %79 = vector.load %arg14[%c0_37, %c0_38] : memref<1x64xf32, #tpu.memory_space<vmem>>, vector<1x64xf32>
    %80 = vector.broadcast %78 : vector<8x1xf32> to vector<8x64xf32>
    %81 = vector.broadcast %79 : vector<1x64xf32> to vector<8x64xf32>
    %82 = arith.mulf %80, %81 : vector<8x64xf32>
    %83 = arith.addf %76, %82 : vector<8x64xf32>
    %c0_39 = arith.constant 0 : index
    %c0_40 = arith.constant 0 : index
    %84 = vector.load %arg15[%c0_39, %c0_40] : memref<1x64xf32, #tpu.memory_space<vmem>>, vector<1x64xf32>
    %85 = vector.broadcast %84 : vector<1x64xf32> to vector<8x64xf32>
    %86 = arith.addf %83, %85 : vector<8x64xf32>
    %cst_41 = arith.constant 0.000000e+00 : f32
    %87 = vector.broadcast %cst_41 : f32 to vector<8x64xf32>
    %88 = arith.maximumf %86, %87 : vector<8x64xf32>
    %89 = arith.truncf %88 : vector<8x64xf32> to vector<8x64xbf16>
    %c0_42 = arith.constant 0 : index
    %c0_43 = arith.constant 0 : index
    %90 = vector.load %arg16[%c0_42, %c0_43] : memref<64x1xbf16, #tpu.memory_space<vmem>>, vector<64x1xbf16>
    %cst_44 = arith.constant dense<0.000000e+00> : vector<8x1xf32>
    %91 = tpu.matmul %89, %90, %cst_44 {dimension_numbers = #tpu.dot_dimension_numbers<[1], [0], [0], [1], [0, 0, 1, 1], [], []>} : vector<8x64xbf16>, vector<64x1xbf16>, vector<8x1xf32> -> vector<8x1xf32>
    %c0_45 = arith.constant 0 : index
    %c0_46 = arith.constant 0 : index
    %92 = vector.load %arg17[%c0_45, %c0_46] : memref<1x1xf32, #tpu.memory_space<vmem>>, vector<1x1xf32>
    %93 = vector.broadcast %92 : vector<1x1xf32> to vector<8x1xf32>
    %94 = arith.addf %91, %93 : vector<8x1xf32>
    %c0_47 = arith.constant 0 : index
    %c0_48 = arith.constant 0 : index
    %95 = vector.load %arg18[%c0_47, %c0_48] : memref<8x1xf32, #tpu.memory_space<vmem>>, vector<8x1xf32>
    tpu.vector_store %arg18[%c0_47, %c0_48], %94 {strides = array<i32>} : memref<8x1xf32, #tpu.memory_space<vmem>>, vector<8x1xf32>,
    return
  }
  func.func @transform_0(%arg0: i32) -> (i32, i32, i32) {
    %c0_i32 = arith.constant 0 : i32
    %c0_i32_0 = arith.constant 0 : i32
    %c0_i32_1 = arith.constant 0 : i32
    return %arg0, %c0_i32, %c0_i32_0 : i32, i32, i32
  }
  func.func @transform_1(%arg0: i32) -> (i32, i32, i32) {
    %c0_i32 = arith.constant 0 : i32
    %c0_i32_0 = arith.constant 0 : i32
    %c0_i32_1 = arith.constant 0 : i32
    return %arg0, %c0_i32, %c0_i32_0 : i32, i32, i32
  }
  func.func @transform_2(%arg0: i32) -> (i32, i32) {
    %c0_i32 = arith.constant 0 : i32
    %c0_i32_0 = arith.constant 0 : i32
    %c0_i32_1 = arith.constant 0 : i32
    return %c0_i32, %c0_i32_0 : i32, i32
  }
  func.func @transform_3(%arg0: i32) -> (i32, i32) {
    %c0_i32 = arith.constant 0 : i32
    %c0_i32_0 = arith.constant 0 : i32
    %c0_i32_1 = arith.constant 0 : i32
    return %c0_i32, %c0_i32_0 : i32, i32
  }
  func.func @transform_4(%arg0: i32) -> (i32, i32) {
    %c0_i32 = arith.constant 0 : i32
    %c0_i32_0 = arith.constant 0 : i32
    %c0_i32_1 = arith.constant 0 : i32
    return %c0_i32, %c0_i32_0 : i32, i32
  }
  func.func @transform_5(%arg0: i32) -> (i32, i32) {
    %c0_i32 = arith.constant 0 : i32
    %c0_i32_0 = arith.constant 0 : i32
    %c0_i32_1 = arith.constant 0 : i32
    return %c0_i32, %c0_i32_0 : i32, i32
  }
  func.func @transform_6(%arg0: i32) -> (i32, i32) {
    %c0_i32 = arith.constant 0 : i32
    %c0_i32_0 = arith.constant 0 : i32
    %c0_i32_1 = arith.constant 0 : i32
    return %c0_i32, %c0_i32_0 : i32, i32
  }
  func.func @transform_7(%arg0: i32) -> (i32, i32) {
    %c0_i32 = arith.constant 0 : i32
    %c0_i32_0 = arith.constant 0 : i32
    %c0_i32_1 = arith.constant 0 : i32
    return %c0_i32, %c0_i32_0 : i32, i32
  }
  func.func @transform_8(%arg0: i32) -> (i32, i32) {
    %c0_i32 = arith.constant 0 : i32
    %c0_i32_0 = arith.constant 0 : i32
    %c0_i32_1 = arith.constant 0 : i32
    return %c0_i32, %c0_i32_0 : i32, i32
  }
  func.func @transform_9(%arg0: i32) -> (i32, i32) {
    %c0_i32 = arith.constant 0 : i32
    %c0_i32_0 = arith.constant 0 : i32
    %c0_i32_1 = arith.constant 0 : i32
    return %c0_i32, %c0_i32_0 : i32, i32
  }
  func.func @transform_10(%arg0: i32) -> (i32, i32) {
    %c0_i32 = arith.constant 0 : i32
    %c0_i32_0 = arith.constant 0 : i32
    %c0_i32_1 = arith.constant 0 : i32
    return %c0_i32, %c0_i32_0 : i32, i32
  }
  func.func @transform_11(%arg0: i32) -> (i32, i32) {
    %c0_i32 = arith.constant 0 : i32
    %c0_i32_0 = arith.constant 0 : i32
    %c0_i32_1 = arith.constant 0 : i32
    return %c0_i32, %c0_i32_0 : i32, i32
  }
  func.func @transform_12(%arg0: i32) -> (i32, i32) {
    %c0_i32 = arith.constant 0 : i32
    %c0_i32_0 = arith.constant 0 : i32
    %c0_i32_1 = arith.constant 0 : i32
    return %c0_i32, %c0_i32_0 : i32, i32
  }
  func.func @transform_13(%arg0: i32) -> (i32, i32) {
    %c0_i32 = arith.constant 0 : i32
    %c0_i32_0 = arith.constant 0 : i32
    %c0_i32_1 = arith.constant 0 : i32
    return %c0_i32, %c0_i32_0 : i32, i32
  }
  func.func @transform_14(%arg0: i32) -> (i32, i32) {
    %c0_i32 = arith.constant 0 : i32
    %c0_i32_0 = arith.constant 0 : i32
    %c0_i32_1 = arith.constant 0 : i32
    return %c0_i32, %c0_i32_0 : i32, i32
  }
  func.func @transform_15(%arg0: i32) -> (i32, i32) {
    %c0_i32 = arith.constant 0 : i32
    %c0_i32_0 = arith.constant 0 : i32
    %c0_i32_1 = arith.constant 0 : i32
    return %c0_i32, %c0_i32_0 : i32, i32
  }
  func.func @transform_16(%arg0: i32) -> (i32, i32) {
    %c0_i32 = arith.constant 0 : i32
    %c0_i32_0 = arith.constant 0 : i32
    %c0_i32_1 = arith.constant 0 : i32
    return %c0_i32, %c0_i32_0 : i32, i32
  }
  func.func @transform_17(%arg0: i32) -> (i32, i32) {
    %c0_i32 = arith.constant 0 : i32
    %c0_i32_0 = arith.constant 0 : i32
    return %arg0, %c0_i32 : i32, i32
  }
}

</mosaic_0001>

<bundles_post_ra>
// kernel: cnn_forward.1
= control target key start
LH: loop header
LB: loop body
LE: loop exit
PB: predicated region body
PF: predicated region fallthrough
CT: control target
= control target key end

     0   :  { %vm150_vm0 = vcmask 1043456   ;;  %v9050_v1 = vmov 0   ;;  %vm113_vm1 = vcmask 64512   ;;  %vm711_vm2 = vcmask 1046528   ;;  %s6392_s27 = smov 32   ;;  %s9031_s2 = inlined_call_operand.vmem [shape: bf16[8,256], index: 2, kind: input, shape index: {}]   ;;  %s9032_s0 = inlined_call_operand.vmem [shape: f32[1,192,8], index: 0, kind: input, shape index: {}]   ;;  %s9033_s4 = inlined_call_operand.vmem [shape: bf16[1280,256], index: 4, kind: input, shape index: {}]   ;;  %s9034_s3 = inlined_call_operand.vmem [shape: f32[1,256], index: 3, kind: input, shape index: {}]   ;;  %s9035_s6 = inlined_call_operand.vmem [shape: bf16[768,256], index: 6, kind: input, shape index: {}]   ;;  %s9036_s5 = inlined_call_operand.vmem [shape: f32[1,256], index: 5, kind: input, shape index: {}]   ;;  %s9037_s8 = inlined_call_operand.vmem [shape: bf16[768,32], index: 8, kind: input, shape index: {}]   ;;  %s9038_s7 = inlined_call_operand.vmem [shape: f32[1,256], index: 7, kind: input, shape index: {}]   ;;  %s9039_s12 = inlined_call_operand.vmem [shape: bf16[128,64], index: 12, kind: input, shape index: {}]   ;;  %s9040_s9 = inlined_call_operand.vmem [shape: f32[1,32], index: 9, kind: input, shape index: {}]   ;;  %s9041_s10 = inlined_call_operand.vmem [shape: bf16[8,128], index: 10, kind: input, shape index: {}]   ;;  %s9042_s1 = inlined_call_operand.vmem [shape: f32[1,8,1], index: 1, kind: input, shape index: {}]   ;;  %s9043_s15 = inlined_call_operand.vmem [shape: bf16[64,1], index: 15, kind: input, shape index: {}]   ;;  %s9044_s11 = inlined_call_operand.vmem [shape: bf16[8,64], index: 11, kind: input, shape index: {}]   ;;  %s9045_s16 = inlined_call_operand.<no memory space> [shape: f32[1,1], index: 16, kind: input, shape index: {}]   ;;  %s9046_s13 = inlined_call_operand.vmem [shape: f32[1,64], index: 13, kind: input, shape index: {}]   ;;  %s9047_s14 = inlined_call_operand.vmem [shape: f32[1,64], index: 14, kind: input, shape index: {}]   ;;  %s9048_s17 = inlined_call_operand.vmem [shape: f32[8,1], index: 17, kind: output, shape index: {}]  }
   0x1   :  { %9068 = sst [smem:[#allocation23_spill]] %s9031_s2  ;;  %189 = vmatprep.mubr.bf16.mxu0 %v9050_v1  ;;  %5942 = vset.pattern.permute.xlu0 %v9050_v1  ;;  %v5945_v10 = vld [vmem:[%s9033_s4 + $0x4] ss:$8 sps:$4 sm:$0xff]   ;;  %v5947_v11 = vld [vmem:[%s9033_s4] ss:$8 sps:$4 sm:$0xff]   ;;  %vm937_vm4 = vcmask 1045504  }
   0x2   :  { %9069 = sst [smem:[#allocation24_spill]] %s9032_s0  ;;  %s9070_s26 = sld [smem:[#allocation23_spill]]  ;;  %v5948_v12 = vld [vmem:[%s9033_s4 + $0x14] ss:$8 sps:$4 sm:$0xff]   ;;  %1974 = vmatprep.subr.bf16.mxu1 %v5945_v10  ;;  %v5950_v14 = vld [vmem:[%s9033_s4 + $0x10] ss:$8 sps:$4 sm:$0xff]  }
   0x3   :  { %s9071_s29 = sld [smem:[#allocation24_spill]]  ;;  %1975 = vmatpush1.bf16.msra.mxu1 %v5947_v11  ;;  %v5951_v15 = vld [vmem:[%s9033_s4 + $0x24] ss:$8 sps:$4 sm:$0xff]   ;;  %v5953_v18 = vld [vmem:[%s9033_s4 + $0x20] ss:$8 sps:$4 sm:$0xff]   ;;  %v98_v11 = vlaneseq  ;;  %vm2972_vm6 = vcmask 1040384  }
   0x4   :  { %1976 = vmatprep.subr.bf16.mxu1 %v5948_v12  ;;  %v5954_v19 = vld [vmem:[%s9033_s4 + $0x34] ss:$8 sps:$4 sm:$0xff]   ;;  %v5956_v21 = vld [vmem:[%s9033_s4 + $0x30] ss:$8 sps:$4 sm:$0xff]   ;;  %v5957_v22 = vld [vmem:[%s9033_s4 + $0x44] ss:$8 sps:$4 sm:$0xff]  }
   0x5   :  { %v5959_v25 = vld [vmem:[%s9033_s4 + $0x40] ss:$8 sps:$4 sm:$0xff]   ;;  %v5960_v26 = vld [vmem:[%s9033_s4 + $0x54] ss:$8 sps:$4 sm:$0xff]   ;;  %v5962_v27 = vld [vmem:[%s9033_s4 + $0x50] ss:$8 sps:$4 sm:$0xff]  }
   0x6   :  { %v5963_v29 = vld [vmem:[%s9033_s4 + $0x64] ss:$8 sps:$4 sm:$0xff]   ;;  %v5965_v32 = vld [vmem:[%s9033_s4 + $0x60] ss:$8 sps:$4 sm:$0xff]   ;;  %v5966_v33 = vld [vmem:[%s9033_s4 + $0x74] ss:$8 sps:$4 sm:$0xff]  }
   0x7   :  { %1977 = vmatpush1.bf16.msra.mxu1 %v5950_v14  ;;  %v5968_v34 = vld [vmem:[%s9033_s4 + $0x70] ss:$8 sps:$4 sm:$0xff]   ;;  %v5969_v36 = vld [vmem:[%s9033_s4 + $0x84] ss:$8 sps:$4 sm:$0xff]   ;;  %v5971_v39 = vld [vmem:[%s9033_s4 + $0x80] ss:$8 sps:$4 sm:$0xff]  }
   0x8   :  { %v95_v0 = vld [vmem:[%s9070_s26] sm:$0xff]  ;;  %1978 = vmatprep.subr.bf16.mxu1 %v5951_v15  ;;  %v5972_v40 = vld [vmem:[%s9033_s4 + $0x94] ss:$8 sps:$4 sm:$0xff]   ;;  %v5974_v41 = vld [vmem:[%s9033_s4 + $0x90] ss:$8 sps:$4 sm:$0xff]   ;;  %v99_v12 = vshrl.u32 %v98_v11, 7 }
   0x9   :  { %v59_v2 = vld [vmem:[%s9071_s29] sm:$0xff]  ;;  %v60_v3 = vld [vmem:[%s9071_s29 + $0x8] sm:$0xff]  ;;  %v5153_v4 = vcombine.high %v95_v0, %v95_v0  ;;  %v5152_v5 = vcombine.low %v95_v0, %v95_v0  ;;  %v61_v8 = vld [vmem:[%s9071_s29 + $0x10] sm:$0xff]  ;;  %vm502_vm3 = vsmask.f32 7424  ;;  %vm2989_vm7 = vcmask 1041408  }
   0xa   :  { %v83_v7 = vpack.c.bf16 %v60_v3, %v59_v2  ;;  %v62_v9 = vld [vmem:[%s9071_s29 + $0x18] sm:$0xff]  ;;  %v63_v16 = vld [vmem:[%s9071_s29 + $0x20] sm:$0xff]  ;;  %v64_v17 = vld [vmem:[%s9071_s29 + $0x28] sm:$0xff]  ;;  %v6692_v15 = vsub.s32 1, %v99_v12  ;;  %vm776_vm5 = vsmask.f32 6400 }
   0xb   :  { %5154 = vmatprep.subr.msk.bf16.mxu0 %vm150_vm0, %v5153_v4  ;;  %v152_v6 = vsel %vm150_vm0, %v5152_v5, 0  ;;  %v84_v13 = vpack.c.bf16 %v62_v9, %v61_v8  ;;  %v85_v20 = vpack.c.bf16 %v64_v17, %v63_v16  ;;  %1979 = vmatpush1.bf16.msra.mxu1 %v5953_v18  ;;  %v65_v23 = vld [vmem:[%s9071_s29 + $0x30] sm:$0xff]  ;;  %v66_v24 = vld [vmem:[%s9071_s29 + $0x38] sm:$0xff]  ;;  %v67_v30 = vld [vmem:[%s9071_s29 + $0x40] sm:$0xff]  ;;  %vm3006_vm8 = vcmask 1042432   ;;  %s6391_s26 = smov 64  }
   0xc   :  { %158 = vmatpush1.bf16.msra.mxu0 %v152_v6  ;;  %1980 = vmatprep.subr.bf16.mxu1 %v5954_v19  ;;  %v86_v28 = vpack.c.bf16 %v66_v24, %v65_v23  ;;  %v68_v31 = vld [vmem:[%s9071_s29 + $0x48] sm:$0xff]  ;;  %v69_v37 = vld [vmem:[%s9071_s29 + $0x50] sm:$0xff]  ;;  %v70_v38 = vld [vmem:[%s9071_s29 + $0x58] sm:$0xff]  ;;  %9073 = vst [vmem:[#allocation4_spill] sm:$0xff] %v6692_v15  ;;  %vm3039_vm9 = vcmask 1044480   ;;  %vm4816_vm10 = vcmask 261120  }
   0xd   :  { %v87_v35 = vpack.c.bf16 %v68_v31, %v67_v30  ;;  %v88_v42 = vpack.c.bf16 %v70_v38, %v69_v37  ;;  %v5975_v43 = vld [vmem:[%s9033_s4 + $0xa4] ss:$8 sps:$4 sm:$0xff]   ;;  %v5977_v46 = vld [vmem:[%s9033_s4 + $0xa0] ss:$8 sps:$4 sm:$0xff]   ;;  %v5978_v47 = vld [vmem:[%s9033_s4 + $0xb4] ss:$8 sps:$4 sm:$0xff]  }
   0xe   :  { %v71_v44 = vld [vmem:[%s9071_s29 + $0x60] sm:$0xff]  ;;  %v72_v45 = vld [vmem:[%s9071_s29 + $0x68] sm:$0xff]  ;;  %v5980_v48 = vld [vmem:[%s9033_s4 + $0xb0] ss:$8 sps:$4 sm:$0xff]   ;;  %vm4829_vm11 = vcmask 523264   ;;  %vm4838_vm12 = vcmask 785408  }
   0xf   :  { %5155 = vmatmul.mubr.msk.bf16.vlgmr.msra.gmra.mrb[0].mxu0 %vm113_vm1, %v83_v7  ;;  %1981 = vmatpush1.bf16.msra.mxu1 %v5956_v21  ;;  %v89_v49 = vpack.c.bf16 %v72_v45, %v71_v44  ;;  %v5981_v50 = vld [vmem:[%s9033_s4 + $0xc4] ss:$8 sps:$4 sm:$0xff]   ;;  %v73_v51 = vld [vmem:[%s9071_s29 + $0x70] sm:$0xff]  ;;  %v74_v52 = vld [vmem:[%s9071_s29 + $0x78] sm:$0xff]  ;;  %vm6395_vm13 = vmmov 0   ;;  %vm5146_vm14 = vcmask 7168  }
  0x10   :  { %199 = vmatprep.mubr.bf16.mxu0 %v9050_v1  ;;  %1982 = vmatprep.subr.bf16.mxu1 %v5957_v22  ;;  %v5983_v53 = vld [vmem:[%s9033_s4 + $0xc0] ss:$8 sps:$4 sm:$0xff]   ;;  %v5984_v54 = vld [vmem:[%s9033_s4 + $0xd4] ss:$8 sps:$4 sm:$0xff]   ;;  %v90_v55 = vpack.c.bf16 %v74_v52, %v73_v51  ;;  %v5986_v4 = vld [vmem:[%s9033_s4 + $0xd0] ss:$8 sps:$4 sm:$0xff]  }
  0x11   :  { %v75_v56 = vld [vmem:[%s9071_s29 + $0x80] sm:$0xff]  ;;  %v76_v57 = vld [vmem:[%s9071_s29 + $0x88] sm:$0xff]  ;;  %v77_v59 = vld [vmem:[%s9071_s29 + $0x90] sm:$0xff] }
  0x12   :  { %v91_v58 = vpack.c.bf16 %v76_v57, %v75_v56  ;;  %v78_v60 = vld [vmem:[%s9071_s29 + $0x98] sm:$0xff]  ;;  %v79_v62 = vld [vmem:[%s9071_s29 + $0xa0] sm:$0xff]  ;;  %v80_v63 = vld [vmem:[%s9071_s29 + $0xa8] sm:$0xff] }
  0x13   :  { %1983 = vmatpush1.bf16.msra.mxu1 %v5959_v25  ;;  %v92_v61 = vpack.c.bf16 %v78_v60, %v77_v59  ;;  %v93_v0 = vpack.c.bf16 %v80_v63, %v79_v62  ;;  %v81_v2 = vld [vmem:[%s9071_s29 + $0xb0] sm:$0xff]  ;;  %v82_v3 = vld [vmem:[%s9071_s29 + $0xb8] sm:$0xff]  ;;  %v5987_v6 = vld [vmem:[%s9033_s4 + $0xe4] ss:$8 sps:$4 sm:$0xff]  }
  0x14   :  { %1984 = vmatprep.subr.bf16.mxu1 %v5960_v26  ;;  %v94_v5 = vpack.c.bf16 %v82_v3, %v81_v2  ;;  %v5989_v7 = vld [vmem:[%s9033_s4 + $0xe0] ss:$8 sps:$4 sm:$0xff]   ;;  %v5990_v8 = vld [vmem:[%s9033_s4 + $0xf4] ss:$8 sps:$4 sm:$0xff]   ;;  %v5992_v9 = vld [vmem:[%s9033_s4 + $0xf0] ss:$8 sps:$4 sm:$0xff]  }
  0x15   :  { %v5995_v10 = vld [vmem:[%s9033_s4 + $0x104] ss:$8 sps:$4 sm:$0xff]   ;;  %v96_v14 = vld [vmem:[%s9034_s3] sm:$0x3] }
  0x16   :  { %v6698_v17 = vrot.slane %v96_v14, %v6692_v15 }
  0x17   :  { %5156 = vmatmul.mubr.msk.bf16.gmra.mrb[4].mxu0 %vm113_vm1, %v84_v13  ;;  %1985 = vmatpush1.bf16.msra.mxu1 %v5962_v27  ;;  %v6687_v13 = vsub.s32 0, %v99_v12 }
  0x18   :  { %209 = vmatprep.mubr.bf16.mxu0 %v9050_v1  ;;  %1986 = vmatprep.subr.bf16.mxu1 %v5963_v29 }
  0x19   :  { %9072 = vst [vmem:[#allocation3_spill] sm:$0xff] %v6687_v13  ;;  %v6695_v16 = vrot.slane %v96_v14, %v6687_v13 }
  0x1b   :  { %1987 = vmatpush1.bf16.msra.mxu1 %v5965_v32 }
  0x1c   :  { %1988 = vmatprep.subr.bf16.mxu1 %v5966_v33  ;;  %v5993_v33 = vld [vmem:[%s9033_s4 + $0x100] ss:$8 sps:$4 sm:$0xff]  }
  0x1f   :  { %5157 = vmatmul.mubr.msk.bf16.gmra.mrb[8].mxu0 %vm113_vm1, %v85_v20  ;;  %1989 = vmatpush1.bf16.msra.mxu1 %v5968_v34 }
  0x20   :  { %219 = vmatprep.mubr.bf16.mxu0 %v9050_v1  ;;  %1990 = vmatprep.subr.bf16.mxu1 %v5969_v36  ;;  %v5998_v36 = vld [vmem:[%s9033_s4 + $0x114] ss:$8 sps:$4 sm:$0xff]  }
  0x23   :  { %1991 = vmatpush1.bf16.msra.mxu1 %v5971_v39 }
  0x24   :  { %1992 = vmatprep.subr.bf16.mxu1 %v5972_v40 }
  0x27   :  { %5158 = vmatmul.mubr.msk.bf16.gmra.mrb[12].mxu0 %vm113_vm1, %v86_v28  ;;  %1993 = vmatpush1.bf16.msra.mxu1 %v5974_v41 }
  0x28   :  { %229 = vmatprep.mubr.bf16.mxu0 %v9050_v1  ;;  %1994 = vmatprep.subr.bf16.mxu1 %v5975_v43 }
  0x2b   :  { %1995 = vmatpush1.bf16.msra.mxu1 %v5977_v46 }
  0x2c   :  { %1996 = vmatprep.subr.bf16.mxu1 %v5978_v47 }
  0x2f   :  { %5159 = vmatmul.mubr.msk.bf16.gmra.mrb[16].mxu0 %vm113_vm1, %v87_v35  ;;  %1997 = vmatpush1.bf16.msra.mxu1 %v5980_v48 }
  0x30   :  { %239 = vmatprep.mubr.bf16.mxu0 %v9050_v1  ;;  %1998 = vmatprep.subr.bf16.mxu1 %v5981_v50 }
  0x33   :  { %1999 = vmatpush1.bf16.msra.mxu1 %v5983_v53 }
  0x34   :  { %2000 = vmatprep.subr.bf16.mxu1 %v5984_v54  ;;  %v6001_v54 = vld [vmem:[%s9033_s4 + $0x124] ss:$8 sps:$4 sm:$0xff]  }
  0x37   :  { %5160 = vmatmul.mubr.msk.bf16.gmra.mrb[20].mxu0 %vm113_vm1, %v88_v42  ;;  %2001 = vmatpush1.bf16.msra.mxu1 %v5986_v4  ;;  %v5999_v4 = vld [vmem:[%s9033_s4 + $0x120] ss:$8 sps:$4 sm:$0xff]  }
  0x38   :  { %249 = vmatprep.mubr.bf16.mxu0 %v9050_v1  ;;  %2002 = vmatprep.subr.bf16.mxu1 %v5987_v6 }
  0x3b   :  { %2003 = vmatpush1.bf16.msra.mxu1 %v5989_v7 }
  0x3c   :  { %2004 = vmatprep.subr.bf16.mxu1 %v5990_v8 }
  0x3f   :  { %5161 = vmatmul.mubr.msk.bf16.gmra.mrb[24].mxu0 %vm113_vm1, %v89_v49  ;;  %2005 = vmatpush1.bf16.msra.mxu1 %v5992_v9  ;;  %v5996_v49 = vld [vmem:[%s9033_s4 + $0x110] ss:$8 sps:$4 sm:$0xff]  }
  0x40   :  { %259 = vmatprep.mubr.bf16.mxu0 %v9050_v1  ;;  %2087 = vmatprep.subr.bf16.mxu1 %v5995_v10  ;;  %v6004_v10 = vld [vmem:[%s9033_s4 + $0x134] ss:$8 sps:$4 sm:$0xff]  }
  0x47   :  { %5162 = vmatmul.mubr.msk.bf16.gmra.mrb[28].mxu0 %vm113_vm1, %v90_v55 }
  0x48   :  { %269 = vmatprep.mubr.bf16.mxu0 %v9050_v1 }
  0x4f   :  { %5163 = vmatmul.mubr.msk.bf16.gmra.mrb[32].mxu0 %vm113_vm1, %v91_v58 }
  0x50   :  { %279 = vmatprep.mubr.bf16.mxu0 %v9050_v1 }
  0x57   :  { %5164 = vmatmul.mubr.msk.bf16.gmra.mrb[36].mxu0 %vm113_vm1, %v92_v61 }
  0x58   :  { %289 = vmatprep.mubr.bf16.mxu0 %v9050_v1 }
  0x5f   :  { %5165 = vmatmul.mubr.msk.bf16.gmra.mrb[40].mxu0 %vm113_vm1, %v93_v0 }
  0x60   :  { %299 = vmatprep.mubr.bf16.mxu0 %v9050_v1 }
  0x67   :  { %5166 = vmatmul.mubr.msk.bf16.gmra.mrb[44].mxu0 %vm113_vm1, %v94_v5 }
  0xe2   :  { %v191_v18 = vpop.f32.mrb[0].mxu0 }
  0xe3   :  { %v192_v19 = vadd.f32 %v191_v18, %v6695_v16  ;;  %v193_v20 = vpop.f32.mrb[1].mxu0 }
  0xe4   :  { %v194_v21 = vadd.f32 %v193_v20, %v6698_v17  ;;  %v195_v22 = vpop.f32.mrb[2].mxu0 }
  0xe5   :  { %v196_v23 = vadd.f32 %v195_v22, %v6695_v16  ;;  %v197_v24 = vpop.f32.mrb[3].mxu0  ;;  %v310_v26 = vmax.f32 %v192_v19, 0.0 }
  0xe6   :  { %v198_v25 = vadd.f32 %v197_v24, %v6698_v17  ;;  %v311_v28 = vmax.f32 %v194_v21, 0.0 }
  0xe7   :  { %v312_v27 = vmax.f32 %v196_v23, 0.0 }
  0xe8   :  { %v313_v29 = vmax.f32 %v198_v25, 0.0 }
  0xe9   :  { %v6704_v30 = vpack.c.bf16 %v312_v27, %v310_v26 }
  0xea   :  { %v6706_v31 = vpack.c.bf16 %v313_v29, %v311_v28  ;;  %v201_v32 = vpop.f32.mrb[4].mxu0  ;;  %v6002_v29 = vld [vmem:[%s9033_s4 + $0x130] ss:$8 sps:$4 sm:$0xff]  }
  0xeb   :  { %v202_v34 = vadd.f32 %v201_v32, %v6695_v16  ;;  %v203_v35 = vpop.f32.mrb[5].mxu0  ;;  %v504_v37 = vshrl.u32 %v6704_v30, 16  ;;  %v506_v38 = vshll.u32 %v6704_v30, 16  ;;  %v712_v46 = vrot.slane %v6704_v30, 1 }
  0xec   :  { %v204_v39 = vadd.f32 %v203_v35, %v6698_v17  ;;  %v205_v40 = vpop.f32.mrb[6].mxu0  ;;  %2006 = vmatprep.mubr.bf16.mxu1 %v6706_v31  ;;  %v516_v41 = vshrl.u32 %v6706_v31, 16  ;;  %v518_v42 = vshll.u32 %v6706_v31, 16  ;;  %v715_v14 = vrot.slane %v6706_v31, 1 }
  0xed   :  { %v314_v43 = vmax.f32 %v202_v34, 0.0  ;;  %v206_v44 = vadd.f32 %v205_v40, %v6695_v16  ;;  %v207_v45 = vpop.f32.mrb[7].mxu0  ;;  %2007 = vmatmul.mubr.bf16.vlgmr.msra.gmra.mrb[0].mxu1 %v6704_v30  ;;  %v6730_v51 = vrot.slane %v504_v37, 1  ;;  %v508_v55 = vrot.slane %v506_v38, 1 }
  0xee   :  { %v315_v47 = vmax.f32 %v204_v39, 0.0  ;;  %v208_v48 = vadd.f32 %v207_v45, %v6698_v17  ;;  %2088 = vmatpush1.bf16.msra.mxu1 %v5993_v33  ;;  %v6728_v50 = vrot.slane %v516_v41, 1  ;;  %v6737_v56 = vrot.slane %v518_v42, 2 }
  0xef   :  { %v6732_v52 = vpack.c.bf16 %v314_v43, %v314_v43  ;;  %v316_v53 = vmax.f32 %v206_v44, 0.0  ;;  %2089 = vmatprep.subr.bf16.mxu1 %v5998_v36  ;;  %v520_v59 = vrot.slane %v518_v42, 1  ;;  %v6741_v60 = vrot.slane %v506_v38, 2  ;;  %v6007_v36 = vld [vmem:[%s9033_s4 + $0x144] ss:$8 sps:$4 sm:$0xff]  }
  0xf0   :  { %v6739_v57 = vpack.c.bf16 %v315_v47, %v315_v47  ;;  %v317_v58 = vmax.f32 %v208_v48, 0.0  ;;  %v788_v6 = vor.u32 %v6737_v56, %v6728_v50  ;;  %v509_v11 = vor.u32 %v508_v55, %v504_v37  ;;  %v6010_v55 = vld [vmem:[%s9033_s4 + $0x154] ss:$8 sps:$4 sm:$0xff]  }
  0xf1   :  { %v511_v61 = vshll.u32 %v6732_v52, 16  ;;  %v780_v62 = vshrl.u32 %v6732_v52, 16  ;;  %v360_v63 = vpack.c.bf16 %v316_v53, %v314_v43  ;;  %v713_v0 = vrot.slane %v6732_v52, 1  ;;  %v6022_v50 = vld [vmem:[%s9033_s4 + $0x194] ss:$8 sps:$4 sm:$0xff]  }
  0xf2   :  { %v6746_v2 = vpack.c.bf16 %v317_v58, %v315_v47  ;;  %v211_v3 = vpop.f32.mrb[8].mxu0  ;;  %2090 = vmatpush1.bf16.msra.mxu1 %v5996_v49  ;;  %v523_v5 = vshll.u32 %v6739_v57, 16  ;;  %v779_v7 = vor.u32 %v6741_v60, %v6730_v51  ;;  %v521_v20 = vor.u32 %v520_v59, %v516_v41  ;;  %v6005_v47 = vld [vmem:[%s9033_s4 + $0x140] ss:$8 sps:$4 sm:$0xff]   ;;  %v6014_v60 = vld [vmem:[%s9033_s4 + $0x170] ss:$8 sps:$4 sm:$0xff]  }
  0xf3   :  { %v212_v8 = vadd.f32 %v211_v3, %v6695_v16  ;;  %v213_v9 = vpop.f32.mrb[9].mxu0  ;;  %2091 = vmatprep.subr.bf16.mxu1 %v6001_v54  ;;  %v513_v12 = vrot.slane %v511_v61, 1  ;;  %v716_v22 = vrot.slane %v6739_v57, 1  ;;  %v6763_v23 = vrot.slane %v780_v62, 1 }
  0xf4   :  { %v214_v18 = vadd.f32 %v213_v9, %v6698_v17  ;;  %v215_v19 = vpop.f32.mrb[10].mxu0  ;;  %v525_v21 = vrot.slane %v523_v5, 1  ;;  %v6770_v27 = vsel %vm711_vm2, %v712_v46, %v713_v0  ;;  %v783_v37 = vrot.slane %v511_v61, 2 }
  0xf5   :  { %v216_v24 = vadd.f32 %v215_v19, %v6695_v16  ;;  %v217_v25 = vpop.f32.mrb[11].mxu0  ;;  %v6767_v26 = vsel %vm502_vm3, %v509_v11, %v513_v12  ;;  %v6780_v33 = vsel %vm711_vm2, %v715_v14, %v716_v22  ;;  %v318_v34 = vmax.f32 %v212_v8, 0.0  ;;  %v6013_v12 = vld [vmem:[%s9033_s4 + $0x164] ss:$8 sps:$4 sm:$0xff]   ;;  %v6011_v22 = vld [vmem:[%s9033_s4 + $0x160] ss:$8 sps:$4 sm:$0xff]  }
  0xf6   :  { %v218_v28 = vadd.f32 %v217_v25, %v6698_v17  ;;  %2092 = vmatpush1.bf16.msra.mxu1 %v5999_v4  ;;  %v6777_v32 = vsel %vm502_vm3, %v521_v20, %v525_v21  ;;  %v319_v38 = vmax.f32 %v214_v18, 0.0  ;;  %v941_v40 = vrot.slane %v6706_v31, 2 }
  0xf7   :  { %v6782_v35 = vmax.f32 %v216_v24, 0.0  ;;  %2093 = vmatprep.subr.bf16.mxu1 %v6004_v10  ;;  %v942_v41 = vrot.slane %v6739_v57, 2  ;;  %v789_v43 = vshrl.u32 %v6739_v57, 16  ;;  %v784_v44 = vor.u32 %v783_v37, %v6763_v23 }
  0xf8   :  { %v6787_v39 = vmax.f32 %v218_v28, 0.0  ;;  %v412_v31 = vunpack.c.h.b16 %v360_v63  ;;  %v413_v57 = vunpack.c.h.b16 %v6746_v2  ;;  %v792_v4 = vrot.slane %v523_v5, 2  ;;  %v6008_v2 = vld [vmem:[%s9033_s4 + $0x150] ss:$8 sps:$4 sm:$0xff]   ;;  %v6016_v28 = vld [vmem:[%s9033_s4 + $0x174] ss:$8 sps:$4 sm:$0xff]  }
  0xf9   :  { %v362_v42 = vpack.c.bf16 %v6782_v35, %v318_v34  ;;  %v6799_v48 = vsel %vm937_vm4, %v941_v40, %v942_v41  ;;  %v791_v3 = vrot.slane %v789_v43, 1  ;;  %v6832_v23 = vsel %vm776_vm5, %v779_v7, %v784_v44  ;;  %v6019_v41 = vld [vmem:[%s9033_s4 + $0x184] ss:$8 sps:$4 sm:$0xff]  }
  0xfa   :  { %v363_v45 = vpack.c.bf16 %v6787_v39, %v319_v38  ;;  %v221_v46 = vpop.f32.mrb[12].mxu0  ;;  %2094 = vmatpush1.bf16.msra.mxu1 %v6002_v29  ;;  %9074 = vst [vmem:[#allocation5_spill] sm:$0xff] %v6799_v48  ;;  %9075 = vst [vmem:[#allocation6_spill] sm:$0xff] %v6832_v23  ;;  %v939_v7 = vrot.slane %v6732_v52, 2  ;;  %v938_v44 = vrot.slane %v6704_v30, 2 }
  0xfb   :  { %v414_v49 = vunpack.c.l.b16 %v362_v42  ;;  %v222_v53 = vadd.f32 %v221_v46, %v6695_v16  ;;  %v223_v54 = vpop.f32.mrb[13].mxu0  ;;  %2095 = vmatprep.subr.bf16.mxu1 %v6007_v36  ;;  %v793_v19 = vor.u32 %v792_v4, %v791_v3  ;;  %v6020_v3 = vld [vmem:[%s9033_s4 + $0x190] ss:$8 sps:$4 sm:$0xff]  }
  0xfc   :  { %v415_v58 = vunpack.c.l.b16 %v363_v45  ;;  %v224_v59 = vadd.f32 %v223_v54, %v6698_v17  ;;  %v225_v61 = vpop.f32.mrb[14].mxu0 }
  0xfd   :  { %v6807_v62 = vpack.c.b16 %v414_v49, %v412_v31  ;;  %v226_v0 = vadd.f32 %v225_v61, %v6695_v16  ;;  %v227_v63 = vpop.f32.mrb[15].mxu0  ;;  %v322_v10 = vmax.f32 %v222_v53, 0.0  ;;  %v6860_v52 = vsel %vm776_vm5, %v788_v6, %v793_v19  ;;  %v6017_v31 = vld [vmem:[%s9033_s4 + $0x180] ss:$8 sps:$4 sm:$0xff]  }
  0xfe   :  { %v6810_v8 = vpack.c.b16 %v415_v58, %v413_v57  ;;  %v228_v9 = vadd.f32 %v227_v63, %v6698_v17  ;;  %2096 = vmatpush1.bf16.msra.mxu1 %v6005_v47  ;;  %v323_v14 = vmax.f32 %v224_v59, 0.0  ;;  %9076 = vst [vmem:[#allocation7_spill] sm:$0xff] %v6860_v52  ;;  %v6868_v49 = vsel %vm937_vm4, %v938_v44, %v939_v7 }
  0xff   :  { %v324_v11 = vmax.f32 %v226_v0, 0.0  ;;  %2097 = vmatprep.subr.bf16.mxu1 %v6010_v55  ;;  %9077 = vst [vmem:[#allocation8_spill] sm:$0xff] %v6868_v49  ;;  %v528_v57 = vshrl.u32 %v6807_v62, 16  ;;  %v530_v58 = vshll.u32 %v6807_v62, 16  ;;  %v6881_v0 = vpack.c.bf16 %v6782_v35, %v6782_v35  ;;  %v6025_v35 = vld [vmem:[%s9033_s4 + $0x1a4] ss:$8 sps:$4 sm:$0xff]  }
 0x100   :  { %v325_v18 = vmax.f32 %v228_v9, 0.0  ;;  %2016 = vmatprep.mubr.bf16.mxu1 %v6810_v8  ;;  %v540_v30 = vshrl.u32 %v6810_v8, 16  ;;  %v542_v56 = vshll.u32 %v6810_v8, 16  ;;  %v6893_v9 = vpack.c.bf16 %v6787_v39, %v6787_v39 }
 0x101   :  { %v6820_v5 = vpack.c.bf16 %v324_v11, %v322_v10  ;;  %2017 = vmatmul.mubr.bf16.gmra.mrb[4].mxu1 %v6807_v62  ;;  %v6906_v19 = vrot.slane %v530_v58, 2 }
 0x102   :  { %v6823_v20 = vpack.c.bf16 %v325_v18, %v323_v14  ;;  %v231_v21 = vpop.f32.mrb[16].mxu0  ;;  %2098 = vmatpush1.bf16.msra.mxu1 %v6008_v2  ;;  %v6889_v4 = vrot.slane %v540_v30, 1  ;;  %v6900_v11 = vrot.slane %v542_v56, 2  ;;  %v6904_v18 = vrot.slane %v528_v57, 1 }
 0x103   :  { %v232_v24 = vadd.f32 %v231_v21, %v6695_v16  ;;  %v233_v25 = vpop.f32.mrb[17].mxu0  ;;  %2099 = vmatprep.subr.bf16.mxu1 %v6013_v12  ;;  %v547_v44 = vshll.u32 %v6893_v9, 16 }
 0x104   :  { %v234_v29 = vadd.f32 %v233_v25, %v6698_v17  ;;  %v235_v34 = vpop.f32.mrb[18].mxu0  ;;  %2026 = vmatprep.mubr.bf16.mxu1 %v6823_v20  ;;  %v806_v21 = vor.u32 %v6900_v11, %v6889_v4  ;;  %v6023_v25 = vld [vmem:[%s9033_s4 + $0x1a0] ss:$8 sps:$4 sm:$0xff]   ;;  %v6040_v11 = vld [vmem:[%s9033_s4 + $0x1f4] ss:$8 sps:$4 sm:$0xff]  }
 0x105   :  { %v236_v36 = vadd.f32 %v235_v34, %v6695_v16  ;;  %v237_v37 = vpop.f32.mrb[19].mxu0  ;;  %v6846_v38 = vmax.f32 %v232_v24, 0.0 }
 0x106   :  { %v238_v51 = vadd.f32 %v237_v37, %v6698_v17  ;;  %2100 = vmatpush1.bf16.msra.mxu1 %v6011_v22  ;;  %v6851_v42 = vmax.f32 %v234_v29, 0.0 }
 0x107   :  { %v328_v40 = vmax.f32 %v236_v36, 0.0  ;;  %2101 = vmatprep.subr.bf16.mxu1 %v6016_v28  ;;  %v797_v28 = vor.u32 %v6906_v19, %v6904_v18 }
 0x108   :  { %v329_v43 = vmax.f32 %v238_v51, 0.0  ;;  %v6028_v51 = vld [vmem:[%s9033_s4 + $0x1b4] ss:$8 sps:$4 sm:$0xff]  }
 0x109   :  { %v366_v45 = vpack.c.bf16 %v328_v40, %v6846_v38  ;;  %2027 = vmatmul.mubr.bf16.gmra.mrb[8].mxu1 %v6820_v5 }
 0x10a   :  { %v367_v46 = vpack.c.bf16 %v329_v43, %v6851_v42  ;;  %v241_v47 = vpop.f32.mrb[20].mxu0  ;;  %2102 = vmatpush1.bf16.msra.mxu1 %v6014_v60  ;;  %v535_v60 = vshll.u32 %v6881_v0, 16 }
 0x10b   :  { %v242_v53 = vadd.f32 %v241_v47, %v6695_v16  ;;  %v243_v54 = vpop.f32.mrb[21].mxu0  ;;  %2103 = vmatprep.subr.bf16.mxu1 %v6019_v41  ;;  %v424_v29 = vunpack.c.h.b16 %v366_v45 }
 0x10c   :  { %v244_v6 = vadd.f32 %v243_v54, %v6698_v17  ;;  %v245_v55 = vpop.f32.mrb[22].mxu0  ;;  %v425_v7 = vunpack.c.h.b16 %v367_v46  ;;  %v6026_v46 = vld [vmem:[%s9033_s4 + $0x1b0] ss:$8 sps:$4 sm:$0xff]  }
 0x10d   :  { %v246_v59 = vadd.f32 %v245_v55, %v6695_v16  ;;  %v247_v61 = vpop.f32.mrb[23].mxu0  ;;  %v330_v2 = vmax.f32 %v242_v53, 0.0  ;;  %v532_v53 = vrot.slane %v530_v58, 1  ;;  %v6936_v55 = vpack.c.bf16 %v6851_v42, %v6851_v42  ;;  %v6031_v58 = vld [vmem:[%s9033_s4 + $0x1c4] ss:$8 sps:$4 sm:$0xff]  }
 0x10e   :  { %v248_v63 = vadd.f32 %v247_v61, %v6698_v17  ;;  %2104 = vmatpush1.bf16.msra.mxu1 %v6017_v31  ;;  %v331_v12 = vmax.f32 %v244_v6, 0.0  ;;  %v566_v6 = vshll.u32 %v6823_v20, 16 }
 0x10f   :  { %v6895_v10 = vmax.f32 %v246_v59, 0.0  ;;  %2105 = vmatprep.subr.bf16.mxu1 %v6022_v50 }
 0x110   :  { %v6902_v14 = vmax.f32 %v248_v63, 0.0  ;;  %v807_v63 = vshrl.u32 %v6893_v9, 16 }
 0x111   :  { %v368_v39 = vpack.c.bf16 %v6895_v10, %v330_v2 }
 0x112   :  { %v369_v22 = vpack.c.bf16 %v6902_v14, %v331_v12  ;;  %v251_v24 = vpop.f32.mrb[24].mxu0  ;;  %2106 = vmatpush1.bf16.msra.mxu1 %v6020_v3  ;;  %v537_v12 = vrot.slane %v535_v60, 1 }
 0x113   :  { %v426_v34 = vunpack.c.l.b16 %v368_v39  ;;  %v252_v36 = vadd.f32 %v251_v24, %v6695_v16  ;;  %v253_v37 = vpop.f32.mrb[25].mxu0  ;;  %2107 = vmatprep.subr.bf16.mxu1 %v6025_v35  ;;  %v6943_v35 = vrot.slane %v547_v44, 1  ;;  %v544_v39 = vrot.slane %v542_v56, 1 }
 0x114   :  { %v427_v40 = vunpack.c.l.b16 %v369_v22  ;;  %v254_v41 = vadd.f32 %v253_v37, %v6698_v17  ;;  %v255_v43 = vpop.f32.mrb[26].mxu0  ;;  %v533_v22 = vor.u32 %v532_v53, %v528_v57  ;;  %v9051_v24 = vshrl.u32 %v6820_v5, 16 }
 0x115   :  { %v6924_v47 = vpack.c.b16 %v426_v34, %v424_v29  ;;  %v256_v45 = vadd.f32 %v255_v43, %v6695_v16  ;;  %v257_v31 = vpop.f32.mrb[27].mxu0  ;;  %v334_v59 = vmax.f32 %v252_v36, 0.0  ;;  %v6029_v36 = vld [vmem:[%s9033_s4 + $0x1c0] ss:$8 sps:$4 sm:$0xff]   ;;  %v568_v37 = vrot.slane %v566_v6, 1 }
 0x116   :  { %v6927_v54 = vpack.c.b16 %v427_v40, %v425_v7  ;;  %v258_v50 = vadd.f32 %v257_v31, %v6698_v17  ;;  %2108 = vmatpush1.bf16.msra.mxu1 %v6023_v25  ;;  %v335_v3 = vmax.f32 %v254_v41, 0.0  ;;  %v6953_v25 = vpack.c.bf16 %v6846_v38, %v6846_v38  ;;  %v6034_v38 = vld [vmem:[%s9033_s4 + $0x1d4] ss:$8 sps:$4 sm:$0xff]  }
 0x117   :  { %v336_v61 = vmax.f32 %v256_v45, 0.0  ;;  %2109 = vmatprep.subr.bf16.mxu1 %v6028_v51  ;;  %v9052_v56 = vshll.u32 %v6820_v5, 16  ;;  %v571_v7 = vshll.u32 %v6936_v55, 16  ;;  %v809_v40 = vrot.slane %v807_v63, 1 }
 0x118   :  { %v337_v2 = vmax.f32 %v258_v50, 0.0  ;;  %2036 = vmatprep.mubr.bf16.mxu1 %v6927_v54  ;;  %v810_v41 = vrot.slane %v547_v44, 2  ;;  %v6970_v43 = vpack.c.bf16 %v6895_v10, %v6895_v10  ;;  %v564_v53 = vshrl.u32 %v6823_v20, 16 }
 0x119   :  { %v6947_v42 = vpack.c.bf16 %v336_v61, %v334_v59  ;;  %2037 = vmatmul.mubr.bf16.gmra.mrb[12].mxu1 %v6924_v47  ;;  %v798_v50 = vshrl.u32 %v6881_v0, 16  ;;  %v6983_v10 = vor.u32 %v544_v39, %v540_v30  ;;  %v6037_v30 = vld [vmem:[%s9033_s4 + $0x1e4] ss:$8 sps:$4 sm:$0xff]   ;;  %v6999_v39 = vrot.slane %v571_v7, 1 }
 0x11a   :  { %v6955_v29 = vpack.c.bf16 %v337_v2, %v335_v3  ;;  %v261_v34 = vpop.f32.mrb[28].mxu0  ;;  %2110 = vmatpush1.bf16.msra.mxu1 %v6026_v46  ;;  %v6978_v46 = vpack.c.bf16 %v6902_v14, %v6902_v14  ;;  %v6032_v3 = vld [vmem:[%s9033_s4 + $0x1d0] ss:$8 sps:$4 sm:$0xff]   ;;  %v6990_v2 = vsel %vm502_vm3, %v533_v22, %v537_v12  ;;  %v6992_v14 = vor.u32 %v568_v37, %v564_v53 }
 0x11b   :  { %v262_v57 = vadd.f32 %v261_v34, %v6695_v16  ;;  %v263_v51 = vpop.f32.mrb[29].mxu0  ;;  %2111 = vmatprep.subr.bf16.mxu1 %v6031_v58  ;;  %v800_v22 = vrot.slane %v798_v50, 1  ;;  %v6035_v50 = vld [vmem:[%s9033_s4 + $0x1e0] ss:$8 sps:$4 sm:$0xff]   ;;  %v6038_v12 = vld [vmem:[%s9033_s4 + $0x1f0] ss:$8 sps:$4 sm:$0xff]  }
 0x11c   :  { %v264_v45 = vadd.f32 %v263_v51, %v6698_v17  ;;  %v265_v31 = vpop.f32.mrb[30].mxu0  ;;  %2046 = vmatprep.mubr.bf16.mxu1 %v6955_v29 }
 0x11d   :  { %v338_v59 = vmax.f32 %v262_v57, 0.0  ;;  %v266_v44 = vadd.f32 %v265_v31, %v6695_v16  ;;  %v267_v61 = vpop.f32.mrb[31].mxu0  ;;  %v811_v57 = vor.u32 %v810_v41, %v809_v40 }
 0x11e   :  { %v339_v58 = vmax.f32 %v264_v45, 0.0  ;;  %v268_v63 = vadd.f32 %v267_v61, %v6698_v17  ;;  %2112 = vmatpush1.bf16.msra.mxu1 %v6029_v36 }
 0x11f   :  { %v340_v34 = vmax.f32 %v266_v44, 0.0  ;;  %2113 = vmatprep.subr.bf16.mxu1 %v6034_v38  ;;  %v7002_v51 = vpack.c.bf16 %v338_v59, %v338_v59  ;;  %v7015_v44 = vsel %vm776_vm5, %v806_v21, %v811_v57 }
 0x120   :  { %v341_v45 = vmax.f32 %v268_v63, 0.0  ;;  %v7005_v37 = vpack.c.bf16 %v339_v58, %v339_v58  ;;  %9078 = vst [vmem:[#allocation9_spill] sm:$0xff] %v7015_v44 }
 0x121   :  { %v7007_v38 = vpack.c.bf16 %v340_v34, %v338_v59  ;;  %2047 = vmatmul.mubr.bf16.gmra.mrb[16].mxu1 %v6947_v42 }
 0x122   :  { %v7017_v40 = vpack.c.bf16 %v341_v45, %v339_v58  ;;  %v271_v41 = vpop.f32.mrb[32].mxu0  ;;  %2114 = vmatpush1.bf16.msra.mxu1 %v6032_v3  ;;  %v7058_v58 = vrot.slane %v571_v7, 2 }
 0x123   :  { %v272_v34 = vadd.f32 %v271_v41, %v6695_v16  ;;  %v273_v4 = vpop.f32.mrb[33].mxu0  ;;  %2115 = vmatprep.subr.bf16.mxu1 %v6037_v30  ;;  %v436_v30 = vunpack.c.h.b16 %v7007_v38  ;;  %v801_v41 = vrot.slane %v535_v60, 2  ;;  %v7062_v60 = vrot.slane %v9051_v24, 1 }
 0x124   :  { %v274_v57 = vadd.f32 %v273_v4, %v6698_v17  ;;  %v275_v45 = vpop.f32.mrb[34].mxu0  ;;  %v437_v63 = vunpack.c.h.b16 %v7017_v40  ;;  %v6043_v40 = vld [vmem:[%s9033_s4 + $0x204] ss:$8 sps:$4 sm:$0xff]  }
 0x125   :  { %v276_v61 = vadd.f32 %v275_v45, %v6695_v16  ;;  %v277_v31 = vpop.f32.mrb[35].mxu0  ;;  %v342_v21 = vmax.f32 %v272_v34, 0.0  ;;  %v7049_v45 = vrot.slane %v564_v53, 1  ;;  %v7053_v34 = vrot.slane %v566_v6, 2 }
 0x126   :  { %v343_v3 = vmax.f32 %v274_v57, 0.0  ;;  %v278_v4 = vadd.f32 %v277_v31, %v6698_v17  ;;  %2116 = vmatpush1.bf16.msra.mxu1 %v6035_v50  ;;  %v825_v31 = vshrl.u32 %v6936_v55, 16  ;;  %v802_v57 = vor.u32 %v801_v41, %v800_v22 }
 0x127   :  { %v344_v38 = vmax.f32 %v276_v61, 0.0  ;;  %2117 = vmatprep.subr.bf16.mxu1 %v6040_v11 }
 0x128   :  { %v345_v50 = vmax.f32 %v278_v4, 0.0  ;;  %v7068_v6 = vrot.slane %v825_v31, 1  ;;  %v7076_v7 = vsel %vm776_vm5, %v797_v28, %v802_v57 }
 0x129   :  { %v374_v61 = vpack.c.bf16 %v344_v38, %v342_v21  ;;  %v7064_v11 = vpack.c.bf16 %v344_v38, %v344_v38  ;;  %9079 = vst [vmem:[#allocation10_spill] sm:$0xff] %v7076_v7  ;;  %v7080_v21 = vrot.slane %v9052_v56, 2 }
 0x12a   :  { %v375_v1 = vpack.c.bf16 %v345_v50, %v343_v3  ;;  %v7070_v59 = vpack.c.bf16 %v345_v50, %v345_v50  ;;  %v281_v22 = vpop.f32.mrb[36].mxu0  ;;  %2118 = vmatpush1.bf16.msra.mxu1 %v6038_v12 }
 0x12b   :  { %v438_v41 = vunpack.c.l.b16 %v374_v61  ;;  %v282_v4 = vadd.f32 %v281_v22, %v6695_v16  ;;  %v283_v38 = vpop.f32.mrb[37].mxu0  ;;  %2200 = vmatprep.subr.bf16.mxu1 %v6043_v40  ;;  %v9055_v3 = vshll.u32 %v7064_v11, 16  ;;  %v743_v31 = vrot.slane %v7064_v11, 1 }
 0x12c   :  { %v439_v12 = vunpack.c.l.b16 %v375_v1  ;;  %v284_v50 = vadd.f32 %v283_v38, %v6698_v17  ;;  %v285_v18 = vpop.f32.mrb[38].mxu0  ;;  %v9056_v19 = vshll.u32 %v7070_v59, 16  ;;  %v746_v28 = vrot.slane %v7070_v59, 1 }
 0x12d   :  { %v7088_v57 = vpack.c.b16 %v438_v41, %v436_v30  ;;  %v346_v24 = vmax.f32 %v282_v4, 0.0  ;;  %v286_v61 = vadd.f32 %v285_v18, %v6695_v16  ;;  %v287_v22 = vpop.f32.mrb[39].mxu0  ;;  %v633_v40 = vrot.slane %v9055_v3, 1 }
 0x12e   :  { %v7093_v56 = vpack.c.b16 %v439_v12, %v437_v63  ;;  %v347_v36 = vmax.f32 %v284_v50, 0.0  ;;  %v288_v1 = vadd.f32 %v287_v22, %v6698_v17  ;;  %v645_v38 = vrot.slane %v9056_v19, 1 }
 0x12f   :  { %v348_v53 = vmax.f32 %v286_v61, 0.0  ;;  %v9057_v30 = vshll.u32 %v7088_v57, 16  ;;  %v742_v41 = vrot.slane %v7088_v57, 1 }
 0x130   :  { %v349_v4 = vmax.f32 %v288_v1, 0.0  ;;  %2056 = vmatprep.mubr.bf16.mxu1 %v7093_v56  ;;  %v9058_v63 = vshll.u32 %v7093_v56, 16  ;;  %v745_v12 = vrot.slane %v7093_v56, 1  ;;  %v829_v1 = vor.u32 %v7058_v58, %v7068_v6 }
 0x131   :  { %v7105_v50 = vpack.c.bf16 %v348_v53, %v346_v24  ;;  %2057 = vmatmul.mubr.bf16.gmra.mrb[20].mxu1 %v7088_v57  ;;  %v628_v61 = vrot.slane %v9057_v30, 1  ;;  %v7111_v22 = vsel %vm711_vm2, %v742_v41, %v743_v31  ;;  %v9082_v31 = vshrl.u32 %v7088_v57, 16 }
 0x132   :  { %9080 = vst [vmem:[#allocation11_spill] sm:$0xff] %v7111_v22  ;;  %v7115_v3 = vpack.c.bf16 %v349_v4, %v347_v36  ;;  %v291_v19 = vpop.f32.mrb[40].mxu0  ;;  %v640_v18 = vrot.slane %v9058_v63, 1  ;;  %v7120_v24 = vsel %vm711_vm2, %v745_v12, %v746_v28  ;;  %v9083_v28 = vshrl.u32 %v7093_v56, 16 }
 0x133   :  { %9081 = vst [vmem:[#allocation12_spill] sm:$0xff] %v7120_v24  ;;  %v292_v30 = vadd.f32 %v291_v19, %v6695_v16  ;;  %v293_v15 = vpop.f32.mrb[41].mxu0  ;;  %v629_v41 = vor.u32 %v628_v61, %v9082_v31  ;;  %v9061_v36 = vshll.u32 %v7105_v50, 16 }
 0x134   :  { %v294_v6 = vadd.f32 %v293_v15, %v6698_v17  ;;  %v295_v4 = vpop.f32.mrb[42].mxu0  ;;  %2066 = vmatprep.mubr.bf16.mxu1 %v7115_v3  ;;  %v641_v12 = vor.u32 %v640_v18, %v9083_v28  ;;  %v9062_v19 = vshll.u32 %v7115_v3, 16 }
 0x135   :  { %v350_v53 = vmax.f32 %v292_v30, 0.0  ;;  %v296_v13 = vadd.f32 %v295_v4, %v6695_v16  ;;  %v297_v61 = vpop.f32.mrb[43].mxu0  ;;  %v7137_v31 = vsel %vm502_vm3, %v629_v41, %v633_v40  ;;  %v652_v15 = vrot.slane %v9061_v36, 1 }
 0x136   :  { %v351_v58 = vmax.f32 %v294_v6, 0.0  ;;  %v298_v49 = vadd.f32 %v297_v61, %v6698_v17  ;;  %v7143_v48 = vsel %vm502_vm3, %v641_v12, %v645_v38  ;;  %v664_v18 = vrot.slane %v9062_v19, 1 }
 0x137   :  { %v7147_v28 = vpack.c.bf16 %v350_v53, %v350_v53  ;;  %v352_v30 = vmax.f32 %v296_v13, 0.0  ;;  %v9084_v4 = vshrl.u32 %v7105_v50, 16  ;;  %v751_v40 = vrot.slane %v7115_v3, 1 }
 0x138   :  { %v7152_v41 = vpack.c.bf16 %v351_v58, %v351_v58  ;;  %v353_v36 = vmax.f32 %v298_v49, 0.0  ;;  %v9085_v6 = vshrl.u32 %v7115_v3, 16  ;;  %v748_v38 = vrot.slane %v7105_v50, 1 }
 0x139   :  { %v653_v63 = vor.u32 %v652_v15, %v9084_v4  ;;  %v378_v12 = vpack.c.bf16 %v352_v30, %v350_v53  ;;  %2067 = vmatmul.mubr.bf16.gmra.mrb[24].mxu1 %v7105_v50  ;;  %v749_v13 = vrot.slane %v7147_v28, 1  ;;  %v9086_v15 = vor.u32 %v7053_v34, %v7049_v45 }
 0x13a   :  { %v665_v61 = vor.u32 %v664_v18, %v9085_v6  ;;  %v379_v7 = vpack.c.bf16 %v353_v36, %v351_v58  ;;  %v301_v49 = vpop.f32.mrb[44].mxu0  ;;  %v9063_v44 = vshll.u32 %v7152_v41, 16  ;;  %v752_v18 = vrot.slane %v7152_v41, 1 }
 0x13b   :  { %v7164_v4 = vsel %vm776_vm5, %v9086_v15, %v829_v1  ;;  %v816_v53 = vshrl.u32 %v6953_v25, 16  ;;  %v448_v30 = vunpack.c.h.b16 %v378_v12  ;;  %v302_v6 = vadd.f32 %v301_v49, %v6695_v16  ;;  %v303_v19 = vpop.f32.mrb[45].mxu0 }
 0x13c   :  { %9087 = vst [vmem:[#allocation13_spill] sm:$0xff] %v7164_v4  ;;  %v9088_v23 = vshll.u32 %v7147_v28, 16  ;;  %v7173_v45 = vsel %vm711_vm2, %v748_v38, %v749_v13  ;;  %v449_v34 = vunpack.c.h.b16 %v379_v7  ;;  %v304_v1 = vadd.f32 %v303_v19, %v6698_v17  ;;  %v305_v58 = vpop.f32.mrb[46].mxu0 }
 0x13d   :  { %9089 = vst [vmem:[#allocation14_spill] sm:$0xff] %v7173_v45  ;;  %v669_v36 = vrot.slane %v9063_v44, 1  ;;  %v7179_v15 = vsel %vm711_vm2, %v751_v40, %v752_v18  ;;  %v354_v12 = vmax.f32 %v302_v6, 0.0  ;;  %v306_v49 = vadd.f32 %v305_v58, %v6695_v16  ;;  %v307_v4 = vpop.f32.mrb[47].mxu0 }
 0x13e   :  { %v657_v52 = vrot.slane %v9088_v23, 1  ;;  %9090 = vst [vmem:[#allocation15_spill] sm:$0xff] %v7179_v15  ;;  %v818_v23 = vrot.slane %v816_v53, 1  ;;  %v355_v38 = vmax.f32 %v304_v1, 0.0  ;;  %v308_v7 = vadd.f32 %v307_v4, %v6698_v17 }
 0x13f   :  { %v7187_v19 = vsel %vm502_vm3, %v665_v61, %v669_v36  ;;  %v9091_v13 = vshll.u32 %v6953_v25, 16  ;;  %v356_v45 = vmax.f32 %v306_v49, 0.0  ;;  %v9092_v40 = vshrl.u32 %v6927_v54, 16 }
 0x140   :  { %v7183_v22 = vsel %vm502_vm3, %v653_v63, %v657_v52  ;;  %v9093_v16 = vshll.u32 %v6927_v54, 16  ;;  %v843_v52 = vshrl.u32 %v6978_v46, 16  ;;  %v357_v63 = vmax.f32 %v308_v7, 0.0 }
 0x141   :  { %v819_v44 = vrot.slane %v9091_v13, 2  ;;  %v840_v18 = vrot.slane %v9092_v40, 1  ;;  %v9094_v1 = vshll.u32 %v6978_v46, 16  ;;  %v9095_v61 = vshrl.u32 %v6924_v47, 16 }
 0x142   :  { %v841_v6 = vrot.slane %v9093_v16, 2  ;;  %v380_v58 = vpack.c.bf16 %v356_v45, %v354_v12  ;;  %v7200_v36 = vpack.c.bf16 %v356_v45, %v356_v45  ;;  %v845_v13 = vrot.slane %v843_v52, 1 }
 0x143   :  { %v820_v53 = vor.u32 %v819_v44, %v818_v23  ;;  %v846_v17 = vrot.slane %v9094_v1, 2  ;;  %v831_v4 = vrot.slane %v9095_v61, 1  ;;  %v381_v15 = vpack.c.bf16 %v357_v63, %v355_v38 }
 0x144   :  { %v842_v49 = vor.u32 %v841_v6, %v840_v18  ;;  %v7202_v40 = vpack.c.bf16 %v357_v63, %v357_v63  ;;  %v9096_v16 = vor.u32 %v7080_v21, %v7062_v60  ;;  %v9098_v44 = vshll.u32 %v6924_v47, 16 }
 0x145   :  { %v450_v1 = vunpack.c.l.b16 %v380_v58  ;;  %v9064_v61 = vshll.u32 %v7200_v36, 16  ;;  %v755_v45 = vrot.slane %v7200_v36, 1  ;;  %v847_v12 = vor.u32 %v846_v17, %v845_v13 }
 0x146   :  { %v7208_v7 = vsel %vm776_vm5, %v9096_v16, %v820_v53  ;;  %v832_v23 = vrot.slane %v9098_v44, 2  ;;  %v451_v18 = vunpack.c.l.b16 %v381_v15  ;;  %v9065_v38 = vshll.u32 %v7202_v40, 16 }
 0x147   :  { %9097 = vst [vmem:[#allocation16_spill] sm:$0xff] %v7208_v7  ;;  %v758_v6 = vrot.slane %v7202_v40, 1  ;;  %v7216_v63 = vpack.c.b16 %v450_v1, %v448_v30  ;;  %v681_v60 = vrot.slane %v9064_v61, 1  ;;  %v7221_v21 = vsel %vm776_vm5, %v842_v49, %v847_v12 }
 0x148   :  { %v833_v52 = vor.u32 %v832_v23, %v831_v4  ;;  %9099 = vst [vmem:[#allocation17_spill] sm:$0xff] %v7221_v21  ;;  %v834_v53 = vshrl.u32 %v6970_v43, 16  ;;  %v7224_v58 = vpack.c.b16 %v451_v18, %v449_v34  ;;  %v693_v15 = vrot.slane %v9065_v38, 1 }
 0x149   :  { %v9100_v17 = vshll.u32 %v6970_v43, 16  ;;  %v9101_v4 = vshrl.u32 %v6955_v29, 16  ;;  %v9066_v44 = vshll.u32 %v7216_v63, 16  ;;  %v754_v49 = vrot.slane %v7216_v63, 1 }
 0x14a   :  { %v836_v23 = vrot.slane %v834_v53, 1  ;;  %2076 = vmatprep.mubr.bf16.mxu1 %v7224_v58  ;;  %v9067_v1 = vshll.u32 %v7224_v58, 16  ;;  %v757_v12 = vrot.slane %v7224_v58, 1  ;;  %v9102_v18 = vshll.u32 %v6955_v29, 16 }
 0x14b   :  { %v837_v13 = vrot.slane %v9100_v17, 2  ;;  %v858_v30 = vrot.slane %v9101_v4, 1  ;;  %2077 = vmatmul.mubr.bf16.gmra.mrb[28].mxu1 %v7216_v63  ;;  %v676_v4 = vrot.slane %v9066_v44, 1  ;;  %v7245_v61 = vsel %vm711_vm2, %v754_v49, %v755_v45 }
 0x14c   :  { %v859_v17 = vrot.slane %v9102_v18, 2  ;;  %9103 = vst [vmem:[#allocation18_spill] sm:$0xff] %v7245_v61  ;;  %v861_v38 = vshrl.u32 %v7005_v37, 16  ;;  %2119 = vmatprep.mubr.bf16.mxu1 %v6777_v32  ;;  %v688_v34 = vrot.slane %v9067_v1, 1  ;;  %v7252_v16 = vsel %vm711_vm2, %v757_v12, %v758_v6 }
 0x14d   :  { %v838_v53 = vor.u32 %v837_v13, %v836_v23  ;;  %v9104_v21 = vshll.u32 %v7005_v37, 16  ;;  %v9105_v44 = vshrl.u32 %v7216_v63, 16  ;;  %v9107_v49 = vshrl.u32 %v6947_v42, 16 }
 0x14e   :  { %v860_v18 = vor.u32 %v859_v17, %v858_v30  ;;  %v863_v13 = vrot.slane %v861_v38, 1  ;;  %v9108_v23 = vshrl.u32 %v7224_v58, 16  ;;  %v9109_v6 = vshll.u32 %v6947_v42, 16 }
 0x14f   :  { %v864_v7 = vrot.slane %v9104_v21, 2  ;;  %v677_v24 = vor.u32 %v676_v4, %v9105_v44  ;;  %v7259_v45 = vsel %vm776_vm5, %v833_v52, %v838_v53  ;;  %v849_v32 = vrot.slane %v9107_v49, 1 }
 0x150   :  { %9106 = vst [vmem:[#allocation19_spill] sm:$0xff] %v7259_v45  ;;  %v689_v1 = vor.u32 %v688_v34, %v9108_v23  ;;  %v850_v12 = vrot.slane %v9109_v6, 2  ;;  %v852_v30 = vshrl.u32 %v7002_v51, 16  ;;  %v9110_v21 = vshll.u32 %v7002_v51, 16  ;;  %v6041_v34 = vld [vmem:[%s9033_s4 + $0x200] ss:$8 sps:$4 sm:$0xff]  }
 0x151   :  { %v7271_v44 = vsel %vm502_vm3, %v677_v24, %v681_v60  ;;  %v865_v52 = vor.u32 %v864_v7, %v863_v13  ;;  %v9111_v38 = vshrl.u32 %v7093_v56, 16  ;;  %v9112_v53 = vshll.u32 %v7093_v56, 16  ;;  %v6046_v24 = vld [vmem:[%s9033_s4 + $0x214] ss:$8 sps:$4 sm:$0xff]  }
 0x152   :  { %v855_v17 = vrot.slane %v9110_v21, 2  ;;  %v7281_v23 = vsel %vm502_vm3, %v689_v1, %v693_v15  ;;  %v851_v6 = vor.u32 %v850_v12, %v849_v32  ;;  %v854_v45 = vrot.slane %v852_v30, 1 }
 0x153   :  { %v876_v4 = vrot.slane %v9111_v38, 1  ;;  %v877_v49 = vrot.slane %v9112_v53, 2  ;;  %v879_v21 = vshrl.u32 %v7070_v59, 16  ;;  %v7288_v7 = vsel %vm776_vm5, %v860_v18, %v865_v52  ;;  %2120 = vmatmul.mubr.bf16.vlgmr.msra.gmra.mrb[0].mxu1 %v6767_v26  ;;  %v6044_v26 = vld [vmem:[%s9033_s4 + $0x210] ss:$8 sps:$4 sm:$0xff]  }
 0x154   :  { %v9113_v13 = vshll.u32 %v7070_v59, 16  ;;  %v9114_v53 = vshrl.u32 %v7088_v57, 16  ;;  %v856_v15 = vor.u32 %v855_v17, %v854_v45  ;;  %v9115_v32 = vshll.u32 %v7088_v57, 16  ;;  %2201 = vmatpush1.bf16.msra.mxu1 %v6041_v34 }
 0x155   :  { %v878_v60 = vor.u32 %v877_v49, %v876_v4  ;;  %v881_v1 = vrot.slane %v879_v21, 1  ;;  %v870_v30 = vshrl.u32 %v7064_v11, 16  ;;  %v550_v18 = vsel %vm502_vm3, %v6983_v10, %v6943_v35  ;;  %2202 = vmatprep.subr.bf16.mxu1 %v6046_v24 }
 0x156   :  { %v882_v38 = vrot.slane %v9113_v13, 2  ;;  %v867_v61 = vrot.slane %v9114_v53, 1  ;;  %v868_v12 = vrot.slane %v9115_v32, 2  ;;  %v574_v52 = vsel %vm502_vm3, %v6992_v14, %v6999_v39  ;;  %2129 = vmatprep.mubr.bf16.mxu1 %v550_v18  ;;  %v6049_v14 = vld [vmem:[%s9033_s4 + $0x224] ss:$8 sps:$4 sm:$0xff]  }
 0x157   :  { %v9116_v4 = vshll.u32 %v7064_v11, 16  ;;  %v9117_v45 = vshrl.u32 %v7115_v3, 16  ;;  %v7312_v21 = vsel %vm776_vm5, %v851_v6, %v856_v15  ;;  %v872_v13 = vrot.slane %v870_v30, 1 }
 0x158   :  { %9118 = vst [vmem:[#allocation20_spill] sm:$0xff] %v7312_v21  ;;  %v883_v35 = vor.u32 %v882_v38, %v881_v1  ;;  %v869_v10 = vor.u32 %v868_v12, %v867_v61  ;;  %v9119_v39 = vshll.u32 %v7115_v3, 16  ;;  %v897_v34 = vshrl.u32 %v7152_v41, 16  ;;  %2203 = vmatpush1.bf16.msra.mxu1 %v6044_v26 }
 0x159   :  { %v873_v49 = vrot.slane %v9116_v4, 2  ;;  %v894_v17 = vrot.slane %v9117_v45, 1  ;;  %v9120_v32 = vshll.u32 %v7152_v41, 16  ;;  %v9121_v4 = vshrl.u32 %v7105_v50, 16  ;;  %2204 = vmatprep.subr.bf16.mxu1 %v6049_v14 }
 0x15a   :  { %v895_v53 = vrot.slane %v9119_v39, 2  ;;  %v7325_v38 = vsel %vm776_vm5, %v878_v60, %v883_v35  ;;  %v9123_v24 = vshll.u32 %v7105_v50, 16  ;;  %v888_v1 = vshrl.u32 %v7147_v28, 16  ;;  %v6047_v60 = vld [vmem:[%s9033_s4 + $0x220] ss:$8 sps:$4 sm:$0xff]  }
 0x15b   :  { %v900_v18 = vrot.slane %v9120_v32, 2  ;;  %v885_v6 = vrot.slane %v9121_v4, 1  ;;  %9122 = vst [vmem:[#allocation21_spill] sm:$0xff] %v7325_v38  ;;  %v874_v61 = vor.u32 %v873_v49, %v872_v13  ;;  %v899_v30 = vrot.slane %v897_v34, 1  ;;  %2130 = vmatmul.mubr.bf16.gmra.mrb[4].mxu1 %v6990_v2 }
 0x15c   :  { %v886_v15 = vrot.slane %v9123_v24, 2  ;;  %v896_v12 = vor.u32 %v895_v53, %v894_v17  ;;  %v9124_v45 = vshll.u32 %v7147_v28, 16  ;;  %v9125_v21 = vshrl.u32 %v7224_v58, 16  ;;  %v6052_v53 = vld [vmem:[%s9033_s4 + $0x234] ss:$8 sps:$4 sm:$0xff]   ;;  %2139 = vmatprep.mubr.bf16.mxu1 %v574_v52  ;;  %2205 = vmatpush1.bf16.msra.mxu1 %v6047_v60 }
 0x15d   :  { %v7338_v49 = vsel %vm776_vm5, %v869_v10, %v874_v61  ;;  %v890_v13 = vrot.slane %v888_v1, 1  ;;  %v9127_v4 = vshll.u32 %v7224_v58, 16  ;;  %v901_v34 = vor.u32 %v900_v18, %v899_v30  ;;  %2206 = vmatprep.subr.bf16.mxu1 %v6052_v53  ;;  %v6053_v53 = vld [vmem:[%s9033_s4 + $0x240] ss:$8 sps:$4 sm:$0xff]  }
 0x15e   :  { %v891_v39 = vrot.slane %v9124_v45, 2  ;;  %v912_v32 = vrot.slane %v9125_v21, 1  ;;  %9126 = vst [vmem:[#allocation22_spill] sm:$0xff] %v7338_v49  ;;  %v887_v35 = vor.u32 %v886_v15, %v885_v6  ;;  %v915_v26 = vshrl.u32 %v7202_v40, 16 }
 0x15f   :  { %v913_v17 = vrot.slane %v9127_v4, 2  ;;  %v9128_v21 = vshll.u32 %v7202_v40, 16  ;;  %v9129_v45 = vshrl.u32 %v7216_v63, 16  ;;  %v9130_v15 = vshll.u32 %v7216_v63, 16 }
 0x160   :  { %v892_v61 = vor.u32 %v891_v39, %v890_v13  ;;  %v906_v14 = vshrl.u32 %v7200_v36, 16  ;;  %v9131_v4 = vshll.u32 %v6927_v54, 16  ;;  %v7357_v30 = vsel %vm776_vm5, %v896_v12, %v901_v34  ;;  %v6050_v39 = vld [vmem:[%s9033_s4 + $0x230] ss:$8 sps:$4 sm:$0xff]   ;;  %v6055_v12 = vld [vmem:[%s9033_s4 + $0x244] ss:$8 sps:$4 sm:$0xff]  }
 0x161   :  { %v918_v24 = vrot.slane %v9128_v21, 2  ;;  %v903_v10 = vrot.slane %v9129_v45, 1  ;;  %v914_v6 = vor.u32 %v913_v17, %v912_v32  ;;  %v904_v1 = vrot.slane %v9130_v15, 2  ;;  %2207 = vmatpush1.bf16.msra.mxu1 %v6050_v39 }
 0x162   :  { %v592_v18 = vrot.slane %v9131_v4, 1  ;;  %v917_v49 = vrot.slane %v915_v26, 1  ;;  %v9132_v21 = vshll.u32 %v7200_v36, 16  ;;  %v9133_v32 = vshll.u32 %v6820_v5, 16  ;;  %2208 = vmatprep.subr.bf16.mxu1 %v6055_v12 }
 0x163   :  { %v7367_v2 = vsel %vm776_vm5, %v887_v35, %v892_v61  ;;  %v905_v17 = vor.u32 %v904_v1, %v903_v10  ;;  %v908_v45 = vrot.slane %v906_v14, 1  ;;  %v9134_v52 = vshll.u32 %v6953_v25, 16 }
 0x164   :  { %v909_v38 = vrot.slane %v9132_v21, 2  ;;  %v556_v13 = vrot.slane %v9133_v32, 1  ;;  %v919_v34 = vor.u32 %v918_v24, %v917_v49  ;;  %v9135_v15 = vshrl.u32 %v6927_v54, 16 }
 0x165   :  { %v561_v60 = vrot.slane %v9134_v52, 1  ;;  %v9136_v35 = vshrl.u32 %v6820_v5, 16  ;;  %v9137_v49 = vshll.u32 %v6924_v47, 16  ;;  %v971_v39 = vrot.slane %v7093_v56, 2  ;;  %2209 = vmatpush1.bf16.msra.mxu1 %v6053_v53  ;;  %v6061_v56 = vld [vmem:[%s9033_s4 + $0x264] ss:$8 sps:$4 sm:$0xff]  }
 0x166   :  { %v910_v26 = vor.u32 %v909_v38, %v908_v45  ;;  %v593_v4 = vor.u32 %v592_v18, %v9135_v15  ;;  %v7377_v21 = vsel %vm776_vm5, %v914_v6, %v919_v34  ;;  %v9138_v38 = vshll.u32 %v6978_v46, 16  ;;  %v6058_v6 = vld [vmem:[%s9033_s4 + $0x254] ss:$8 sps:$4 sm:$0xff]  }
 0x167   :  { %v557_v10 = vor.u32 %v556_v13, %v9136_v35  ;;  %v580_v24 = vrot.slane %v9137_v49, 1  ;;  %v972_v32 = vrot.slane %v7070_v59, 2  ;;  %v6056_v13 = vld [vmem:[%s9033_s4 + $0x250] ss:$8 sps:$4 sm:$0xff]   ;;  %v9140_v12 = vshll.u32 %v6955_v29, 16  ;;  %2210 = vmatprep.subr.bf16.mxu1 %v6058_v6 }
 0x168   :  { %v7387_v61 = vsel %vm776_vm5, %v905_v17, %v910_v26  ;;  %v597_v1 = vrot.slane %v9138_v38, 1  ;;  %v9139_v17 = vshrl.u32 %v6924_v47, 16  ;;  %v968_v52 = vrot.slane %v7088_v57, 2 }
 0x169   :  { %v562_v14 = vsel %vm502_vm3, %v557_v10, %v561_v60  ;;  %v616_v34 = vrot.slane %v9140_v12, 1  ;;  %v969_v60 = vrot.slane %v7064_v11, 2  ;;  %v7411_v59 = vsel %vm937_vm4, %v971_v39, %v972_v32  ;;  %2211 = vmatpush1.bf16.msra.mxu1 %v6056_v13  ;;  %v6062_v39 = vld [vmem:[%s9033_s4 + $0x270] ss:$8 sps:$4 sm:$0xff]  }
 0x16a   :  { %2140 = vmatmul.mubr.bf16.gmra.mrb[8].mxu1 %v562_v14  ;;  %v598_v18 = vsel %vm502_vm3, %v593_v4, %v597_v1  ;;  %v581_v45 = vor.u32 %v580_v24, %v9139_v17  ;;  %v977_v26 = vrot.slane %v7115_v3, 2  ;;  %v978_v15 = vrot.slane %v7152_v41, 2  ;;  %2212 = vmatprep.subr.bf16.mxu1 %v6061_v56  ;;  %v6067_v17 = vld [vmem:[%s9033_s4 + $0x284] ss:$8 sps:$4 sm:$0xff]   ;;  %v6070_v56 = vld [vmem:[%s9033_s4 + $0x294] ss:$8 sps:$4 sm:$0xff]  }
 0x16b   :  { %2149 = vmatprep.mubr.bf16.mxu1 %v598_v18  ;;  %v974_v4 = vrot.slane %v7105_v50, 2  ;;  %v7417_v35 = vsel %vm937_vm4, %v968_v52, %v969_v60  ;;  %v975_v57 = vrot.slane %v7147_v28, 2  ;;  %v983_v11 = vrot.slane %v7224_v58, 2  ;;  %v6059_v28 = vld [vmem:[%s9033_s4 + $0x260] ss:$8 sps:$4 sm:$0xff]  }
 0x16c   :  { %v984_v10 = vrot.slane %v7202_v40, 2  ;;  %v9141_v53 = vshll.u32 %v7005_v37, 16  ;;  %v7425_v24 = vsel %vm937_vm4, %v977_v26, %v978_v15  ;;  %v980_v3 = vrot.slane %v7216_v63, 2  ;;  %v6065_v60 = vld [vmem:[%s9033_s4 + $0x280] ss:$8 sps:$4 sm:$0xff]  }
 0x16d   :  { %v981_v41 = vrot.slane %v7200_v36, 2  ;;  %v9142_v50 = vshll.u32 %v6970_v43, 16  ;;  %v7435_v40 = vsel %vm937_vm4, %v974_v4, %v975_v57  ;;  %v9143_v1 = vshrl.u32 %v6955_v29, 16  ;;  %v6064_v36 = vld [vmem:[%s9033_s4 + $0x274] ss:$8 sps:$4 sm:$0xff]   ;;  %2213 = vmatpush1.bf16.msra.mxu1 %v6059_v28 }
 0x16e   :  { %v621_v49 = vrot.slane %v9141_v53, 1  ;;  %v7438_v58 = vsel %vm937_vm4, %v983_v11, %v984_v10  ;;  %v9144_v32 = vshll.u32 %v6947_v42, 16  ;;  %2214 = vmatprep.subr.bf16.mxu1 %v6064_v36  ;;  %v9145_v12 = vshll.u32 %v7002_v51, 16  ;;  %v6068_v15 = vld [vmem:[%s9033_s4 + $0x290] ss:$8 sps:$4 sm:$0xff]  }
 0x16f   :  { %v585_v38 = vrot.slane %v9142_v50, 1  ;;  %v617_v63 = vor.u32 %v616_v34, %v9143_v1  ;;  %v7446_v6 = vsel %vm937_vm4, %v980_v3, %v981_v41  ;;  %v9146_v34 = vshrl.u32 %v6947_v42, 16  ;;  %v6073_v4 = vld [vmem:[%s9033_s4 + $0x2a4] ss:$8 sps:$4 sm:$0xff]   ;;  %v6071_v57 = vld [vmem:[%s9033_s4 + $0x2a0] ss:$8 sps:$4 sm:$0xff]  }
 0x170   :  { %v604_v13 = vrot.slane %v9144_v32, 1  ;;  %v6074_v11 = vld [vmem:[%s9033_s4 + $0x2b0] ss:$8 sps:$4 sm:$0xff]   ;;  %v6079_v10 = vld [vmem:[%s9033_s4 + $0x2c4] ss:$8 sps:$4 sm:$0xff]   ;;  %v721_v50 = vrot.slane %v6810_v8, 1 }
 0x171   :  { %v586_v14 = vsel %vm502_vm3, %v581_v45, %v585_v38  ;;  %v622_v18 = vsel %vm502_vm3, %v617_v63, %v621_v49  ;;  %v609_v45 = vrot.slane %v9145_v12, 1  ;;  %2215 = vmatpush1.bf16.msra.mxu1 %v6062_v39  ;;  %v6077_v53 = vld [vmem:[%s9033_s4 + $0x2c0] ss:$8 sps:$4 sm:$0xff]   ;;  %v6085_v49 = vld [vmem:[%s9033_s4 + $0x2e4] ss:$8 sps:$4 sm:$0xff]   ;;  %v718_v36 = vrot.slane %v6807_v62, 1 }
 0x172   :  { %2150 = vmatmul.mubr.bf16.gmra.mrb[12].mxu1 %v586_v14  ;;  %v605_v52 = vor.u32 %v604_v13, %v9146_v34  ;;  %2216 = vmatprep.subr.bf16.mxu1 %v6067_v17  ;;  %v6083_v3 = vld [vmem:[%s9033_s4 + $0x2e0] ss:$8 sps:$4 sm:$0xff]   ;;  %v6091_v41 = vld [vmem:[%s9033_s4 + $0x304] ss:$8 sps:$4 sm:$0xff]   ;;  %v6092_v1 = vld [vmem:[%s9033_s4 + $0x310] ss:$8 sps:$4 sm:$0xff]  }
 0x173   :  { %2159 = vmatprep.mubr.bf16.mxu1 %v622_v18  ;;  %v6089_v38 = vld [vmem:[%s9033_s4 + $0x300] ss:$8 sps:$4 sm:$0xff]   ;;  %v6097_v63 = vld [vmem:[%s9033_s4 + $0x324] ss:$8 sps:$4 sm:$0xff]   ;;  %v728_v14 = vrot.slane %v6936_v55, 1  ;;  %v727_v39 = vrot.slane %v6823_v20, 1 }
 0x174   :  { %v610_v26 = vsel %vm502_vm3, %v605_v52, %v609_v45  ;;  %v6095_v18 = vld [vmem:[%s9033_s4 + $0x320] ss:$8 sps:$4 sm:$0xff]   ;;  %v6100_v32 = vld [vmem:[%s9033_s4 + $0x334] ss:$8 sps:$4 sm:$0xff]   ;;  %v6098_v12 = vld [vmem:[%s9033_s4 + $0x330] ss:$8 sps:$4 sm:$0xff]  }
 0x175   :  { %2217 = vmatpush1.bf16.msra.mxu1 %v6065_v60  ;;  %v729_v17 = vsel %vm711_vm2, %v727_v39, %v728_v14  ;;  %v6103_v45 = vld [vmem:[%s9033_s4 + $0x344] ss:$8 sps:$4 sm:$0xff]   ;;  %v725_v34 = vrot.slane %v6953_v25, 1  ;;  %v733_v52 = vrot.slane %v6927_v54, 1  ;;  %v724_v60 = vrot.slane %v6820_v5, 1 }
 0x176   :  { %2218 = vmatprep.subr.bf16.mxu1 %v6070_v56  ;;  %v6101_v56 = vld [vmem:[%s9033_s4 + $0x340] ss:$8 sps:$4 sm:$0xff]   ;;  %v6121_v14 = vld [vmem:[%s9033_s4 + $0x3a4] ss:$8 sps:$4 sm:$0xff]  }
 0x177   :  { %v9148_v39 = vld [vmem:[#allocation11_spill] sm:$0xff] }
 0x179   :  { %2219 = vmatpush1.bf16.msra.mxu1 %v6068_v15  ;;  %v6106_v15 = vld [vmem:[%s9033_s4 + $0x354] ss:$8 sps:$4 sm:$0xff]  }
 0x17a   :  { %2160 = vmatmul.mubr.bf16.gmra.mrb[16].mxu1 %v610_v26  ;;  %2220 = vmatprep.subr.bf16.mxu1 %v6073_v4  ;;  %v734_v26 = vrot.slane %v6978_v46, 1  ;;  %v726_v4 = vsel %vm711_vm2, %v724_v60, %v725_v34  ;;  %v9150_v34 = vld [vmem:[#allocation14_spill] sm:$0xff]  ;;  %v6133_v60 = vld [vmem:[%s9033_s4 + $0x3e4] ss:$8 sps:$4 sm:$0xff]  }
 0x17b   :  { %2169 = vmatprep.mubr.bf16.mxu1 %v7143_v48  ;;  %v6076_v48 = vld [vmem:[%s9033_s4 + $0x2b4] ss:$8 sps:$4 sm:$0xff]  }
 0x17d   :  { %2221 = vmatpush1.bf16.msra.mxu1 %v6071_v57  ;;  %v735_v57 = vsel %vm711_vm2, %v733_v52, %v734_v26  ;;  %v6128_v52 = vld [vmem:[%s9033_s4 + $0x3d0] ss:$8 sps:$4 sm:$0xff]  }
 0x17e   :  { %2222 = vmatprep.subr.bf16.mxu1 %v6076_v48  ;;  %v6104_v48 = vld [vmem:[%s9033_s4 + $0x350] ss:$8 sps:$4 sm:$0xff]  }
 0x17f   :  { %v9151_v26 = vld [vmem:[#allocation18_spill] sm:$0xff] }
 0x181   :  { %2223 = vmatpush1.bf16.msra.mxu1 %v6074_v11  ;;  %v6109_v11 = vld [vmem:[%s9033_s4 + $0x364] ss:$8 sps:$4 sm:$0xff]  }
 0x182   :  { %2170 = vmatmul.mubr.bf16.gmra.mrb[20].mxu1 %v7137_v31  ;;  %2224 = vmatprep.subr.bf16.mxu1 %v6079_v10  ;;  %v6082_v31 = vld [vmem:[%s9033_s4 + $0x2d4] ss:$8 sps:$4 sm:$0xff]   ;;  %v730_v10 = vrot.slane %v6924_v47, 1 }
 0x183   :  { %2179 = vmatprep.mubr.bf16.mxu1 %v7187_v19  ;;  %v6080_v19 = vld [vmem:[%s9033_s4 + $0x2d0] ss:$8 sps:$4 sm:$0xff]  }
 0x185   :  { %2225 = vmatpush1.bf16.msra.mxu1 %v6077_v53  ;;  %v740_v53 = vrot.slane %v7005_v37, 1 }
 0x186   :  { %2226 = vmatprep.subr.bf16.mxu1 %v6082_v31  ;;  %v731_v31 = vrot.slane %v6970_v43, 1 }
 0x189   :  { %2227 = vmatpush1.bf16.msra.mxu1 %v6080_v19  ;;  %v6107_v19 = vld [vmem:[%s9033_s4 + $0x360] ss:$8 sps:$4 sm:$0xff]  }
 0x18a   :  { %2180 = vmatmul.mubr.bf16.gmra.mrb[24].mxu1 %v7183_v22  ;;  %2228 = vmatprep.subr.bf16.mxu1 %v6085_v49  ;;  %v6088_v22 = vld [vmem:[%s9033_s4 + $0x2f4] ss:$8 sps:$4 sm:$0xff]   ;;  %v739_v49 = vrot.slane %v6955_v29, 1 }
 0x18b   :  { %2189 = vmatprep.mubr.bf16.mxu1 %v7281_v23  ;;  %v6086_v23 = vld [vmem:[%s9033_s4 + $0x2f0] ss:$8 sps:$4 sm:$0xff]  }
 0x18d   :  { %2229 = vmatpush1.bf16.msra.mxu1 %v6083_v3  ;;  %v6112_v3 = vld [vmem:[%s9033_s4 + $0x374] ss:$8 sps:$4 sm:$0xff]  }
 0x18e   :  { %2230 = vmatprep.subr.bf16.mxu1 %v6088_v22  ;;  %v732_v22 = vsel %vm711_vm2, %v730_v10, %v731_v31  ;;  %v6190_v10 = vld [vmem:[%s9035_s6 + $0x14] ss:$8 sps:$4 sm:$0xff]  }
 0x18f   :  { %v6142_v31 = vld [vmem:[%s9033_s4 + $0x414] ss:$8 sps:$4 sm:$0xff]  }
 0x191   :  { %2231 = vmatpush1.bf16.msra.mxu1 %v6086_v23  ;;  %v741_v23 = vsel %vm711_vm2, %v739_v49, %v740_v53  ;;  %v6137_v53 = vld [vmem:[%s9033_s4 + $0x400] ss:$8 sps:$4 sm:$0xff]   ;;  %v6193_v49 = vld [vmem:[%s9035_s6 + $0x24] ss:$8 sps:$4 sm:$0xff]  }
 0x192   :  { %2190 = vmatmul.mubr.bf16.gmra.mrb[28].mxu1 %v7271_v44  ;;  %2313 = vmatprep.subr.bf16.mxu1 %v6091_v41  ;;  %v722_v44 = vrot.slane %v6893_v9, 1  ;;  %v6110_v41 = vld [vmem:[%s9033_s4 + $0x370] ss:$8 sps:$4 sm:$0xff]  }
 0x193   :  { %2232 = vmatprep.mubr.bf16.mxu1 %v6780_v33  ;;  %v6094_v33 = vld [vmem:[%s9033_s4 + $0x314] ss:$8 sps:$4 sm:$0xff]  }
 0x194   :  { %v723_v28 = vsel %vm711_vm2, %v721_v50, %v722_v44  ;;  %v6115_v50 = vld [vmem:[%s9033_s4 + $0x384] ss:$8 sps:$4 sm:$0xff]   ;;  %v736_v44 = vrot.slane %v6947_v42, 1 }
 0x19a   :  { %2233 = vmatmul.mubr.bf16.vlgmr.msra.gmra.mrb[0].mxu1 %v6770_v27  ;;  %v719_v27 = vrot.slane %v6881_v0, 1 }
 0x19b   :  { %2242 = vmatprep.mubr.bf16.mxu1 %v723_v28  ;;  %2314 = vmatpush1.bf16.msra.mxu1 %v6089_v38  ;;  %v737_v38 = vrot.slane %v7002_v51, 1  ;;  %v6118_v28 = vld [vmem:[%s9033_s4 + $0x394] ss:$8 sps:$4 sm:$0xff]  }
 0x19c   :  { %2315 = vmatprep.subr.bf16.mxu1 %v6094_v33  ;;  %v720_v13 = vsel %vm711_vm2, %v718_v36, %v719_v27  ;;  %v6113_v33 = vld [vmem:[%s9033_s4 + $0x380] ss:$8 sps:$4 sm:$0xff]   ;;  %v6116_v36 = vld [vmem:[%s9033_s4 + $0x390] ss:$8 sps:$4 sm:$0xff]  }
 0x19d   :  { %v6119_v27 = vld [vmem:[%s9033_s4 + $0x3a0] ss:$8 sps:$4 sm:$0xff]  }
 0x19f   :  { %2316 = vmatpush1.bf16.msra.mxu1 %v6092_v1  ;;  %v738_v1 = vsel %vm711_vm2, %v736_v44, %v737_v38  ;;  %v6196_v38 = vld [vmem:[%s9035_s6 + $0x34] ss:$8 sps:$4 sm:$0xff]   ;;  %v6143_v44 = vld [vmem:[%s9033_s4 + $0x420] ss:$8 sps:$4 sm:$0xff]  }
 0x1a0   :  { %2317 = vmatprep.subr.bf16.mxu1 %v6097_v63  ;;  %v9147_v63 = vld [vmem:[#allocation12_spill] sm:$0xff] }
 0x1a2   :  { %2243 = vmatmul.mubr.bf16.gmra.mrb[4].mxu1 %v720_v13  ;;  %v6122_v13 = vld [vmem:[%s9033_s4 + $0x3b0] ss:$8 sps:$4 sm:$0xff]  }
 0x1a3   :  { %2252 = vmatprep.mubr.bf16.mxu1 %v729_v17  ;;  %2318 = vmatpush1.bf16.msra.mxu1 %v6095_v18  ;;  %v6124_v18 = vld [vmem:[%s9033_s4 + $0x3b4] ss:$8 sps:$4 sm:$0xff]   ;;  %v6127_v17 = vld [vmem:[%s9033_s4 + $0x3c4] ss:$8 sps:$4 sm:$0xff]  }
 0x1a4   :  { %2319 = vmatprep.subr.bf16.mxu1 %v6100_v32  ;;  %v9149_v32 = vld [vmem:[#allocation15_spill] sm:$0xff] }
 0x1a7   :  { %2320 = vmatpush1.bf16.msra.mxu1 %v6098_v12  ;;  %v6125_v12 = vld [vmem:[%s9033_s4 + $0x3c0] ss:$8 sps:$4 sm:$0xff]  }
 0x1a8   :  { %2321 = vmatprep.subr.bf16.mxu1 %v6103_v45  ;;  %v6130_v45 = vld [vmem:[%s9033_s4 + $0x3d4] ss:$8 sps:$4 sm:$0xff]  }
 0x1aa   :  { %2253 = vmatmul.mubr.bf16.gmra.mrb[8].mxu1 %v726_v4  ;;  %v6139_v4 = vld [vmem:[%s9033_s4 + $0x404] ss:$8 sps:$4 sm:$0xff]  }
 0x1ab   :  { %2262 = vmatprep.mubr.bf16.mxu1 %v735_v57  ;;  %2322 = vmatpush1.bf16.msra.mxu1 %v6101_v56  ;;  %v6131_v56 = vld [vmem:[%s9033_s4 + $0x3e0] ss:$8 sps:$4 sm:$0xff]  }
 0x1ac   :  { %2323 = vmatprep.subr.bf16.mxu1 %v6106_v15  ;;  %v6134_v15 = vld [vmem:[%s9033_s4 + $0x3f0] ss:$8 sps:$4 sm:$0xff]   ;;  %v9152_v57 = vld [vmem:[#allocation7_spill] sm:$0xff] }
 0x1af   :  { %2324 = vmatpush1.bf16.msra.mxu1 %v6104_v48  ;;  %v6185_v48 = vld [vmem:[%s9035_s6] ss:$8 sps:$4 sm:$0xff]  }
 0x1b0   :  { %2325 = vmatprep.subr.bf16.mxu1 %v6109_v11  ;;  %v6187_v11 = vld [vmem:[%s9035_s6 + $0x4] ss:$8 sps:$4 sm:$0xff]  }
 0x1b1   :  { %3843 = vmatprep.subr.bf16.mxu0 %v6187_v11  ;;  %v9159_v11 = vld [vmem:[#allocation19_spill] sm:$0xff] }
 0x1b2   :  { %2263 = vmatmul.mubr.bf16.gmra.mrb[12].mxu1 %v732_v22  ;;  %3844 = vmatpush1.bf16.msra.mxu0 %v6185_v48  ;;  %v6140_v22 = vld [vmem:[%s9033_s4 + $0x410] ss:$8 sps:$4 sm:$0xff]  }
 0x1b3   :  { %2272 = vmatprep.mubr.bf16.mxu1 %v741_v23  ;;  %2326 = vmatpush1.bf16.msra.mxu1 %v6107_v19  ;;  %v6188_v19 = vld [vmem:[%s9035_s6 + $0x10] ss:$8 sps:$4 sm:$0xff]  }
 0x1b4   :  { %2327 = vmatprep.subr.bf16.mxu1 %v6112_v3  ;;  %3845 = vmatprep.subr.bf16.mxu0 %v6190_v10  ;;  %v9153_v3 = vld [vmem:[#allocation6_spill] sm:$0xff]  ;;  %v9154_v23 = vld [vmem:[#allocation9_spill] sm:$0xff]  ;;  %v6163_v10 = vld [vmem:[%s9033_s4 + $0x484] ss:$8 sps:$4 sm:$0xff]  }
 0x1b5   :  { %v6158_v48 = vld [vmem:[%s9033_s4 + $0x470] ss:$8 sps:$4 sm:$0xff]  }
 0x1b6   :  { %3846 = vmatpush1.bf16.msra.mxu0 %v6188_v19  ;;  %v6161_v19 = vld [vmem:[%s9033_s4 + $0x480] ss:$8 sps:$4 sm:$0xff]  }
 0x1b7   :  { %2328 = vmatpush1.bf16.msra.mxu1 %v6110_v41  ;;  %v6145_v41 = vld [vmem:[%s9033_s4 + $0x424] ss:$8 sps:$4 sm:$0xff]   ;;  %3847 = vmatprep.subr.bf16.mxu0 %v6193_v49  ;;  %v6166_v49 = vld [vmem:[%s9033_s4 + $0x494] ss:$8 sps:$4 sm:$0xff]  }
 0x1b8   :  { %2329 = vmatprep.subr.bf16.mxu1 %v6115_v50  ;;  %v6191_v50 = vld [vmem:[%s9035_s6 + $0x20] ss:$8 sps:$4 sm:$0xff]  }
 0x1ba   :  { %2273 = vmatmul.mubr.bf16.gmra.mrb[16].mxu1 %v738_v1  ;;  %3848 = vmatpush1.bf16.msra.mxu0 %v6191_v50  ;;  %v6146_v1 = vld [vmem:[%s9033_s4 + $0x430] ss:$8 sps:$4 sm:$0xff]   ;;  %v6169_v50 = vld [vmem:[%s9033_s4 + $0x4a4] ss:$8 sps:$4 sm:$0xff]  }
 0x1bb   :  { %2282 = vmatprep.mubr.bf16.mxu1 %v9147_v63  ;;  %2330 = vmatpush1.bf16.msra.mxu1 %v6113_v33  ;;  %v6148_v33 = vld [vmem:[%s9033_s4 + $0x434] ss:$8 sps:$4 sm:$0xff]   ;;  %v6199_v63 = vld [vmem:[%s9035_s6 + $0x44] ss:$8 sps:$4 sm:$0xff]  }
 0x1bc   :  { %2331 = vmatprep.subr.bf16.mxu1 %v6118_v28  ;;  %v6194_v28 = vld [vmem:[%s9035_s6 + $0x30] ss:$8 sps:$4 sm:$0xff]   ;;  %3849 = vmatprep.subr.bf16.mxu0 %v6196_v38  ;;  %v6215_v38 = vld [vmem:[%s9035_s6 + $0xa0] ss:$8 sps:$4 sm:$0xff]  }
 0x1be   :  { %3850 = vmatpush1.bf16.msra.mxu0 %v6194_v28  ;;  %v9162_v28 = vld [vmem:[#allocation22_spill] sm:$0xff] }
 0x1bf   :  { %2332 = vmatpush1.bf16.msra.mxu1 %v6116_v36  ;;  %v9155_v36 = vld [vmem:[#allocation10_spill] sm:$0xff]  ;;  %3851 = vmatprep.subr.bf16.mxu0 %v6199_v63  ;;  %v6175_v63 = vld [vmem:[%s9033_s4 + $0x4c4] ss:$8 sps:$4 sm:$0xff]  }
 0x1c0   :  { %2333 = vmatprep.subr.bf16.mxu1 %v6121_v14  ;;  %v6151_v14 = vld [vmem:[%s9033_s4 + $0x444] ss:$8 sps:$4 sm:$0xff]  }
 0x1c2   :  { %2283 = vmatmul.mubr.bf16.gmra.mrb[20].mxu1 %v9148_v39  ;;  %v6202_v39 = vld [vmem:[%s9035_s6 + $0x54] ss:$8 sps:$4 sm:$0xff]  }
 0x1c3   :  { %2292 = vmatprep.mubr.bf16.mxu1 %v9149_v32  ;;  %2334 = vmatpush1.bf16.msra.mxu1 %v6119_v27  ;;  %v6197_v27 = vld [vmem:[%s9035_s6 + $0x40] ss:$8 sps:$4 sm:$0xff]  }
 0x1c4   :  { %2335 = vmatprep.subr.bf16.mxu1 %v6124_v18  ;;  %v9156_v18 = vld [vmem:[#allocation13_spill] sm:$0xff]  ;;  %v6149_v32 = vld [vmem:[%s9033_s4 + $0x440] ss:$8 sps:$4 sm:$0xff]   ;;  %3852 = vmatpush1.bf16.msra.mxu0 %v6197_v27  ;;  %v6181_v27 = vld [vmem:[%s9033_s4 + $0x4e4] ss:$8 sps:$4 sm:$0xff]  }
 0x1c5   :  { %3853 = vmatprep.subr.bf16.mxu0 %v6202_v39  ;;  %v6182_v39 = vld [vmem:[%s9033_s4 + $0x4f0] ss:$8 sps:$4 sm:$0xff]  }
 0x1c7   :  { %2336 = vmatpush1.bf16.msra.mxu1 %v6122_v13  ;;  %v6154_v13 = vld [vmem:[%s9033_s4 + $0x454] ss:$8 sps:$4 sm:$0xff]  }
 0x1c8   :  { %2337 = vmatprep.subr.bf16.mxu1 %v6127_v17  ;;  %v6200_v17 = vld [vmem:[%s9035_s6 + $0x50] ss:$8 sps:$4 sm:$0xff]  }
 0x1c9   :  { %3854 = vmatpush1.bf16.msra.mxu0 %v6200_v17  ;;  %v9164_v17 = vld [vmem:[#allocation8_spill] sm:$0xff] }
 0x1ca   :  { %2293 = vmatmul.mubr.bf16.gmra.mrb[24].mxu1 %v9150_v34  ;;  %v9157_v34 = vld [vmem:[#allocation16_spill] sm:$0xff] }
 0x1cb   :  { %2302 = vmatprep.mubr.bf16.mxu1 %v7252_v16  ;;  %2338 = vmatpush1.bf16.msra.mxu1 %v6125_v12  ;;  %v6136_v16 = vld [vmem:[%s9033_s4 + $0x3f4] ss:$8 sps:$4 sm:$0xff]   ;;  %v6205_v12 = vld [vmem:[%s9035_s6 + $0x64] ss:$8 sps:$4 sm:$0xff]  }
 0x1cc   :  { %2339 = vmatprep.subr.bf16.mxu1 %v6130_v45  ;;  %v6152_v45 = vld [vmem:[%s9033_s4 + $0x450] ss:$8 sps:$4 sm:$0xff]   ;;  %3855 = vmatprep.subr.bf16.mxu0 %v6205_v12 }
 0x1cf   :  { %2340 = vmatpush1.bf16.msra.mxu1 %v6128_v52  ;;  %v6157_v52 = vld [vmem:[%s9033_s4 + $0x464] ss:$8 sps:$4 sm:$0xff]  }
 0x1d0   :  { %2341 = vmatprep.subr.bf16.mxu1 %v6133_v60  ;;  %v6203_v60 = vld [vmem:[%s9035_s6 + $0x60] ss:$8 sps:$4 sm:$0xff]  }
 0x1d1   :  { %3856 = vmatpush1.bf16.msra.mxu0 %v6203_v60 }
 0x1d2   :  { %2303 = vmatmul.mubr.bf16.gmra.mrb[28].mxu1 %v9151_v26  ;;  %v6155_v26 = vld [vmem:[%s9033_s4 + $0x460] ss:$8 sps:$4 sm:$0xff]  }
 0x1d3   :  { %2342 = vmatpush1.bf16.msra.mxu1 %v6131_v56  ;;  %2345 = vmatprep.mubr.bf16.mxu1 %v9152_v57  ;;  %v9158_v56 = vld [vmem:[#allocation17_spill] sm:$0xff]  ;;  %v6211_v57 = vld [vmem:[%s9035_s6 + $0x84] ss:$8 sps:$4 sm:$0xff]  }
 0x1d4   :  { %2343 = vmatprep.subr.bf16.mxu1 %v6136_v16  ;;  %v6208_v16 = vld [vmem:[%s9035_s6 + $0x74] ss:$8 sps:$4 sm:$0xff]  }
 0x1d5   :  { %3857 = vmatprep.subr.bf16.mxu0 %v6208_v16  ;;  %v950_v16 = vrot.slane %v6820_v5, 2 }
 0x1d7   :  { %2344 = vmatpush1.bf16.msra.mxu1 %v6134_v15  ;;  %v6160_v15 = vld [vmem:[%s9033_s4 + $0x474] ss:$8 sps:$4 sm:$0xff]  }
 0x1d8   :  { %2426 = vmatprep.subr.bf16.mxu1 %v6139_v4  ;;  %v6206_v4 = vld [vmem:[%s9035_s6 + $0x70] ss:$8 sps:$4 sm:$0xff]  }
 0x1d9   :  { %3858 = vmatpush1.bf16.msra.mxu0 %v6206_v4  ;;  %v962_v4 = vrot.slane %v6947_v42, 2  ;;  %v6220_v42 = vld [vmem:[%s9035_s6 + $0xb4] ss:$8 sps:$4 sm:$0xff]  }
 0x1da   :  { %2346 = vmatmul.mubr.bf16.vlgmr.msra.gmra.mrb[0].mxu1 %v9153_v3  ;;  %3859 = vmatprep.subr.bf16.mxu0 %v6211_v57  ;;  %v6217_v3 = vld [vmem:[%s9035_s6 + $0xa4] ss:$8 sps:$4 sm:$0xff]  }
 0x1db   :  { %2355 = vmatprep.mubr.bf16.mxu1 %v9154_v23  ;;  %2427 = vmatpush1.bf16.msra.mxu1 %v6137_v53  ;;  %v6209_v53 = vld [vmem:[%s9035_s6 + $0x80] ss:$8 sps:$4 sm:$0xff]   ;;  %v9161_v23 = vld [vmem:[#allocation21_spill] sm:$0xff] }
 0x1dc   :  { %2428 = vmatprep.subr.bf16.mxu1 %v6142_v31  ;;  %v6214_v31 = vld [vmem:[%s9035_s6 + $0x94] ss:$8 sps:$4 sm:$0xff]  }
 0x1dd   :  { %3860 = vmatpush1.bf16.msra.mxu0 %v6209_v53 }
 0x1de   :  { %3861 = vmatprep.subr.bf16.mxu0 %v6214_v31 }
 0x1df   :  { %2429 = vmatpush1.bf16.msra.mxu1 %v6140_v22  ;;  %v9160_v22 = vld [vmem:[#allocation20_spill] sm:$0xff] }
 0x1e0   :  { %2430 = vmatprep.subr.bf16.mxu1 %v6145_v41  ;;  %v6164_v41 = vld [vmem:[%s9033_s4 + $0x490] ss:$8 sps:$4 sm:$0xff]  }
 0x1e2   :  { %2356 = vmatmul.mubr.bf16.gmra.mrb[4].mxu1 %v9155_v36  ;;  %v6173_v36 = vld [vmem:[%s9033_s4 + $0x4c0] ss:$8 sps:$4 sm:$0xff]  }
 0x1e3   :  { %2365 = vmatprep.mubr.bf16.mxu1 %v9156_v18  ;;  %2431 = vmatpush1.bf16.msra.mxu1 %v6143_v44  ;;  %v6167_v44 = vld [vmem:[%s9033_s4 + $0x4a0] ss:$8 sps:$4 sm:$0xff]  }
 0x1e4   :  { %2432 = vmatprep.subr.bf16.mxu1 %v6148_v33  ;;  %v6172_v33 = vld [vmem:[%s9033_s4 + $0x4b4] ss:$8 sps:$4 sm:$0xff]   ;;  %v6179_v18 = vld [vmem:[%s9033_s4 + $0x4e0] ss:$8 sps:$4 sm:$0xff]  }
 0x1e7   :  { %2433 = vmatpush1.bf16.msra.mxu1 %v6146_v1  ;;  %v6170_v1 = vld [vmem:[%s9033_s4 + $0x4b0] ss:$8 sps:$4 sm:$0xff]  }
 0x1e8   :  { %2434 = vmatprep.subr.bf16.mxu1 %v6151_v14  ;;  %v6176_v14 = vld [vmem:[%s9033_s4 + $0x4d0] ss:$8 sps:$4 sm:$0xff]  }
 0x1ea   :  { %2366 = vmatmul.mubr.bf16.gmra.mrb[8].mxu1 %v9157_v34  ;;  %v945_v34 = vrot.slane %v6881_v0, 2 }
 0x1eb   :  { %2375 = vmatprep.mubr.bf16.mxu1 %v9158_v56  ;;  %2435 = vmatpush1.bf16.msra.mxu1 %v6149_v32  ;;  %v947_v32 = vrot.slane %v6810_v8, 2  ;;  %v959_v56 = vrot.slane %v6927_v54, 2 }
 0x1ec   :  { %2436 = vmatprep.subr.bf16.mxu1 %v6154_v13  ;;  %v948_v13 = vrot.slane %v6893_v9, 2  ;;  %v951_v9 = vrot.slane %v6953_v25, 2  ;;  %v965_v25 = vrot.slane %v6955_v29, 2  ;;  %v6223_v29 = vld [vmem:[%s9035_s6 + $0xc4] ss:$8 sps:$4 sm:$0xff]  }
 0x1ee   :  { %v949_v12 = vsel %vm937_vm4, %v947_v32, %v948_v13 }
 0x1ef   :  { %2437 = vmatpush1.bf16.msra.mxu1 %v6152_v45  ;;  %v954_v45 = vrot.slane %v6936_v55, 2  ;;  %v952_v55 = vsel %vm937_vm4, %v950_v16, %v951_v9 }
 0x1f0   :  { %2438 = vmatprep.subr.bf16.mxu1 %v6157_v52  ;;  %v953_v52 = vrot.slane %v6823_v20, 2  ;;  %v956_v20 = vrot.slane %v6924_v47, 2  ;;  %v6218_v47 = vld [vmem:[%s9035_s6 + $0xb0] ss:$8 sps:$4 sm:$0xff]  }
 0x1f2   :  { %2376 = vmatmul.mubr.bf16.gmra.mrb[12].mxu1 %v9159_v11  ;;  %v955_v8 = vsel %vm937_vm4, %v953_v52, %v954_v45 }
 0x1f3   :  { %2385 = vmatprep.mubr.bf16.mxu1 %v7288_v7  ;;  %2439 = vmatpush1.bf16.msra.mxu1 %v6155_v26  ;;  %v6212_v7 = vld [vmem:[%s9035_s6 + $0x90] ss:$8 sps:$4 sm:$0xff]   ;;  %v966_v26 = vrot.slane %v7005_v37, 2  ;;  %v6226_v37 = vld [vmem:[%s9035_s6 + $0xd4] ss:$8 sps:$4 sm:$0xff]  }
 0x1f4   :  { %2440 = vmatprep.subr.bf16.mxu1 %v6160_v15  ;;  %3862 = vmatpush1.bf16.msra.mxu0 %v6212_v7  ;;  %v957_v15 = vrot.slane %v6970_v43, 2  ;;  %v6221_v43 = vld [vmem:[%s9035_s6 + $0xc0] ss:$8 sps:$4 sm:$0xff]  }
 0x1f5   :  { %3863 = vmatprep.subr.bf16.mxu0 %v6217_v3  ;;  %v967_v5 = vsel %vm937_vm4, %v965_v25, %v966_v26 }
 0x1f6   :  { %v958_v54 = vsel %vm937_vm4, %v956_v20, %v957_v15 }
 0x1f7   :  { %2441 = vmatpush1.bf16.msra.mxu1 %v6158_v48  ;;  %v9165_v48 = vld [vmem:[#allocation3_spill] sm:$0xff] }
 0x1f8   :  { %2442 = vmatprep.subr.bf16.mxu1 %v6163_v10  ;;  %3864 = vmatpush1.bf16.msra.mxu0 %v6215_v38  ;;  %v9166_v10 = vld [vmem:[#allocation4_spill] sm:$0xff] }
 0x1f9   :  { %3865 = vmatprep.subr.bf16.mxu0 %v6220_v42 }
 0x1fa   :  { %2386 = vmatmul.mubr.bf16.gmra.mrb[16].mxu1 %v9160_v22 }
 0x1fb   :  { %2395 = vmatprep.mubr.bf16.mxu1 %v9161_v23  ;;  %2443 = vmatpush1.bf16.msra.mxu1 %v6161_v19 }
 0x1fc   :  { %2444 = vmatprep.subr.bf16.mxu1 %v6166_v49  ;;  %3866 = vmatpush1.bf16.msra.mxu0 %v6218_v47 }
 0x1fd   :  { %3867 = vmatprep.subr.bf16.mxu0 %v6223_v29 }
 0x1ff   :  { %2445 = vmatpush1.bf16.msra.mxu1 %v6164_v41 }
 0x200   :  { %2446 = vmatprep.subr.bf16.mxu1 %v6169_v50  ;;  %3868 = vmatpush1.bf16.msra.mxu0 %v6221_v43 }
 0x201   :  { %3869 = vmatprep.subr.bf16.mxu0 %v6226_v37 }
 0x202   :  { %2396 = vmatmul.mubr.bf16.gmra.mrb[20].mxu1 %v9162_v28 }
 0x203   :  { %2405 = vmatprep.mubr.bf16.mxu1 %v7357_v30  ;;  %2447 = vmatpush1.bf16.msra.mxu1 %v6167_v44  ;;  %v6178_v30 = vld [vmem:[%s9033_s4 + $0x4d4] ss:$8 sps:$4 sm:$0xff]  }
 0x204   :  { %2448 = vmatprep.subr.bf16.mxu1 %v6172_v33 }
 0x207   :  { %2449 = vmatpush1.bf16.msra.mxu1 %v6170_v1 }
 0x208   :  { %2450 = vmatprep.subr.bf16.mxu1 %v6175_v63 }
 0x20a   :  { %2406 = vmatmul.mubr.bf16.gmra.mrb[24].mxu1 %v7367_v2  ;;  %v6184_v2 = vld [vmem:[%s9033_s4 + $0x4f4] ss:$8 sps:$4 sm:$0xff]  }
 0x20b   :  { %2415 = vmatprep.mubr.bf16.mxu1 %v7377_v21  ;;  %2451 = vmatpush1.bf16.msra.mxu1 %v6173_v36  ;;  %v9163_v21 = vld [vmem:[#allocation5_spill] sm:$0xff] }
 0x20c   :  { %2452 = vmatprep.subr.bf16.mxu1 %v6178_v30 }
 0x20f   :  { %2453 = vmatpush1.bf16.msra.mxu1 %v6176_v14 }
 0x210   :  { %2454 = vmatprep.subr.bf16.mxu1 %v6181_v27 }
 0x212   :  { %2416 = vmatmul.mubr.bf16.gmra.mrb[28].mxu1 %v7387_v61  ;;  %v944_v61 = vrot.slane %v6807_v62, 2  ;;  %v960_v62 = vrot.slane %v6978_v46, 2  ;;  %v963_v46 = vrot.slane %v7002_v51, 2  ;;  %v6224_v51 = vld [vmem:[%s9035_s6 + $0xd0] ss:$8 sps:$4 sm:$0xff]  }
 0x213   :  { %2455 = vmatpush1.bf16.msra.mxu1 %v6179_v18  ;;  %2458 = vmatprep.mubr.bf16.mxu1 %v9163_v21 }
 0x214   :  { %2456 = vmatprep.subr.bf16.mxu1 %v6184_v2  ;;  %v946_v60 = vsel %vm937_vm4, %v944_v61, %v945_v34  ;;  %v961_v0 = vsel %vm937_vm4, %v959_v56, %v960_v62  ;;  %v964_v57 = vsel %vm937_vm4, %v962_v4, %v963_v46  ;;  %3870 = vmatpush1.bf16.msra.mxu0 %v6224_v51 }
 0x217   :  { %2457 = vmatpush1.bf16.msra.mxu1 %v6182_v39 }
 0x21a   :  { %2459 = vmatmul.mubr.bf16.vlgmr.msra.gmra.mrb[0].mxu1 %v9164_v17 }
 0x21b   :  { %2468 = vmatprep.mubr.bf16.mxu1 %v949_v12 }
 0x222   :  { %2469 = vmatmul.mubr.bf16.gmra.mrb[4].mxu1 %v946_v60 }
 0x223   :  { %2478 = vmatprep.mubr.bf16.mxu1 %v955_v8 }
 0x22a   :  { %2479 = vmatmul.mubr.bf16.gmra.mrb[8].mxu1 %v952_v55 }
 0x22b   :  { %2488 = vmatprep.mubr.bf16.mxu1 %v961_v0 }
 0x232   :  { %2489 = vmatmul.mubr.bf16.gmra.mrb[12].mxu1 %v958_v54 }
 0x233   :  { %2498 = vmatprep.mubr.bf16.mxu1 %v967_v5 }
 0x23a   :  { %2499 = vmatmul.mubr.bf16.gmra.mrb[16].mxu1 %v964_v57 }
 0x23b   :  { %2508 = vmatprep.mubr.bf16.mxu1 %v7411_v59  ;;  %v6227_v59 = vld [vmem:[%s9035_s6 + $0xe0] ss:$8 sps:$4 sm:$0xff]  }
 0x242   :  { %2509 = vmatmul.mubr.bf16.gmra.mrb[20].mxu1 %v7417_v35  ;;  %v6229_v35 = vld [vmem:[%s9035_s6 + $0xe4] ss:$8 sps:$4 sm:$0xff]  }
 0x243   :  { %2518 = vmatprep.mubr.bf16.mxu1 %v7425_v24  ;;  %3871 = vmatprep.subr.bf16.mxu0 %v6229_v35  ;;  %v6230_v24 = vld [vmem:[%s9035_s6 + $0xf0] ss:$8 sps:$4 sm:$0xff]  }
 0x244   :  { %3872 = vmatpush1.bf16.msra.mxu0 %v6227_v59 }
 0x24a   :  { %2519 = vmatmul.mubr.bf16.gmra.mrb[24].mxu1 %v7435_v40  ;;  %v6232_v40 = vld [vmem:[%s9035_s6 + $0xf4] ss:$8 sps:$4 sm:$0xff]  }
 0x24b   :  { %2528 = vmatprep.mubr.bf16.mxu1 %v7438_v58  ;;  %3873 = vmatprep.subr.bf16.mxu0 %v6232_v40  ;;  %v6235_v58 = vld [vmem:[%s9035_s6 + $0x104] ss:$8 sps:$4 sm:$0xff]  }
 0x24c   :  { %3874 = vmatpush1.bf16.msra.mxu0 %v6230_v24 }
 0x24d   :  { %3916 = vmatprep.subr.bf16.mxu0 %v6235_v58 }
 0x252   :  { %2529 = vmatmul.mubr.bf16.gmra.mrb[28].mxu1 %v7446_v6  ;;  %v1162_v6 = vld [vmem:[%s9036_s5] sm:$0x3] }
 0x253   :  { %v7889_v11 = vrot.slane %v1162_v6, %v9165_v48  ;;  %v7892_v53 = vrot.slane %v1162_v6, %v9166_v10 }
 0x2ed   :  { %v2460_v31 = vpop.f32.mrb[0].mxu1 }
 0x2ee   :  { %v5728_v19 = vadd.f32 %v2460_v31, %v7889_v11  ;;  %v2462_v49 = vpop.f32.mrb[1].mxu1 }
 0x2ef   :  { %v5729_v7 = vadd.f32 %v2462_v49, %v7892_v53  ;;  %v2464_v3 = vpop.f32.mrb[2].mxu1 }
 0x2f0   :  { %v2539_v22 = vmax.f32 %v5728_v19, 0.0  ;;  %v5730_v23 = vadd.f32 %v2464_v3, %v7889_v11  ;;  %v2466_v41 = vpop.f32.mrb[3].mxu1 }
 0x2f1   :  { %v2540_v50 = vmax.f32 %v5729_v7, 0.0  ;;  %v5731_v38 = vadd.f32 %v2466_v41, %v7892_v53 }
 0x2f2   :  { %v2541_v44 = vmax.f32 %v5730_v23, 0.0  ;;  %v2604_v28 = vrot.slane %v2539_v22, 1 }
 0x2f3   :  { %v2542_v33 = vmax.f32 %v5731_v38, 0.0  ;;  %v2607_v63 = vrot.slane %v2540_v50, 1 }
 0x2f4   :  { %v2605_v1 = vrot.slane %v2541_v44, 1 }
 0x2f5   :  { %v2608_v36 = vrot.slane %v2542_v33, 1  ;;  %v2470_v30 = vpop.f32.mrb[4].mxu1 }
 0x2f6   :  { %v2606_v14 = vsel %vm711_vm2, %v2604_v28, %v2605_v1  ;;  %v2686_v27 = vmax.f32 %v2541_v44, %v2605_v1  ;;  %v2472_v18 = vpop.f32.mrb[5].mxu1  ;;  %v5732_v32 = vadd.f32 %v2470_v30, %v7889_v11 }
 0x2f7   :  { %v2684_v2 = vmax.f32 %v2539_v22, %v2606_v14  ;;  %v2609_v21 = vsel %vm711_vm2, %v2607_v63, %v2608_v36  ;;  %v7900_v39 = vmax.f32 %v2542_v33, %v2608_v36  ;;  %v2474_v13 = vpop.f32.mrb[6].mxu1  ;;  %v5733_v45 = vadd.f32 %v2472_v18, %v7892_v53 }
 0x2f8   :  { %v2844_v17 = vrot.slane %v2686_v27, 4  ;;  %v2876_v12 = vrot.slane %v2686_v27, 5  ;;  %v2908_v61 = vrot.slane %v2686_v27, 6  ;;  %v2476_v34 = vpop.f32.mrb[7].mxu1  ;;  %v2940_v8 = vrot.slane %v2686_v27, 7 }
 0x2f9   :  { %v2732_v52 = vrot.slane %v2684_v2, 1  ;;  %v2764_v60 = vrot.slane %v2684_v2, 2  ;;  %v2685_v9 = vmax.f32 %v2540_v50, %v2609_v21  ;;  %v2796_v56 = vrot.slane %v2684_v2, 3 }
 0x2fa   :  { %v2845_v16 = vrot.slane %v7900_v39, 4  ;;  %v2877_v62 = vrot.slane %v7900_v39, 5  ;;  %v2909_v55 = vrot.slane %v7900_v39, 6  ;;  %v2941_v15 = vrot.slane %v7900_v39, 7 }
 0x2fb   :  { %v2973_v0 = vsel %vm2972_vm6, %v2684_v2, %v2732_v52  ;;  %v2733_v20 = vrot.slane %v2685_v9, 1  ;;  %v2765_v26 = vrot.slane %v2685_v9, 2  ;;  %v2543_v54 = vmax.f32 %v5732_v32, 0.0 }
 0x2fc   :  { %v2990_v25 = vsel %vm2989_vm7, %v2973_v0, %v2764_v60  ;;  %v2544_v5 = vmax.f32 %v5733_v45, 0.0  ;;  %v5734_v46 = vadd.f32 %v2474_v13, %v7889_v11  ;;  %v2797_v57 = vrot.slane %v2685_v9, 3 }
 0x2fd   :  { %v3007_v4 = vsel %vm3006_vm8, %v2990_v25, %v2796_v56  ;;  %v2974_v47 = vsel %vm2972_vm6, %v2685_v9, %v2733_v20  ;;  %v5735_v42 = vadd.f32 %v2476_v34, %v7892_v53  ;;  %v2480_v29 = vpop.f32.mrb[8].mxu1  ;;  %v2610_v37 = vrot.slane %v2543_v54, 1 }
 0x2fe   :  { %v3023_v43 = vsel %vm150_vm0, %v3007_v4, %v2844_v17  ;;  %v2991_v51 = vsel %vm2989_vm7, %v2974_v47, %v2765_v26  ;;  %v2613_v59 = vrot.slane %v2544_v5, 1  ;;  %v2482_v35 = vpop.f32.mrb[9].mxu1  ;;  %v2545_v40 = vmax.f32 %v5734_v46, 0.0 }
 0x2ff   :  { %v3040_v24 = vsel %vm3039_vm9, %v3023_v43, %v2876_v12  ;;  %v2546_v58 = vmax.f32 %v5735_v42, 0.0  ;;  %v5736_v6 = vadd.f32 %v2480_v29, %v7889_v11  ;;  %v2484_v31 = vpop.f32.mrb[10].mxu1  ;;  %v7919_v19 = vadd.f32 %v2482_v35, %v7892_v53 }
 0x300   :  { %v5738_v49 = vadd.f32 %v2484_v31, %v7889_v11  ;;  %v2486_v7 = vpop.f32.mrb[11].mxu1  ;;  %v3008_v3 = vsel %vm3006_vm8, %v2991_v51, %v2797_v57  ;;  %v3057_v22 = vsel %vm937_vm4, %v3040_v24, %v2908_v61  ;;  %v2611_v23 = vrot.slane %v2545_v40, 1 }
 0x301   :  { %v2614_v41 = vrot.slane %v2546_v58, 1  ;;  %v2547_v50 = vmax.f32 %v5736_v6, 0.0  ;;  %v5739_v38 = vadd.f32 %v2486_v7, %v7892_v53  ;;  %v2548_v44 = vmax.f32 %v7919_v19, 0.0 }
 0x302   :  { %v2549_v33 = vmax.f32 %v5738_v49, 0.0  ;;  %v7927_v28 = vsel %vm150_vm0, %v3008_v3, %v2845_v16  ;;  %v7930_v1 = vsel %vm711_vm2, %v3057_v22, %v2940_v8  ;;  %v2612_v63 = vsel %vm711_vm2, %v2610_v37, %v2611_v23 }
 0x303   :  { %v7933_v36 = vmax.f32 %v2545_v40, %v2611_v23  ;;  %v2615_v30 = vsel %vm711_vm2, %v2613_v59, %v2614_v41  ;;  %v7936_v14 = vmax.f32 %v2546_v58, %v2614_v41  ;;  %v2688_v27 = vmax.f32 %v2543_v54, %v2612_v63 }
 0x304   :  { %v7938_v18 = vmax.f32 %v2544_v5, %v2615_v30  ;;  %v2616_v2 = vrot.slane %v2547_v50, 1  ;;  %v2619_v21 = vrot.slane %v2548_v44, 1  ;;  %v2617_v47 = vrot.slane %v2549_v33, 1 }
 0x305   :  { %v2846_v32 = vrot.slane %v7933_v36, 4  ;;  %v2878_v13 = vrot.slane %v7933_v36, 5  ;;  %v2910_v17 = vrot.slane %v7933_v36, 6  ;;  %v2942_v12 = vrot.slane %v7933_v36, 7  ;;  %v2490_v61 = vpop.f32.mrb[12].mxu1 }
 0x306   :  { %v2734_v45 = vrot.slane %v2688_v27, 1  ;;  %v2766_v34 = vrot.slane %v2688_v27, 2  ;;  %v2798_v52 = vrot.slane %v2688_v27, 3  ;;  %v2735_v60 = vrot.slane %v7938_v18, 1  ;;  %v2492_v8 = vpop.f32.mrb[13].mxu1 }
 0x307   :  { %v2767_v9 = vrot.slane %v7938_v18, 2  ;;  %v2799_v56 = vrot.slane %v7938_v18, 3  ;;  %v2847_v16 = vrot.slane %v7936_v14, 4  ;;  %v2879_v0 = vrot.slane %v7936_v14, 5  ;;  %v2494_v20 = vpop.f32.mrb[14].mxu1 }
 0x308   :  { %v2975_v26 = vsel %vm2972_vm6, %v2688_v27, %v2734_v45  ;;  %v2911_v25 = vrot.slane %v7936_v14, 6  ;;  %v2943_v54 = vrot.slane %v7936_v14, 7  ;;  %v2976_v5 = vsel %vm2972_vm6, %v7938_v18, %v2735_v60  ;;  %v2496_v46 = vpop.f32.mrb[15].mxu1 }
 0x309   :  { %v2992_v4 = vsel %vm2989_vm7, %v2975_v26, %v2766_v34  ;;  %v2993_v57 = vsel %vm2989_vm7, %v2976_v5, %v2767_v9  ;;  %v2550_v42 = vmax.f32 %v5739_v38, 0.0  ;;  %v5740_v43 = vadd.f32 %v2490_v61, %v7889_v11 }
 0x30a   :  { %v3009_v29 = vsel %vm3006_vm8, %v2992_v4, %v2798_v52  ;;  %v7959_v51 = vadd.f32 %v2492_v8, %v7892_v53  ;;  %v5742_v37 = vadd.f32 %v2494_v20, %v7889_v11  ;;  %v2618_v35 = vsel %vm711_vm2, %v2616_v2, %v2617_v47 }
 0x30b   :  { %v3025_v59 = vsel %vm150_vm0, %v3009_v29, %v2846_v32  ;;  %v7964_v24 = vmax.f32 %v2549_v33, %v2617_v47  ;;  %v2620_v40 = vrot.slane %v2550_v42, 1  ;;  %v7969_v6 = vmax.f32 %v2547_v50, %v2618_v35 }
 0x30c   :  { %v7967_v58 = vsel %vm3039_vm9, %v3025_v59, %v2878_v13  ;;  %v2551_v31 = vmax.f32 %v5740_v43, 0.0  ;;  %v2552_v19 = vmax.f32 %v7959_v51, 0.0  ;;  %v2553_v61 = vmax.f32 %v5742_v37, 0.0 }
 0x30d   :  { %v2848_v49 = vrot.slane %v7964_v24, 4  ;;  %v2880_v7 = vrot.slane %v7964_v24, 5  ;;  %v2500_v23 = vpop.f32.mrb[16].mxu1  ;;  %v2736_v41 = vrot.slane %v7969_v6, 1  ;;  %v2768_v38 = vrot.slane %v7969_v6, 2 }
 0x30e   :  { %v2800_v33 = vrot.slane %v7969_v6, 3  ;;  %v2621_v50 = vsel %vm711_vm2, %v2619_v21, %v2620_v40  ;;  %v2502_v63 = vpop.f32.mrb[17].mxu1  ;;  %v7982_v27 = vmax.f32 %v2550_v42, %v2620_v40  ;;  %v2622_v18 = vrot.slane %v2551_v31, 1 }
 0x30f   :  { %v7980_v30 = vmax.f32 %v2548_v44, %v2621_v50  ;;  %v2625_v2 = vrot.slane %v2552_v19, 1  ;;  %v2504_v32 = vpop.f32.mrb[18].mxu1  ;;  %v2977_v13 = vsel %vm2972_vm6, %v7969_v6, %v2736_v41  ;;  %v5743_v45 = vadd.f32 %v2496_v46, %v7892_v53  ;;  %v6248_v6 = vld [vmem:[%s9035_s6 + $0x150] ss:$8 sps:$4 sm:$0xff]  }
 0x310   :  { %v7988_v34 = vadd.f32 %v2500_v23, %v7889_v11  ;;  %v2506_v52 = vpop.f32.mrb[19].mxu1  ;;  %v7991_v21 = vsel %vm2989_vm7, %v2977_v13, %v2768_v38  ;;  %v2849_v9 = vrot.slane %v7982_v27, 4  ;;  %v2881_v20 = vrot.slane %v7982_v27, 5 }
 0x311   :  { %v2737_v44 = vrot.slane %v7980_v30, 1  ;;  %v2769_v60 = vrot.slane %v7980_v30, 2  ;;  %v2801_v8 = vrot.slane %v7980_v30, 3  ;;  %v2913_v26 = vrot.slane %v7982_v27, 6 }
 0x312   :  { %v2945_v5 = vrot.slane %v7982_v27, 7  ;;  %v2623_v4 = vrot.slane %v2553_v61, 1  ;;  %v2554_v47 = vmax.f32 %v5743_v45, 0.0  ;;  %v2555_v42 = vmax.f32 %v7988_v34, 0.0 }
 0x313   :  { %v2978_v46 = vsel %vm2972_vm6, %v7980_v30, %v2737_v44  ;;  %v3010_v43 = vsel %vm3006_vm8, %v2993_v57, %v2799_v56  ;;  %v3041_v51 = vsel %vm3039_vm9, %v7927_v28, %v2877_v62  ;;  %v8010_v37 = vadd.f32 %v2502_v63, %v7892_v53 }
 0x314   :  { %v2995_v29 = vsel %vm2989_vm7, %v2978_v46, %v2769_v60  ;;  %v2624_v59 = vsel %vm711_vm2, %v2622_v18, %v2623_v4  ;;  %v8013_v35 = vmax.f32 %v2553_v61, %v2623_v4  ;;  %v2626_v40 = vrot.slane %v2554_v47, 1 }
 0x315   :  { %v8017_v23 = vrot.slane %v2555_v42, 1  ;;  %v2510_v41 = vpop.f32.mrb[20].mxu1  ;;  %v8019_v38 = vmax.f32 %v2551_v31, %v2624_v59  ;;  %v3026_v56 = vsel %vm150_vm0, %v3010_v43, %v2847_v16  ;;  %v3058_v62 = vsel %vm937_vm4, %v3041_v51, %v2909_v55  ;;  %v6233_v31 = vld [vmem:[%s9035_s6 + $0x100] ss:$8 sps:$4 sm:$0xff]  }
 0x316   :  { %v2556_v28 = vmax.f32 %v8010_v37, 0.0  ;;  %v2512_v57 = vpop.f32.mrb[21].mxu1  ;;  %v2850_v50 = vrot.slane %v8013_v35, 4  ;;  %v2627_v55 = vsel %vm711_vm2, %v2625_v2, %v2626_v40  ;;  %v8036_v46 = vmax.f32 %v2554_v47, %v2626_v40 }
 0x317   :  { %v2514_v13 = vpop.f32.mrb[22].mxu1  ;;  %v2738_v61 = vrot.slane %v8019_v38, 1  ;;  %v2770_v16 = vrot.slane %v8019_v38, 2  ;;  %v2802_v45 = vrot.slane %v8019_v38, 3  ;;  %v2697_v60 = vmax.f32 %v2552_v19, %v2627_v55 }
 0x318   :  { %v2516_v44 = vpop.f32.mrb[23].mxu1  ;;  %v3043_v4 = vsel %vm3039_vm9, %v3026_v56, %v2879_v0  ;;  %v3074_v43 = vsel %vm711_vm2, %v3058_v62, %v2941_v15  ;;  %v2631_v19 = vrot.slane %v2556_v28, 1  ;;  %v3059_v2 = vsel %vm937_vm4, %v7967_v58, %v2910_v17 }
 0x319   :  { %v2979_v51 = vsel %vm2972_vm6, %v8019_v38, %v2738_v61  ;;  %v3060_v59 = vsel %vm937_vm4, %v3043_v4, %v2911_v25  ;;  %v2739_v39 = vrot.slane %v2697_v60, 1  ;;  %v2771_v15 = vrot.slane %v2697_v60, 2 }
 0x31a   :  { %v8056_v0 = vsel %vm2989_vm7, %v2979_v51, %v2770_v16  ;;  %v2803_v47 = vrot.slane %v2697_v60, 3  ;;  %v2851_v40 = vrot.slane %v8036_v46, 4  ;;  %v2883_v56 = vrot.slane %v8036_v46, 5 }
 0x31b   :  { %v2915_v25 = vrot.slane %v8036_v46, 6  ;;  %v2947_v62 = vrot.slane %v8036_v46, 7  ;;  %v2980_v61 = vsel %vm2972_vm6, %v2697_v60, %v2739_v39  ;;  %v3076_v17 = vsel %vm711_vm2, %v3060_v59, %v2943_v54 }
 0x31c   :  { %v3075_v58 = vsel %vm711_vm2, %v3059_v2, %v2942_v12  ;;  %v5746_v16 = vadd.f32 %v2504_v32, %v7889_v11  ;;  %v2997_v4 = vsel %vm2989_vm7, %v2980_v61, %v2771_v15  ;;  %v8071_v51 = vpack.c.bf16 %v3076_v17, %v3074_v43  ;;  %v6238_v12 = vld [vmem:[%s9035_s6 + $0x114] ss:$8 sps:$4 sm:$0xff]  }
 0x31d   :  { %v2520_v55 = vpop.f32.mrb[24].mxu1  ;;  %v8077_v60 = vpack.c.bf16 %v3075_v58, %v7930_v1  ;;  %v5747_v14 = vadd.f32 %v2506_v52, %v7892_v53  ;;  %v5748_v32 = vadd.f32 %v2510_v41, %v7889_v11  ;;  %v8087_v43 = vadd.f32 %v2512_v57, %v7892_v53 }
 0x31e   :  { %v8080_v54 = vpop.f32.mrb[25].mxu1  ;;  %v2557_v36 = vmax.f32 %v5746_v16, 0.0  ;;  %v5750_v59 = vadd.f32 %v2514_v13, %v7889_v11  ;;  %3875 = vmatprep.mubr.bf16.mxu0 %v8071_v51  ;;  %v8094_v52 = vadd.f32 %v2516_v44, %v7892_v53  ;;  %v8097_v39 = vadd.f32 %v2520_v55, %v7889_v11  ;;  %v6236_v44 = vld [vmem:[%s9035_s6 + $0x110] ss:$8 sps:$4 sm:$0xff]  }
 0x31f   :  { %v8090_v2 = vpop.f32.mrb[26].mxu1  ;;  %v2558_v1 = vmax.f32 %v5747_v14, 0.0  ;;  %v3012_v41 = vsel %vm3006_vm8, %v2995_v29, %v2801_v8  ;;  %3876 = vmatmul.mubr.bf16.vlgmr.msra.gmra.mrb[48].mxu0 %v8077_v60  ;;  %v2559_v13 = vmax.f32 %v5748_v32, 0.0  ;;  %v2560_v61 = vmax.f32 %v8087_v43, 0.0 }
 0x320   :  { %v8102_v15 = vpop.f32.mrb[27].mxu1  ;;  %v2629_v57 = vrot.slane %v2557_v36, 1  ;;  %v2561_v17 = vmax.f32 %v5750_v59, 0.0  ;;  %3917 = vmatpush1.bf16.msra.mxu0 %v6233_v31  ;;  %v2562_v16 = vmax.f32 %v8094_v52, 0.0  ;;  %v2563_v30 = vmax.f32 %v8097_v39, 0.0 }
 0x321   :  { %v2632_v58 = vrot.slane %v2558_v1, 1  ;;  %v3014_v8 = vsel %vm3006_vm8, %v2997_v4, %v2803_v47  ;;  %3918 = vmatprep.subr.bf16.mxu0 %v6238_v12  ;;  %v2634_v14 = vrot.slane %v2559_v13, 1  ;;  %v6241_v31 = vld [vmem:[%s9035_s6 + $0x124] ss:$8 sps:$4 sm:$0xff]   ;;  %v2637_v32 = vrot.slane %v2560_v61, 1 }
 0x322   :  { %v2630_v29 = vsel %vm711_vm2, %v8017_v23, %v2629_v57  ;;  %v8114_v55 = vmax.f32 %v2557_v36, %v2629_v57  ;;  %v6239_v23 = vld [vmem:[%s9035_s6 + $0x120] ss:$8 sps:$4 sm:$0xff]   ;;  %v2635_v36 = vrot.slane %v2561_v17, 1  ;;  %v8177_v63 = vrot.slane %v2563_v30, 1 }
 0x323   :  { %v8123_v59 = vmax.f32 %v2555_v42, %v2630_v29  ;;  %v2633_v47 = vsel %vm711_vm2, %v2631_v19, %v2632_v58  ;;  %v8126_v4 = vmax.f32 %v2558_v1, %v2632_v58  ;;  %v6244_v29 = vld [vmem:[%s9035_s6 + $0x134] ss:$8 sps:$4 sm:$0xff]   ;;  %v3013_v27 = vsel %vm3006_vm8, %v8056_v0, %v2802_v45  ;;  %v6253_v45 = vld [vmem:[%s9035_s6 + $0x164] ss:$8 sps:$4 sm:$0xff]   ;;  %v6257_v39 = vld [vmem:[%s9035_s6 + $0x180] ss:$8 sps:$4 sm:$0xff]  }
 0x324   :  { %v8142_v58 = vmax.f32 %v2556_v28, %v2633_v47  ;;  %3919 = vmatpush1.bf16.msra.mxu0 %v6236_v44  ;;  %v2636_v12 = vsel %vm711_vm2, %v2634_v14, %v2635_v36  ;;  %v8166_v18 = vmax.f32 %v2561_v17, %v2635_v36  ;;  %v6242_v47 = vld [vmem:[%s9035_s6 + $0x130] ss:$8 sps:$4 sm:$0xff]   ;;  %v3028_v17 = vsel %vm150_vm0, %v3012_v41, %v2849_v9 }
 0x325   :  { %v8135_v34 = vpop.f32.mrb[28].mxu1  ;;  %v2740_v42 = vrot.slane %v8123_v59, 1  ;;  %v2772_v19 = vrot.slane %v8123_v59, 2  ;;  %3920 = vmatprep.subr.bf16.mxu0 %v6241_v31  ;;  %v2638_v31 = vrot.slane %v2562_v16, 1  ;;  %v3029_v38 = vsel %vm150_vm0, %v3013_v27, %v2850_v50 }
 0x326   :  { %v8147_v57 = vpop.f32.mrb[29].mxu1  ;;  %v2741_v28 = vrot.slane %v8142_v58, 1  ;;  %v2773_v44 = vrot.slane %v8142_v58, 2  ;;  %v2854_v36 = vrot.slane %v8166_v18, 4  ;;  %v9167_v0 = vrot.slane %v8013_v35, 5 }
 0x327   :  { %v8153_v1 = vpop.f32.mrb[30].mxu1  ;;  %v2981_v37 = vsel %vm2972_vm6, %v8123_v59, %v2740_v42  ;;  %v8170_v42 = vmax.f32 %v2559_v13, %v2636_v12  ;;  %v6247_v12 = vld [vmem:[%s9035_s6 + $0x144] ss:$8 sps:$4 sm:$0xff]   ;;  %v2639_v41 = vsel %vm711_vm2, %v2637_v32, %v2638_v31  ;;  %v9172_v27 = vrot.slane %v8142_v58, 3 }
 0x328   :  { %v8160_v3 = vpop.f32.mrb[31].mxu1  ;;  %v8163_v52 = vsel %vm2989_vm7, %v2981_v37, %v2772_v19  ;;  %v2982_v22 = vsel %vm2972_vm6, %v8142_v58, %v2741_v28  ;;  %3921 = vmatpush1.bf16.msra.mxu0 %v6239_v23  ;;  %v8196_v28 = vmax.f32 %v2562_v16, %v2638_v31  ;;  %v8208_v13 = vmax.f32 %v2560_v61, %v2639_v41 }
 0x329   :  { %v8183_v14 = vsel %vm2989_vm7, %v2982_v22, %v2773_v44  ;;  %3922 = vmatprep.subr.bf16.mxu0 %v6244_v29  ;;  %v2742_v19 = vrot.slane %v8170_v42, 1  ;;  %v2774_v37 = vrot.slane %v8170_v42, 2  ;;  %v2806_v9 = vrot.slane %v8170_v42, 3 }
 0x32a   :  { %v2950_v22 = vrot.slane %v8166_v18, 7  ;;  %v3030_v29 = vsel %vm150_vm0, %v3014_v8, %v2851_v40  ;;  %v3045_v44 = vsel %vm3039_vm9, %v3028_v17, %v2881_v20  ;;  %v6245_v20 = vld [vmem:[%s9035_s6 + $0x140] ss:$8 sps:$4 sm:$0xff]   ;;  %v2855_v43 = vrot.slane %v8196_v28, 4 }
 0x32b   :  { %v2983_v23 = vsel %vm2972_vm6, %v8170_v42, %v2742_v19  ;;  %v3047_v16 = vsel %vm3039_vm9, %v3030_v29, %v2883_v56  ;;  %v3062_v40 = vsel %vm937_vm4, %v3045_v44, %v2913_v26  ;;  %v2887_v61 = vrot.slane %v8196_v28, 5  ;;  %v6250_v56 = vld [vmem:[%s9035_s6 + $0x154] ss:$8 sps:$4 sm:$0xff]  }
 0x32c   :  { %3923 = vmatpush1.bf16.msra.mxu0 %v6242_v47  ;;  %v8220_v8 = vsel %vm2989_vm7, %v2983_v23, %v2774_v37  ;;  %v2919_v32 = vrot.slane %v8196_v28, 6  ;;  %v2743_v26 = vrot.slane %v8208_v13, 1  ;;  %v2775_v47 = vrot.slane %v8208_v13, 2 }
 0x32d   :  { %3924 = vmatprep.subr.bf16.mxu0 %v6247_v12  ;;  %v2807_v31 = vrot.slane %v8208_v13, 3  ;;  %v2951_v17 = vrot.slane %v8196_v28, 7  ;;  %v3064_v23 = vsel %vm937_vm4, %v3047_v16, %v2915_v25  ;;  %v3078_v12 = vsel %vm711_vm2, %v3062_v40, %v2945_v5  ;;  %v6271_v28 = vld [vmem:[%s9035_s6 + $0x1c4] ss:$8 sps:$4 sm:$0xff]  }
 0x32e   :  { %v5753_v19 = vadd.f32 %v8080_v54, %v7892_v53  ;;  %v3011_v37 = vsel %vm3006_vm8, %v7991_v21, %v2800_v33  ;;  %v2984_v41 = vsel %vm2972_vm6, %v8208_v13, %v2743_v26  ;;  %v3080_v29 = vsel %vm711_vm2, %v3064_v23, %v2947_v62  ;;  %v6251_v23 = vld [vmem:[%s9035_s6 + $0x160] ss:$8 sps:$4 sm:$0xff]  }
 0x32f   :  { %v3027_v5 = vsel %vm150_vm0, %v3011_v37, %v2848_v49  ;;  %v3001_v33 = vsel %vm2989_vm7, %v2984_v41, %v2775_v47  ;;  %v8260_v21 = vpack.c.bf16 %v3080_v29, %v3078_v12  ;;  %v3046_v25 = vsel %vm3039_vm9, %v3029_v38, %v9167_v0 }
 0x330   :  { %3925 = vmatpush1.bf16.msra.mxu0 %v6245_v20  ;;  %v2564_v46 = vmax.f32 %v5753_v19, 0.0  ;;  %v3044_v49 = vsel %vm3039_vm9, %v3027_v5, %v2880_v7  ;;  %v5754_v62 = vadd.f32 %v8090_v2, %v7889_v11  ;;  %v5755_v54 = vadd.f32 %v8102_v15, %v7892_v53 }
 0x331   :  { %3926 = vmatprep.subr.bf16.mxu0 %v6250_v56  ;;  %3885 = vmatprep.mubr.bf16.mxu0 %v8260_v21  ;;  %v9168_v13 = vrot.slane %v7964_v24, 6  ;;  %v9169_v16 = vrot.slane %v8013_v35, 6  ;;  %v5756_v40 = vadd.f32 %v8135_v34, %v7889_v11  ;;  %v9170_v20 = vrot.slane %v7964_v24, 7  ;;  %v6256_v34 = vld [vmem:[%s9035_s6 + $0x174] ss:$8 sps:$4 sm:$0xff]  }
 0x332   :  { %v2643_v50 = vrot.slane %v2564_v46, 1  ;;  %v9171_v15 = vrot.slane %v8013_v35, 7  ;;  %v2565_v26 = vmax.f32 %v5754_v62, 0.0  ;;  %v2566_v47 = vmax.f32 %v5755_v54, 0.0 }
 0x333   :  { %v3061_v44 = vsel %vm937_vm4, %v3044_v49, %v9168_v13  ;;  %v3063_v7 = vsel %vm937_vm4, %v3046_v25, %v9169_v16  ;;  %v2567_v19 = vmax.f32 %v5756_v40, 0.0  ;;  %v8300_v24 = vadd.f32 %v8147_v57, %v7892_v53 }
 0x334   :  { %v3077_v2 = vsel %vm711_vm2, %v3061_v44, %v9170_v20  ;;  %v3079_v56 = vsel %vm711_vm2, %v3063_v7, %v9171_v15  ;;  %3927 = vmatpush1.bf16.msra.mxu0 %v6248_v6  ;;  %v5758_v35 = vadd.f32 %v8153_v1, %v7889_v11  ;;  %v2641_v37 = vrot.slane %v2565_v26, 1  ;;  %v6254_v6 = vld [vmem:[%s9035_s6 + $0x170] ss:$8 sps:$4 sm:$0xff]   ;;  %v6262_v44 = vld [vmem:[%s9035_s6 + $0x194] ss:$8 sps:$4 sm:$0xff]  }
 0x335   :  { %v8296_v12 = vpack.c.bf16 %v3079_v56, %v3077_v2  ;;  %3928 = vmatprep.subr.bf16.mxu0 %v6253_v45  ;;  %v2644_v41 = vrot.slane %v2566_v47, 1  ;;  %v8309_v29 = vadd.f32 %v8160_v3, %v7892_v53  ;;  %v3016_v5 = vsel %vm3006_vm8, %v8183_v14, %v9172_v27  ;;  %v6259_v45 = vld [vmem:[%s9035_s6 + $0x184] ss:$8 sps:$4 sm:$0xff]  }
 0x336   :  { %v2646_v57 = vrot.slane %v2567_v19, 1  ;;  %v2568_v11 = vmax.f32 %v8300_v24, 0.0  ;;  %v2569_v1 = vmax.f32 %v5758_v35, 0.0  ;;  %v3018_v38 = vsel %vm3006_vm8, %v3001_v33, %v2807_v31  ;;  %v6268_v24 = vld [vmem:[%s9035_s6 + $0x1b4] ss:$8 sps:$4 sm:$0xff]  }
 0x337   :  { %3886 = vmatmul.mubr.bf16.gmra.mrb[52].mxu0 %v8296_v12  ;;  %v2642_v53 = vsel %vm711_vm2, %v8177_v63, %v2641_v37  ;;  %v8323_v3 = vmax.f32 %v2565_v26, %v2641_v37  ;;  %v2645_v58 = vsel %vm711_vm2, %v2643_v50, %v2644_v41  ;;  %v8326_v14 = vmax.f32 %v2566_v47, %v2644_v41  ;;  %v6260_v37 = vld [vmem:[%s9035_s6 + $0x190] ss:$8 sps:$4 sm:$0xff]  }
 0x338   :  { %3929 = vmatpush1.bf16.msra.mxu0 %v6251_v23  ;;  %v8333_v49 = vmax.f32 %v2563_v30, %v2642_v53  ;;  %v8335_v0 = vmax.f32 %v2564_v46, %v2645_v58  ;;  %v2649_v63 = vrot.slane %v2568_v11, 1  ;;  %v2647_v31 = vrot.slane %v2569_v1, 1 }
 0x339   :  { %3930 = vmatprep.subr.bf16.mxu0 %v6256_v34  ;;  %v2856_v33 = vrot.slane %v8323_v3, 4  ;;  %v2888_v25 = vrot.slane %v8323_v3, 5  ;;  %v2920_v62 = vrot.slane %v8323_v3, 6  ;;  %v2952_v54 = vrot.slane %v8323_v3, 7 }
 0x33a   :  { %v2744_v30 = vrot.slane %v8333_v49, 1  ;;  %v2776_v46 = vrot.slane %v8333_v49, 2  ;;  %v2808_v50 = vrot.slane %v8333_v49, 3  ;;  %v2745_v13 = vrot.slane %v8335_v0, 1 }
 0x33b   :  { %v2777_v16 = vrot.slane %v8335_v0, 2  ;;  %v2809_v7 = vrot.slane %v8335_v0, 3  ;;  %v2857_v40 = vrot.slane %v8326_v14, 4  ;;  %v2889_v20 = vrot.slane %v8326_v14, 5 }
 0x33c   :  { %3931 = vmatpush1.bf16.msra.mxu0 %v6254_v6  ;;  %v2985_v2 = vsel %vm2972_vm6, %v8333_v49, %v2744_v30  ;;  %v2921_v15 = vrot.slane %v8326_v14, 6  ;;  %v2953_v56 = vrot.slane %v8326_v14, 7  ;;  %v2986_v26 = vsel %vm2972_vm6, %v8335_v0, %v2745_v13 }
 0x33d   :  { %3932 = vmatprep.subr.bf16.mxu0 %v6259_v45  ;;  %v8364_v47 = vsel %vm2989_vm7, %v2985_v2, %v2776_v46  ;;  %v3003_v23 = vsel %vm2989_vm7, %v2986_v26, %v2777_v16  ;;  %v2648_v35 = vsel %vm711_vm2, %v2646_v57, %v2647_v31  ;;  %v8368_v34 = vmax.f32 %v2569_v1, %v2647_v31 }
 0x33e   :  { %v8373_v41 = vmax.f32 %v2567_v19, %v2648_v35  ;;  %v2570_v27 = vmax.f32 %v8309_v29, 0.0  ;;  %v9173_v6 = vrot.slane %v8126_v4, 4  ;;  %v3034_v58 = vsel %vm150_vm0, %v3018_v38, %v2855_v43  ;;  %v6265_v19 = vld [vmem:[%s9035_s6 + $0x1a4] ss:$8 sps:$4 sm:$0xff]  }
 0x33f   :  { %v2858_v57 = vrot.slane %v8368_v34, 4  ;;  %v2890_v1 = vrot.slane %v8368_v34, 5  ;;  %v2922_v45 = vrot.slane %v8368_v34, 6  ;;  %v2954_v0 = vrot.slane %v8368_v34, 7  ;;  %v6275_v34 = vld [vmem:[%s9035_s6 + $0x1e0] ss:$8 sps:$4 sm:$0xff]  }
 0x340   :  { %v3032_v53 = vsel %vm150_vm0, %v3016_v5, %v9173_v6  ;;  %3933 = vmatpush1.bf16.msra.mxu0 %v6257_v39  ;;  %v2746_v29 = vrot.slane %v8373_v41, 1  ;;  %v2778_v5 = vrot.slane %v8373_v41, 2  ;;  %v2810_v31 = vrot.slane %v8373_v41, 3 }
 0x341   :  { %v2650_v43 = vrot.slane %v2570_v27, 1  ;;  %3934 = vmatprep.subr.bf16.mxu0 %v6262_v44  ;;  %v9174_v38 = vrot.slane %v8126_v4, 5  ;;  %v3051_v39 = vsel %vm3039_vm9, %v3034_v58, %v2887_v61  ;;  %v9175_v46 = vrot.slane %v8123_v59, 3 }
 0x342   :  { %v3017_v16 = vsel %vm3006_vm8, %v8220_v8, %v2806_v9  ;;  %v2987_v44 = vsel %vm2972_vm6, %v8373_v41, %v2746_v29  ;;  %v9176_v35 = vrot.slane %v8126_v4, 6  ;;  %v3068_v42 = vsel %vm937_vm4, %v3051_v39, %v2919_v32 }
 0x343   :  { %v3049_v30 = vsel %vm3039_vm9, %v3032_v53, %v9174_v38  ;;  %v3015_v13 = vsel %vm3006_vm8, %v8163_v52, %v9175_v46  ;;  %v2651_v2 = vsel %vm711_vm2, %v2649_v63, %v2650_v43  ;;  %v2715_v26 = vmax.f32 %v2570_v27, %v2650_v43  ;;  %v6263_v63 = vld [vmem:[%s9035_s6 + $0x1a0] ss:$8 sps:$4 sm:$0xff]  }
 0x344   :  { %v3066_v61 = vsel %vm937_vm4, %v3049_v30, %v9176_v35  ;;  %v3004_v59 = vsel %vm2989_vm7, %v2987_v44, %v2778_v5  ;;  %v2713_v52 = vmax.f32 %v2568_v11, %v2651_v2  ;;  %v9177_v9 = vrot.slane %v8126_v4, 7  ;;  %3935 = vmatpush1.bf16.msra.mxu0 %v6260_v37  ;;  %v6266_v37 = vld [vmem:[%s9035_s6 + $0x1b0] ss:$8 sps:$4 sm:$0xff]  }
 0x345   :  { %v2859_v41 = vrot.slane %v2715_v26, 4  ;;  %v2891_v27 = vrot.slane %v2715_v26, 5  ;;  %v2923_v6 = vrot.slane %v2715_v26, 6  ;;  %v2955_v53 = vrot.slane %v2715_v26, 7  ;;  %3936 = vmatprep.subr.bf16.mxu0 %v6265_v19 }
 0x346   :  { %v3082_v8 = vsel %vm711_vm2, %v3066_v61, %v9177_v9  ;;  %v2747_v11 = vrot.slane %v2713_v52, 1  ;;  %v2779_v32 = vrot.slane %v2713_v52, 2  ;;  %v2811_v58 = vrot.slane %v2713_v52, 3  ;;  %v6269_v9 = vld [vmem:[%s9035_s6 + $0x1c0] ss:$8 sps:$4 sm:$0xff]  }
 0x347   :  { %v3084_v4 = vsel %vm711_vm2, %v3068_v42, %v2951_v17  ;;  %v9178_v5 = vrot.slane %v8114_v55, 4  ;;  %v3033_v43 = vsel %vm150_vm0, %v3017_v16, %v2854_v36  ;;  %v3020_v38 = vsel %vm3006_vm8, %v3003_v23, %v2809_v7 }
 0x348   :  { %v8433_v29 = vpack.c.bf16 %v3084_v4, %v3082_v8  ;;  %v2988_v17 = vsel %vm2972_vm6, %v2713_v52, %v2747_v11  ;;  %v9179_v30 = vrot.slane %v8114_v55, 5  ;;  %v9180_v46 = vrot.slane %v8166_v18, 5  ;;  %3937 = vmatpush1.bf16.msra.mxu0 %v6263_v63 }
 0x349   :  { %v3031_v19 = vsel %vm150_vm0, %v3015_v13, %v9178_v5  ;;  %v3036_v36 = vsel %vm150_vm0, %v3020_v38, %v2857_v40  ;;  %v3005_v7 = vsel %vm2989_vm7, %v2988_v17, %v2779_v32  ;;  %v9181_v23 = vrot.slane %v8114_v55, 6  ;;  %3938 = vmatprep.subr.bf16.mxu0 %v6268_v24 }
 0x34a   :  { %v3048_v39 = vsel %vm3039_vm9, %v3031_v19, %v9179_v30  ;;  %v3050_v13 = vsel %vm3039_vm9, %v3033_v43, %v9180_v46  ;;  %3895 = vmatprep.mubr.bf16.mxu0 %v8433_v29  ;;  %v9182_v44 = vrot.slane %v8166_v18, 6  ;;  %v3166_v26 = vshrl.u32 %v8071_v51, 16 }
 0x34b   :  { %v3065_v16 = vsel %vm937_vm4, %v3048_v39, %v9181_v23  ;;  %v9183_v35 = vrot.slane %v8114_v55, 7  ;;  %v3022_v52 = vsel %vm3006_vm8, %v3005_v7, %v2811_v58  ;;  %v3053_v42 = vsel %vm3039_vm9, %v3036_v36, %v2889_v20  ;;  %v6274_v20 = vld [vmem:[%s9035_s6 + $0x1d4] ss:$8 sps:$4 sm:$0xff]  }
 0x34c   :  { %v3067_v2 = vsel %vm937_vm4, %v3050_v13, %v9182_v44  ;;  %v3038_v55 = vsel %vm150_vm0, %v3022_v52, %v2859_v41  ;;  %v3070_v18 = vsel %vm937_vm4, %v3053_v42, %v2921_v15  ;;  %3939 = vmatpush1.bf16.msra.mxu0 %v6266_v37  ;;  %v3021_v24 = vsel %vm3006_vm8, %v3004_v59, %v2810_v31  ;;  %v6280_v36 = vld [vmem:[%s9035_s6 + $0x1f4] ss:$8 sps:$4 sm:$0xff]   ;;  %v6278_v44 = vld [vmem:[%s9035_s6 + $0x1f0] ss:$8 sps:$4 sm:$0xff]  }
 0x34d   :  { %v3081_v61 = vsel %vm711_vm2, %v3065_v16, %v9183_v35  ;;  %v3083_v40 = vsel %vm711_vm2, %v3067_v2, %v2950_v22  ;;  %v3019_v22 = vsel %vm3006_vm8, %v8364_v47, %v2808_v50  ;;  %v3055_v63 = vsel %vm3039_vm9, %v3038_v55, %v2891_v27  ;;  %3940 = vmatprep.subr.bf16.mxu0 %v6271_v28 }
 0x34e   :  { %v8477_v8 = vpack.c.bf16 %v3083_v40, %v3081_v61  ;;  %v3086_v41 = vsel %vm711_vm2, %v3070_v18, %v2953_v56  ;;  %v3035_v49 = vsel %vm150_vm0, %v3019_v22, %v2856_v33  ;;  %v3072_v50 = vsel %vm937_vm4, %v3055_v63, %v2923_v6  ;;  %v6283_v40 = vld [vmem:[%s9035_s6 + $0x204] ss:$8 sps:$4 sm:$0xff]  }
 0x34f   :  { %v3037_v15 = vsel %vm150_vm0, %v3021_v24, %v2858_v57  ;;  %v3052_v14 = vsel %vm3039_vm9, %v3035_v49, %v2888_v25  ;;  %v3168_v56 = vshll.u32 %v8071_v51, 16  ;;  %v3088_v47 = vsel %vm711_vm2, %v3072_v50, %v2955_v53  ;;  %v6272_v57 = vld [vmem:[%s9035_s6 + $0x1d0] ss:$8 sps:$4 sm:$0xff]   ;;  %v6281_v24 = vld [vmem:[%s9035_s6 + $0x200] ss:$8 sps:$4 sm:$0xff]  }
 0x350   :  { %3896 = vmatmul.mubr.bf16.gmra.mrb[56].mxu0 %v8477_v8  ;;  %v3054_v33 = vsel %vm3039_vm9, %v3037_v15, %v2890_v1  ;;  %v3069_v31 = vsel %vm937_vm4, %v3052_v14, %v2920_v62  ;;  %v3173_v59 = vshll.u32 %v8260_v21, 16  ;;  %v8518_v27 = vpack.c.bf16 %v3088_v47, %v3086_v41  ;;  %v6277_v62 = vld [vmem:[%s9035_s6 + $0x1e4] ss:$8 sps:$4 sm:$0xff]   ;;  %v6284_v47 = vld [vmem:[%s9035_s6 + $0x210] ss:$8 sps:$4 sm:$0xff]  }
 0x351   :  { %v3071_v25 = vsel %vm937_vm4, %v3054_v33, %v2922_v45  ;;  %v3085_v1 = vsel %vm711_vm2, %v3069_v31, %v2952_v54  ;;  %v3170_v6 = vrot.slane %v3168_v56, 1  ;;  %3941 = vmatpush1.bf16.msra.mxu0 %v6269_v9  ;;  %v3154_v32 = vshrl.u32 %v8077_v60, 16  ;;  %v6289_v33 = vld [vmem:[%s9035_s6 + $0x224] ss:$8 sps:$4 sm:$0xff]   ;;  %v6287_v31 = vld [vmem:[%s9035_s6 + $0x220] ss:$8 sps:$4 sm:$0xff]  }
 0x352   :  { %v3087_v53 = vsel %vm711_vm2, %v3071_v25, %v2954_v0  ;;  %v3175_v11 = vrot.slane %v3173_v59, 1  ;;  %v3156_v58 = vshll.u32 %v8077_v60, 16  ;;  %3905 = vmatprep.mubr.bf16.mxu0 %v8518_v27  ;;  %3942 = vmatprep.subr.bf16.mxu0 %v6274_v20  ;;  %v3161_v45 = vshll.u32 %v8296_v12, 16  ;;  %v6292_v59 = vld [vmem:[%s9035_s6 + $0x234] ss:$8 sps:$4 sm:$0xff]  }
 0x353   :  { %v8535_v3 = vpack.c.bf16 %v3087_v53, %v3085_v1  ;;  %v3171_v54 = vor.u32 %v3170_v6, %v3166_v26  ;;  %v3185_v4 = vshrl.u32 %v8260_v21, 16  ;;  %v3189_v37 = vshll.u32 %v8433_v29, 16  ;;  %v6295_v25 = vld [vmem:[%s9035_s6 + $0x244] ss:$8 sps:$4 sm:$0xff]  }
 0x354   :  { %v3158_v0 = vrot.slane %v3156_v58, 1  ;;  %v3177_v5 = vshrl.u32 %v8296_v12, 16  ;;  %v3181_v19 = vshll.u32 %v8477_v8, 16  ;;  %v3163_v38 = vrot.slane %v3161_v45, 1 }
 0x355   :  { %v3176_v43 = vsel %vm502_vm3, %v3171_v54, %v3175_v11  ;;  %v3187_v28 = vor.u32 %v3185_v4, %v3175_v11  ;;  %v3201_v17 = vshrl.u32 %v8433_v29, 16  ;;  %3943 = vmatpush1.bf16.msra.mxu0 %v6272_v57  ;;  %v3191_v39 = vrot.slane %v3189_v37, 1  ;;  %v6290_v57 = vld [vmem:[%s9035_s6 + $0x230] ss:$8 sps:$4 sm:$0xff]   ;;  %v6301_v4 = vld [vmem:[%s9035_s6 + $0x264] ss:$8 sps:$4 sm:$0xff]  }
 0x356   :  { %v3159_v30 = vor.u32 %v3158_v0, %v3154_v32  ;;  %v3183_v46 = vrot.slane %v3181_v19, 1  ;;  %v3205_v13 = vshll.u32 %v8518_v27, 16  ;;  %3944 = vmatprep.subr.bf16.mxu0 %v6277_v62  ;;  %v3179_v7 = vor.u32 %v3177_v5, %v3163_v38  ;;  %v6293_v62 = vld [vmem:[%s9035_s6 + $0x240] ss:$8 sps:$4 sm:$0xff]   ;;  %v6298_v32 = vld [vmem:[%s9035_s6 + $0x254] ss:$8 sps:$4 sm:$0xff]  }
 0x357   :  { %v3193_v23 = vshrl.u32 %v8477_v8, 16  ;;  %v3197_v16 = vshll.u32 %v8535_v3, 16  ;;  %v3192_v26 = vsel %vm502_vm3, %v3187_v28, %v3191_v39  ;;  %v3203_v35 = vor.u32 %v3201_v17, %v3191_v39  ;;  %v6296_v54 = vld [vmem:[%s9035_s6 + $0x250] ss:$8 sps:$4 sm:$0xff]   ;;  %v6299_v0 = vld [vmem:[%s9035_s6 + $0x260] ss:$8 sps:$4 sm:$0xff]  }
 0x358   :  { %3906 = vmatmul.mubr.bf16.gmra.mrb[60].mxu0 %v8535_v3  ;;  %v3164_v2 = vsel %vm502_vm3, %v3159_v30, %v3163_v38  ;;  %v3207_v61 = vrot.slane %v3205_v13, 1  ;;  %v3184_v52 = vsel %vm502_vm3, %v3179_v7, %v3183_v46  ;;  %v3233_v18 = vrot.slane %v8071_v51, 1  ;;  %v6286_v51 = vld [vmem:[%s9035_s6 + $0x214] ss:$8 sps:$4 sm:$0xff]   ;;  %v6302_v19 = vld [vmem:[%s9035_s6 + $0x270] ss:$8 sps:$4 sm:$0xff]  }
 0x359   :  { %3948 = vmatprep.mubr.bf16.mxu0 %v3176_v43  ;;  %v3195_v42 = vor.u32 %v3193_v23, %v3183_v46  ;;  %v3199_v9 = vrot.slane %v3197_v16, 1  ;;  %3945 = vmatpush1.bf16.msra.mxu0 %v6275_v34  ;;  %v3234_v22 = vrot.slane %v8260_v21, 1  ;;  %v3230_v63 = vrot.slane %v8077_v60, 1  ;;  %v6304_v37 = vld [vmem:[%s9035_s6 + $0x274] ss:$8 sps:$4 sm:$0xff]  }
 0x35a   :  { %v3208_v55 = vsel %vm502_vm3, %v3203_v35, %v3207_v61  ;;  %3946 = vmatprep.subr.bf16.mxu0 %v6280_v36  ;;  %v3231_v41 = vrot.slane %v8296_v12, 1  ;;  %v3238_v50 = vrot.slane %v8433_v29, 1  ;;  %v3236_v15 = vrot.slane %v8477_v8, 1  ;;  %v6307_v43 = vld [vmem:[%s9035_s6 + $0x284] ss:$8 sps:$4 sm:$0xff]  }
 0x35b   :  { %v3200_v20 = vsel %vm502_vm3, %v3195_v42, %v3199_v9  ;;  %v3235_v49 = vsel %vm711_vm2, %v3233_v18, %v3234_v22  ;;  %v3242_v60 = vrot.slane %v8518_v27, 1  ;;  %v3240_v12 = vrot.slane %v8535_v3, 1  ;;  %v6305_v38 = vld [vmem:[%s9035_s6 + $0x280] ss:$8 sps:$4 sm:$0xff]   ;;  %v6310_v28 = vld [vmem:[%s9035_s6 + $0x294] ss:$8 sps:$4 sm:$0xff]  }
 0x35c   :  { %v8579_v21 = vsel %vm711_vm2, %v3230_v63, %v3231_v41  ;;  %v8584_v14 = vsel %vm711_vm2, %v3234_v22, %v3238_v50  ;;  %v8587_v56 = vsel %vm711_vm2, %v3231_v41, %v3236_v15  ;;  %v3217_v1 = vshrl.u32 %v8518_v27, 16  ;;  %v6308_v17 = vld [vmem:[%s9035_s6 + $0x290] ss:$8 sps:$4 sm:$0xff]   ;;  %v6313_v30 = vld [vmem:[%s9035_s6 + $0x2a4] ss:$8 sps:$4 sm:$0xff]  }
 0x35d   :  { %3947 = vmatpush1.bf16.msra.mxu0 %v6278_v44  ;;  %v8592_v29 = vsel %vm711_vm2, %v3238_v50, %v3242_v60  ;;  %v8597_v8 = vsel %vm711_vm2, %v3236_v15, %v3240_v12  ;;  %v9184_v53 = vmov 0   ;;  %v3209_v45 = vshrl.u32 %v8535_v3, 16  ;;  %v6311_v39 = vld [vmem:[%s9035_s6 + $0x2a0] ss:$8 sps:$4 sm:$0xff]   ;;  %v6316_v46 = vld [vmem:[%s9035_s6 + $0x2b4] ss:$8 sps:$4 sm:$0xff]  }
 0x35e   :  { %3989 = vmatprep.subr.bf16.mxu0 %v6283_v40  ;;  %v3219_v6 = vor.u32 %v3217_v1, %v3207_v61  ;;  %v8622_v11 = vrot.slane %v9184_v53, 1  ;;  %v6314_v13 = vld [vmem:[%s9035_s6 + $0x2b0] ss:$8 sps:$4 sm:$0xff]   ;;  %v6319_v36 = vld [vmem:[%s9035_s6 + $0x2c4] ss:$8 sps:$4 sm:$0xff]  }
 0x35f   :  { %v3211_v34 = vor.u32 %v3209_v45, %v3199_v9  ;;  %v6317_v7 = vld [vmem:[%s9035_s6 + $0x2c0] ss:$8 sps:$4 sm:$0xff]   ;;  %v6322_v23 = vld [vmem:[%s9035_s6 + $0x2d4] ss:$8 sps:$4 sm:$0xff]   ;;  %v6320_v16 = vld [vmem:[%s9035_s6 + $0x2d0] ss:$8 sps:$4 sm:$0xff]  }
 0x360   :  { %3949 = vmatmul.mubr.bf16.vlgmr.msra.gmra.mrb[48].mxu0 %v3164_v2  ;;  %v3220_v58 = vsel %vm502_vm3, %v3219_v6, %v8622_v11  ;;  %v6325_v44 = vld [vmem:[%s9035_s6 + $0x2e4] ss:$8 sps:$4 sm:$0xff]   ;;  %v6323_v2 = vld [vmem:[%s9035_s6 + $0x2e0] ss:$8 sps:$4 sm:$0xff]   ;;  %v6326_v35 = vld [vmem:[%s9035_s6 + $0x2f0] ss:$8 sps:$4 sm:$0xff]  }
 0x361   :  { %3958 = vmatprep.mubr.bf16.mxu0 %v3192_v26  ;;  %3990 = vmatpush1.bf16.msra.mxu0 %v6281_v24  ;;  %v3216_v5 = vsel %vm502_vm3, %v3211_v34, %v8622_v11  ;;  %v6328_v26 = vld [vmem:[%s9035_s6 + $0x2f4] ss:$8 sps:$4 sm:$0xff]   ;;  %v6329_v61 = vld [vmem:[%s9037_s8 + $0x40] sm:$0xff]   ;;  %v6332_v42 = vld [vmem:[%s9037_s8 + $0x8] sm:$0xff]   ;;  %v3246_v24 = vsel %vm711_vm2, %v3242_v60, %v8622_v11 }
 0x362   :  { %3991 = vmatprep.subr.bf16.mxu0 %v6286_v51  ;;  %v6330_v40 = vld [vmem:[%s9037_s8] sm:$0xff]   ;;  %v6333_v9 = vld [vmem:[%s9037_s8 + $0x50] sm:$0xff]   ;;  %v6335_v18 = vld [vmem:[%s9037_s8 + $0x58] sm:$0xff]  }
 0x363   :  { %v6336_v22 = vld [vmem:[%s9037_s8 + $0x18] sm:$0xff]   ;;  %v6338_v63 = vld [vmem:[%s9037_s8 + $0x20] sm:$0xff]   ;;  %v6339_v41 = vld [vmem:[%s9037_s8 + $0x68] sm:$0xff]  }
 0x364   :  { %v6340_v50 = vld [vmem:[%s9037_s8 + $0x28] sm:$0xff]   ;;  %v6341_v27 = vld [vmem:[%s9037_s8 + $0x70] sm:$0xff]   ;;  %v6343_v3 = vld [vmem:[%s9037_s8 + $0x78] sm:$0xff]  }
 0x365   :  { %3992 = vmatpush1.bf16.msra.mxu0 %v6284_v47  ;;  %v6342_v15 = vld [vmem:[%s9037_s8 + $0x30] sm:$0xff]   ;;  %v6344_v51 = vld [vmem:[%s9037_s8 + $0x38] sm:$0xff]   ;;  %v3351_v60 = vld [vmem:[%s9038_s7] sm:$0x3] }
 0x366   :  { %3993 = vmatprep.subr.bf16.mxu0 %v6289_v33  ;;  %v6347_v45 = vld [vmem:[%s9037_s8 + $0xc8] sm:$0xff]  }
 0x368   :  { %3959 = vmatmul.mubr.bf16.gmra.mrb[52].mxu0 %v3184_v52  ;;  %v6331_v52 = vld [vmem:[%s9037_s8 + $0x48] sm:$0xff]  }
 0x369   :  { %3968 = vmatprep.mubr.bf16.mxu0 %v3208_v55  ;;  %3994 = vmatpush1.bf16.msra.mxu0 %v6287_v31  ;;  %v6334_v55 = vld [vmem:[%s9037_s8 + $0x10] sm:$0xff]  }
 0x36a   :  { %3995 = vmatprep.subr.bf16.mxu0 %v6292_v59 }
 0x36d   :  { %3996 = vmatpush1.bf16.msra.mxu0 %v6290_v57 }
 0x36e   :  { %3997 = vmatprep.subr.bf16.mxu0 %v6295_v25 }
 0x370   :  { %3969 = vmatmul.mubr.bf16.gmra.mrb[56].mxu0 %v3200_v20  ;;  %v6337_v20 = vld [vmem:[%s9037_s8 + $0x60] sm:$0xff]  }
 0x371   :  { %3978 = vmatprep.mubr.bf16.mxu0 %v3220_v58  ;;  %3998 = vmatpush1.bf16.msra.mxu0 %v6293_v62 }
 0x372   :  { %3999 = vmatprep.subr.bf16.mxu0 %v6298_v32  ;;  %v6346_v32 = vld [vmem:[%s9037_s8 + $0x80] sm:$0xff]  }
 0x375   :  { %4000 = vmatpush1.bf16.msra.mxu0 %v6296_v54 }
 0x376   :  { %4001 = vmatprep.subr.bf16.mxu0 %v6301_v4 }
 0x378   :  { %3979 = vmatmul.mubr.bf16.gmra.mrb[60].mxu0 %v3216_v5 }
 0x379   :  { %4002 = vmatpush1.bf16.msra.mxu0 %v6299_v0  ;;  %4021 = vmatprep.mubr.bf16.mxu0 %v3235_v49  ;;  %v3245_v49 = vsel %vm711_vm2, %v3240_v12, %v8622_v11  ;;  %v8763_v12 = vrot.slane %v3351_v60, %v9165_v48 }
 0x37a   :  { %4003 = vmatprep.subr.bf16.mxu0 %v6304_v37 }
 0x37d   :  { %4004 = vmatpush1.bf16.msra.mxu0 %v6302_v19 }
 0x37e   :  { %4005 = vmatprep.subr.bf16.mxu0 %v6307_v43  ;;  %v6348_v43 = vld [vmem:[%s9037_s8 + $0x88] sm:$0xff]  }
 0x381   :  { %4006 = vmatpush1.bf16.msra.mxu0 %v6305_v38 }
 0x382   :  { %4007 = vmatprep.subr.bf16.mxu0 %v6310_v28 }
 0x385   :  { %4008 = vmatpush1.bf16.msra.mxu0 %v6308_v17 }
 0x386   :  { %4009 = vmatprep.subr.bf16.mxu0 %v6313_v30  ;;  %v6349_v30 = vld [vmem:[%s9037_s8 + $0xd0] sm:$0xff]  }
 0x389   :  { %4010 = vmatpush1.bf16.msra.mxu0 %v6311_v39 }
 0x38a   :  { %4011 = vmatprep.subr.bf16.mxu0 %v6316_v46 }
 0x38d   :  { %4012 = vmatpush1.bf16.msra.mxu0 %v6314_v13 }
 0x38e   :  { %4013 = vmatprep.subr.bf16.mxu0 %v6319_v36 }
 0x391   :  { %4014 = vmatpush1.bf16.msra.mxu0 %v6317_v7 }
 0x392   :  { %4015 = vmatprep.subr.bf16.mxu0 %v6322_v23 }
 0x395   :  { %4016 = vmatpush1.bf16.msra.mxu0 %v6320_v16 }
 0x396   :  { %4017 = vmatprep.subr.bf16.mxu0 %v6325_v44  ;;  %v6350_v44 = vld [vmem:[%s9037_s8 + $0x90] sm:$0xff]  }
 0x399   :  { %4018 = vmatpush1.bf16.msra.mxu0 %v6323_v2 }
 0x39a   :  { %4019 = vmatprep.subr.bf16.mxu0 %v6328_v26 }
 0x39d   :  { %4020 = vmatpush1.bf16.msra.mxu0 %v6326_v35 }
 0x39e   :  { %5538 = vmatprep.subr.bf16.mxu0 %v6329_v61 }
 0x3a0   :  { %4022 = vmatmul.mubr.bf16.vlgmr.msra.gmra.mrb[48].mxu0 %v8579_v21  ;;  %v6345_v21 = vld [vmem:[%s9037_s8 + $0xc0] sm:$0xff]  }
 0x3a1   :  { %4031 = vmatprep.mubr.bf16.mxu0 %v8584_v14  ;;  %5539 = vmatpush3.bf16.msra.mxu0 %v6330_v40  ;;  %v8766_v14 = vrot.slane %v3351_v60, %v9166_v10  ;;  %v6351_v40 = vld [vmem:[%s9037_s8 + $0xd8] sm:$0xff]  }
 0x3a2   :  { %5540 = vmatprep.subr.bf16.mxu0 %v6331_v52 }
 0x3a5   :  { %5541 = vmatpush3.bf16.msra.mxu0 %v6332_v42 }
 0x3a6   :  { %5542 = vmatprep.subr.bf16.mxu0 %v6333_v9 }
 0x3a8   :  { %4032 = vmatmul.mubr.bf16.gmra.mrb[52].mxu0 %v8587_v56 }
 0x3a9   :  { %4041 = vmatprep.mubr.bf16.mxu0 %v8592_v29  ;;  %5543 = vmatpush3.bf16.msra.mxu0 %v6334_v55 }
 0x3aa   :  { %5544 = vmatprep.subr.bf16.mxu0 %v6335_v18 }
 0x3ad   :  { %5545 = vmatpush3.bf16.msra.mxu0 %v6336_v22 }
 0x3ae   :  { %5546 = vmatprep.subr.bf16.mxu0 %v6337_v20 }
 0x3b0   :  { %4042 = vmatmul.mubr.bf16.gmra.mrb[56].mxu0 %v8597_v8 }
 0x3b1   :  { %4051 = vmatprep.mubr.bf16.mxu0 %v3246_v24  ;;  %5547 = vmatpush3.bf16.msra.mxu0 %v6338_v63 }
 0x3b2   :  { %5548 = vmatprep.subr.bf16.mxu0 %v6339_v41 }
 0x3b5   :  { %5549 = vmatpush3.bf16.msra.mxu0 %v6340_v50 }
 0x3b6   :  { %5550 = vmatprep.subr.bf16.mxu0 %v6341_v27 }
 0x3b8   :  { %4052 = vmatmul.mubr.bf16.gmra.mrb[60].mxu0 %v3245_v49 }
 0x3b9   :  { %5551 = vmatpush3.bf16.msra.mxu0 %v6342_v15 }
 0x3ba   :  { %5552 = vmatprep.subr.bf16.mxu0 %v6343_v3  ;;  %v6352_v3 = vld [vmem:[%s9037_s8 + $0x98] sm:$0xff]  }
 0x3bd   :  { %5553 = vmatpush3.bf16.msra.mxu0 %v6344_v51 }
 0x3be   :  { %5578 = vmatprep.subr.bf16.mxu0 %v6345_v21 }
 0x473   :  { %v4023_v56 = vpop.f32.mrb[48].mxu0 }
 0x474   :  { %v5760_v29 = vadd.f32 %v4023_v56, %v8763_v12  ;;  %v4025_v8 = vpop.f32.mrb[49].mxu0 }
 0x475   :  { %v5761_v47 = vadd.f32 %v4025_v8, %v8766_v14  ;;  %v4027_v33 = vpop.f32.mrb[50].mxu0  ;;  %v6353_v8 = vld [vmem:[%s9037_s8 + $0xe0] sm:$0xff]  }
 0x476   :  { %v5762_v31 = vadd.f32 %v4027_v33, %v8763_v12  ;;  %v4029_v59 = vpop.f32.mrb[51].mxu0  ;;  %v4062_v25 = vmax.f32 %v5760_v29, 0.0 }
 0x477   :  { %v5763_v57 = vadd.f32 %v4029_v59, %v8766_v14  ;;  %v4063_v6 = vmax.f32 %v5761_v47, 0.0 }
 0x478   :  { %v4064_v1 = vmax.f32 %v5762_v31, 0.0 }
 0x479   :  { %v4065_v48 = vmax.f32 %v5763_v57, 0.0 }
 0x47a   :  { %v4078_v62 = vpack.c.bf16 %v4064_v1, %v4062_v25 }
 0x47b   :  { %v4079_v53 = vpack.c.bf16 %v4065_v48, %v4063_v6  ;;  %v4033_v10 = vpop.f32.mrb[52].mxu0  ;;  %v6354_v6 = vld [vmem:[%s9037_s8 + $0xa0] sm:$0xff]  }
 0x47c   :  { %v5764_v58 = vadd.f32 %v4033_v10, %v8763_v12  ;;  %v4035_v54 = vpop.f32.mrb[53].mxu0  ;;  %v4089_v0 = vshll.u32 %v4078_v62, 16  ;;  %v4087_v7 = vshrl.u32 %v4078_v62, 16  ;;  %v4166_v26 = vrot.slane %v4078_v62, 1 }
 0x47d   :  { %v5765_v4 = vadd.f32 %v4035_v54, %v8766_v14  ;;  %v4037_v34 = vpop.f32.mrb[54].mxu0  ;;  %4613 = vmatprep.mubr.bf16.mxu0 %v4079_v53  ;;  %v4101_v38 = vshll.u32 %v4079_v53, 16  ;;  %v4099_v52 = vshrl.u32 %v4079_v53, 16  ;;  %v4169_v20 = vrot.slane %v4079_v53, 1  ;;  %v6355_v53 = vld [vmem:[%s9037_s8 + $0xe8] sm:$0xff]  }
 0x47e   :  { %v5766_v37 = vadd.f32 %v4037_v34, %v8763_v12  ;;  %v4039_v5 = vpop.f32.mrb[55].mxu0  ;;  %4614 = vmatmul.mubr.bf16.vlgmr.msra.gmra.mrb[64].mxu0 %v4078_v62  ;;  %v4066_v28 = vmax.f32 %v5764_v58, 0.0  ;;  %v4091_v13 = vrot.slane %v4089_v0, 1 }
 0x47f   :  { %v5767_v19 = vadd.f32 %v4039_v5, %v8766_v14  ;;  %5579 = vmatpush3.bf16.msra.mxu0 %v6346_v32  ;;  %v4067_v39 = vmax.f32 %v5765_v4, 0.0  ;;  %v4103_v2 = vrot.slane %v4101_v38, 1 }
 0x480   :  { %v4068_v17 = vmax.f32 %v5766_v37, 0.0  ;;  %5580 = vmatprep.subr.bf16.mxu0 %v6347_v45  ;;  %v4092_v49 = vor.u32 %v4091_v13, %v4087_v7 }
 0x481   :  { %v4069_v46 = vmax.f32 %v5767_v19, 0.0  ;;  %v4104_v51 = vor.u32 %v4103_v2, %v4099_v52 }
 0x482   :  { %v8788_v36 = vpack.c.bf16 %v4068_v17, %v4066_v28  ;;  %v6356_v17 = vld [vmem:[%s9037_s8 + $0xa8] sm:$0xff]  }
 0x483   :  { %v8790_v23 = vpack.c.bf16 %v4069_v46, %v4067_v39  ;;  %v4043_v16 = vpop.f32.mrb[56].mxu0  ;;  %5581 = vmatpush3.bf16.msra.mxu0 %v6348_v43 }
 0x484   :  { %v5768_v35 = vadd.f32 %v4043_v16, %v8763_v12  ;;  %v4045_v61 = vpop.f32.mrb[57].mxu0  ;;  %5582 = vmatprep.subr.bf16.mxu0 %v6349_v30  ;;  %v4094_v42 = vshll.u32 %v8788_v36, 16  ;;  %v4167_v9 = vrot.slane %v8788_v36, 1  ;;  %v4110_v10 = vshrl.u32 %v8788_v36, 16 }
 0x485   :  { %v5769_v55 = vadd.f32 %v4045_v61, %v8766_v14  ;;  %v4047_v18 = vpop.f32.mrb[58].mxu0  ;;  %4621 = vmatprep.mubr.bf16.mxu0 %v8790_v23  ;;  %v4106_v22 = vshll.u32 %v8790_v23, 16  ;;  %v4170_v63 = vrot.slane %v8790_v23, 1  ;;  %v4118_v4 = vshrl.u32 %v8790_v23, 16 }
 0x486   :  { %v5770_v41 = vadd.f32 %v4047_v18, %v8763_v12  ;;  %v4049_v24 = vpop.f32.mrb[59].mxu0  ;;  %4622 = vmatmul.mubr.bf16.gmra.mrb[68].mxu0 %v8788_v36  ;;  %v4096_v50 = vrot.slane %v4094_v42, 1  ;;  %v8808_v27 = vsel %vm711_vm2, %v4166_v26, %v4167_v9  ;;  %v4070_v56 = vmax.f32 %v5768_v35, 0.0  ;;  %v6357_v36 = vld [vmem:[%s9037_s8 + $0xf0] sm:$0xff]   ;;  %v6359_v35 = vld [vmem:[%s9037_s8 + $0xf8] sm:$0xff]  }
 0x487   :  { %v5771_v15 = vadd.f32 %v4049_v24, %v8766_v14  ;;  %5583 = vmatpush3.bf16.msra.mxu0 %v6350_v44  ;;  %v4108_v21 = vrot.slane %v4106_v22, 1  ;;  %v8815_v60 = vsel %vm711_vm2, %v4169_v20, %v4170_v63  ;;  %v4071_v33 = vmax.f32 %v5769_v55, 0.0  ;;  %v6358_v26 = vld [vmem:[%s9037_s8 + $0xb0] sm:$0xff]  }
 0x488   :  { %v4072_v29 = vmax.f32 %v5770_v41, 0.0  ;;  %5584 = vmatprep.subr.bf16.mxu0 %v6351_v40  ;;  %v8821_v47 = vsel %vm502_vm3, %v4092_v49, %v4096_v50  ;;  %v4112_v19 = vor.u32 %v4110_v10, %v4096_v50  ;;  %v6361_v50 = vld [vmem:[%s9037_s8 + $0x140] sm:$0xff]  }
 0x489   :  { %v4073_v31 = vmax.f32 %v5771_v15, 0.0  ;;  %v4109_v59 = vsel %vm502_vm3, %v4104_v51, %v4108_v21  ;;  %v4120_v30 = vor.u32 %v4118_v4, %v4108_v21  ;;  %v6362_v51 = vld [vmem:[%s9037_s8 + $0x100] sm:$0xff]   ;;  %v6363_v21 = vld [vmem:[%s9037_s8 + $0x148] sm:$0xff]  }
 0x48a   :  { %v4082_v57 = vpack.c.bf16 %v4072_v29, %v4070_v56  ;;  %v6364_v56 = vld [vmem:[%s9037_s8 + $0x108] sm:$0xff]   ;;  %v6365_v29 = vld [vmem:[%s9037_s8 + $0x150] sm:$0xff]  }
 0x48b   :  { %v4083_v25 = vpack.c.bf16 %v4073_v31, %v4071_v33  ;;  %v4053_v1 = vpop.f32.mrb[60].mxu0  ;;  %5585 = vmatpush3.bf16.msra.mxu0 %v6352_v3  ;;  %v6368_v33 = vld [vmem:[%s9037_s8 + $0x118] sm:$0xff]   ;;  %v6369_v31 = vld [vmem:[%s9037_s8 + $0x160] sm:$0xff]  }
 0x48c   :  { %v5772_v48 = vadd.f32 %v4053_v1, %v8763_v12  ;;  %v4055_v62 = vpop.f32.mrb[61].mxu0  ;;  %5586 = vmatprep.subr.bf16.mxu0 %v6353_v8  ;;  %v4114_v32 = vshll.u32 %v4082_v57, 16  ;;  %v4172_v58 = vrot.slane %v4082_v57, 1  ;;  %v4126_v61 = vshrl.u32 %v4082_v57, 16  ;;  %v6366_v8 = vld [vmem:[%s9037_s8 + $0x110] sm:$0xff]   ;;  %v6371_v1 = vld [vmem:[%s9037_s8 + $0x168] sm:$0xff]  }
 0x48d   :  { %v5773_v54 = vadd.f32 %v4055_v62, %v8766_v14  ;;  %v4057_v45 = vpop.f32.mrb[62].mxu0  ;;  %4629 = vmatprep.mubr.bf16.mxu0 %v4083_v25  ;;  %v4122_v34 = vshll.u32 %v4083_v25, 16  ;;  %v4174_v0 = vrot.slane %v4083_v25, 1  ;;  %v4134_v42 = vshrl.u32 %v4083_v25, 16  ;;  %v6370_v25 = vld [vmem:[%s9037_s8 + $0x120] sm:$0xff]  }
 0x48e   :  { %v5774_v37 = vadd.f32 %v4057_v45, %v8763_v12  ;;  %v4059_v5 = vpop.f32.mrb[63].mxu0  ;;  %4630 = vmatmul.mubr.bf16.gmra.mrb[72].mxu0 %v4082_v57  ;;  %v4116_v43 = vrot.slane %v4114_v32, 1  ;;  %v8836_v38 = vsel %vm711_vm2, %v4167_v9, %v4172_v58  ;;  %v4074_v12 = vmax.f32 %v5772_v48, 0.0  ;;  %v6372_v48 = vld [vmem:[%s9037_s8 + $0x128] sm:$0xff]   ;;  %v6374_v32 = vld [vmem:[%s9037_s8 + $0x130] sm:$0xff]   ;;  %v6376_v45 = vld [vmem:[%s9037_s8 + $0x138] sm:$0xff]  }
 0x48f   :  { %v5775_v28 = vadd.f32 %v4059_v5, %v8766_v14  ;;  %5587 = vmatpush3.bf16.msra.mxu0 %v6354_v6  ;;  %v4124_v39 = vrot.slane %v4122_v34, 1  ;;  %v8843_v46 = vsel %vm711_vm2, %v4170_v63, %v4174_v0  ;;  %v4075_v14 = vmax.f32 %v5773_v54, 0.0  ;;  %v6360_v63 = vld [vmem:[%s9037_s8 + $0xb8] sm:$0xff]   ;;  %v6378_v34 = vld [vmem:[%s9039_s12 + $0x8] sm:$0xff]  }
 0x490   :  { %v4076_v13 = vmax.f32 %v5774_v37, 0.0  ;;  %5588 = vmatprep.subr.bf16.mxu0 %v6355_v53  ;;  %v4117_v7 = vsel %vm502_vm3, %v4112_v19, %v4116_v43  ;;  %v4128_v18 = vor.u32 %v4126_v61, %v4116_v43  ;;  %v6373_v53 = vld [vmem:[%s9037_s8 + $0x170] sm:$0xff]   ;;  %v6381_v37 = vld [vmem:[%s9039_s12 + $0x20] sm:$0xff]  }
 0x491   :  { %v4077_v23 = vmax.f32 %v5775_v28, 0.0  ;;  %v4125_v16 = vsel %vm502_vm3, %v4120_v30, %v4124_v39  ;;  %v4136_v41 = vor.u32 %v4134_v42, %v4124_v39 }
 0x492   :  { %v8850_v44 = vpack.c.bf16 %v4076_v13, %v4074_v12 }
 0x493   :  { %v8852_v2 = vpack.c.bf16 %v4077_v23, %v4075_v14  ;;  %5589 = vmatpush3.bf16.msra.mxu0 %v6356_v17 }
 0x494   :  { %5590 = vmatprep.subr.bf16.mxu0 %v6357_v36  ;;  %v4130_v40 = vshll.u32 %v8850_v44, 16  ;;  %v4176_v52 = vrot.slane %v8850_v44, 1  ;;  %v4142_v62 = vshrl.u32 %v8850_v44, 16 }
 0x495   :  { %4637 = vmatprep.mubr.bf16.mxu0 %v8852_v2  ;;  %v4138_v9 = vshll.u32 %v8852_v2, 16  ;;  %v4178_v55 = vrot.slane %v8852_v2, 1 }
 0x496   :  { %4638 = vmatmul.mubr.bf16.gmra.mrb[76].mxu0 %v8850_v44  ;;  %v4132_v22 = vrot.slane %v4130_v40, 1  ;;  %v4177_v20 = vsel %vm711_vm2, %v4172_v58, %v4176_v52  ;;  %v6375_v58 = vld [vmem:[%s9037_s8 + $0x178] sm:$0xff]  }
 0x497   :  { %5591 = vmatpush3.bf16.msra.mxu0 %v6358_v26  ;;  %4678 = vmatprep.mubr.bf16.mxu0 %v4109_v59  ;;  %v4140_v24 = vrot.slane %v4138_v9, 1  ;;  %v4179_v49 = vsel %vm711_vm2, %v4174_v0, %v4178_v55  ;;  %v4146_v59 = vshrl.u32 %v8852_v2, 16  ;;  %v4181_v4 = vsel %vm711_vm2, %v4178_v55, %v8622_v11  ;;  %v6379_v0 = vld [vmem:[%s9039_s12 + $0x10] sm:$0xff]   ;;  %v5447_v9 = vld [vmem:[%s9040_s9] ss:$0 sm:$0xff] }
 0x498   :  { %5592 = vmatprep.subr.bf16.mxu0 %v6359_v35  ;;  %v4133_v15 = vsel %vm502_vm3, %v4128_v18, %v4132_v22  ;;  %v4144_v10 = vor.u32 %v4142_v62, %v4132_v22 }
 0x499   :  { %v4141_v3 = vsel %vm502_vm3, %v4136_v41, %v4140_v24  ;;  %v4148_v57 = vor.u32 %v4146_v59, %v4140_v24 }
 0x49a   :  { %v4145_v54 = vsel %vm502_vm3, %v4144_v10, %v8622_v11 }
 0x49b   :  { %5593 = vmatpush3.bf16.msra.mxu0 %v6360_v63  ;;  %v4149_v6 = vsel %vm502_vm3, %v4148_v57, %v8622_v11 }
 0x49c   :  { %5618 = vmatprep.subr.bf16.mxu0 %v6361_v50 }
 0x49e   :  { %4679 = vmatmul.mubr.bf16.vlgmr.msra.gmra.mrb[80].mxu0 %v8821_v47  ;;  %v6367_v47 = vld [vmem:[%s9037_s8 + $0x158] sm:$0xff]  }
 0x49f   :  { %4686 = vmatprep.mubr.bf16.mxu0 %v4125_v16  ;;  %5619 = vmatpush3.bf16.msra.mxu0 %v6362_v51 }
 0x4a0   :  { %5620 = vmatprep.subr.bf16.mxu0 %v6363_v21 }
 0x4a3   :  { %5621 = vmatpush3.bf16.msra.mxu0 %v6364_v56 }
 0x4a4   :  { %5622 = vmatprep.subr.bf16.mxu0 %v6365_v29 }
 0x4a6   :  { %4687 = vmatmul.mubr.bf16.gmra.mrb[84].mxu0 %v4117_v7 }
 0x4a7   :  { %4694 = vmatprep.mubr.bf16.mxu0 %v4141_v3  ;;  %5623 = vmatpush3.bf16.msra.mxu0 %v6366_v8 }
 0x4a8   :  { %5624 = vmatprep.subr.bf16.mxu0 %v6367_v47 }
 0x4ab   :  { %5625 = vmatpush3.bf16.msra.mxu0 %v6368_v33 }
 0x4ac   :  { %5626 = vmatprep.subr.bf16.mxu0 %v6369_v31 }
 0x4ae   :  { %4695 = vmatmul.mubr.bf16.gmra.mrb[88].mxu0 %v4133_v15 }
 0x4af   :  { %4702 = vmatprep.mubr.bf16.mxu0 %v4149_v6  ;;  %5627 = vmatpush3.bf16.msra.mxu0 %v6370_v25 }
 0x4b0   :  { %5628 = vmatprep.subr.bf16.mxu0 %v6371_v1 }
 0x4b3   :  { %5629 = vmatpush3.bf16.msra.mxu0 %v6372_v48 }
 0x4b4   :  { %5630 = vmatprep.subr.bf16.mxu0 %v6373_v53 }
 0x4b6   :  { %4703 = vmatmul.mubr.bf16.gmra.mrb[92].mxu0 %v4145_v54 }
 0x4b7   :  { %5631 = vmatpush3.bf16.msra.mxu0 %v6374_v32  ;;  %4743 = vmatprep.mubr.bf16.mxu0 %v8815_v60  ;;  %v4180_v60 = vsel %vm711_vm2, %v4176_v52, %v8622_v11  ;;  %v6380_v11 = vld [vmem:[%s9039_s12 + $0x18] sm:$0xff]  }
 0x4b8   :  { %5632 = vmatprep.subr.bf16.mxu0 %v6375_v58 }
 0x4bb   :  { %5633 = vmatpush3.bf16.msra.mxu0 %v6376_v45 }
 0x4be   :  { %4744 = vmatmul.mubr.bf16.vlgmr.msra.gmra.mrb[96].mxu0 %v8808_v27  ;;  %v6377_v27 = vld [vmem:[%s9039_s12] sm:$0xff]  }
 0x4bf   :  { %4751 = vmatprep.mubr.bf16.mxu0 %v8843_v46  ;;  %5680 = vmatprep.subr.bf16.mxu0 %v6377_v27 }
 0x4c0   :  { %5681 = vmatpush3.bf16.msra.mxu0 %v6377_v27 }
 0x4c1   :  { %5682 = vmatprep.subr.bf16.mxu0 %v6378_v34 }
 0x4c4   :  { %5683 = vmatpush3.bf16.msra.mxu0 %v6378_v34 }
 0x4c5   :  { %5684 = vmatprep.subr.bf16.mxu0 %v6379_v0 }
 0x4c6   :  { %4752 = vmatmul.mubr.bf16.gmra.mrb[100].mxu0 %v8836_v38 }
 0x4c7   :  { %4759 = vmatprep.mubr.bf16.mxu0 %v4179_v49 }
 0x4c8   :  { %5685 = vmatpush3.bf16.msra.mxu0 %v6379_v0 }
 0x4c9   :  { %5686 = vmatprep.subr.bf16.mxu0 %v6380_v11 }
 0x4cc   :  { %5687 = vmatpush3.bf16.msra.mxu0 %v6380_v11 }
 0x4cd   :  { %5688 = vmatprep.subr.bf16.mxu0 %v6381_v37 }
 0x4ce   :  { %4760 = vmatmul.mubr.bf16.gmra.mrb[104].mxu0 %v4177_v20 }
 0x4cf   :  { %4767 = vmatprep.mubr.bf16.mxu0 %v4181_v4 }
 0x4d0   :  { %5689 = vmatpush3.bf16.msra.mxu0 %v6381_v37 }
 0x4d6   :  { %4768 = vmatmul.mubr.bf16.gmra.mrb[108].mxu0 %v4180_v60 }
 0x551   :  { %v5554_v5 = vpop.f32.mrb[64].mxu0 }
 0x552   :  { %v5555_v19 = vpop.f32.mrb[65].mxu0 }
 0x553   :  { %v5556_v43 = vadd.f32 %v5555_v19, %v5554_v5  ;;  %v5557_v38 = vpop.f32.mrb[66].mxu0  ;;  %v6382_v19 = vld [vmem:[%s9039_s12 + $0x28] sm:$0xff]  }
 0x554   :  { %v5558_v28 = vpop.f32.mrb[67].mxu0  ;;  %5690 = vmatprep.subr.bf16.mxu0 %v6382_v19 }
 0x555   :  { %v5559_v17 = vadd.f32 %v5558_v28, %v5557_v38  ;;  %v4616_v22 = vadd.f32 %v5556_v43, %v5447_v9  ;;  %5691 = vmatpush3.bf16.msra.mxu0 %v6382_v19 }
 0x557   :  { %v4619_v24 = vadd.f32 %v5559_v17, %v5447_v9 }
 0x559   :  { %v5560_v30 = vpop.f32.mrb[68].mxu0 }
 0x55a   :  { %v5561_v39 = vpop.f32.mrb[69].mxu0 }
 0x55b   :  { %v5562_v46 = vadd.f32 %v5561_v39, %v5560_v30  ;;  %v5563_v12 = vpop.f32.mrb[70].mxu0 }
 0x55c   :  { %v5564_v13 = vpop.f32.mrb[71].mxu0 }
 0x55d   :  { %v5565_v36 = vadd.f32 %v5564_v13, %v5563_v12  ;;  %v4624_v21 = vadd.f32 %v5562_v46, %v5447_v9  ;;  %v6384_v12 = vld [vmem:[%s9039_s12 + $0x30] sm:$0xff]  }
 0x55e   :  { %5692 = vmatprep.subr.bf16.mxu0 %v6384_v12 }
 0x55f   :  { %v4627_v47 = vadd.f32 %v5565_v36, %v5447_v9  ;;  %5693 = vmatpush3.bf16.msra.mxu0 %v6384_v12  ;;  %v6385_v36 = vld [vmem:[%s9039_s12 + $0x38] sm:$0xff]   ;;  %s6393_s12 = smov 96  }
 0x560   :  { %5694 = vmatprep.subr.bf16.mxu0 %v6385_v36 }
 0x561   :  { %v5566_v7 = vpop.f32.mrb[72].mxu0 }
 0x562   :  { %v5567_v14 = vpop.f32.mrb[73].mxu0 }
 0x563   :  { %v5568_v23 = vadd.f32 %v5567_v14, %v5566_v7  ;;  %v5569_v16 = vpop.f32.mrb[74].mxu0  ;;  %5695 = vmatpush3.bf16.msra.mxu0 %v6385_v36 }
 0x564   :  { %v5570_v44 = vpop.f32.mrb[75].mxu0 }
 0x565   :  { %v5571_v2 = vadd.f32 %v5570_v44, %v5569_v16  ;;  %v4632_v1 = vadd.f32 %v5568_v23, %v5447_v9 }
 0x567   :  { %v4635_v53 = vadd.f32 %v5571_v2, %v5447_v9 }
 0x569   :  { %v5572_v26 = vpop.f32.mrb[76].mxu0 }
 0x56a   :  { %v5573_v35 = vpop.f32.mrb[77].mxu0 }
 0x56b   :  { %v5574_v61 = vadd.f32 %v5573_v35, %v5572_v26  ;;  %v5575_v40 = vpop.f32.mrb[78].mxu0 }
 0x56c   :  { %v5576_v52 = vpop.f32.mrb[79].mxu0 }
 0x56d   :  { %v5577_v42 = vadd.f32 %v5576_v52, %v5575_v40  ;;  %v4640_v4 = vadd.f32 %v5574_v61, %v5447_v9 }
 0x56f   :  { %v4643_v0 = vadd.f32 %v5577_v42, %v5447_v9 }
 0x571   :  { %v5594_v55 = vpop.f32.mrb[80].mxu0 }
 0x572   :  { %v5595_v18 = vpop.f32.mrb[81].mxu0 }
 0x573   :  { %v5596_v20 = vadd.f32 %v5595_v18, %v5594_v55  ;;  %v5597_v63 = vpop.f32.mrb[82].mxu0 }
 0x574   :  { %v5598_v41 = vpop.f32.mrb[83].mxu0 }
 0x575   :  { %v4681_v49 = vadd.f32 %v5596_v20, %v4616_v22  ;;  %v5599_v50 = vadd.f32 %v5598_v41, %v5597_v63 }
 0x577   :  { %v4684_v15 = vadd.f32 %v5599_v50, %v4619_v24 }
 0x579   :  { %v5600_v3 = vpop.f32.mrb[84].mxu0 }
 0x57a   :  { %v5601_v51 = vpop.f32.mrb[85].mxu0 }
 0x57b   :  { %v5602_v56 = vadd.f32 %v5601_v51, %v5600_v3  ;;  %v5603_v29 = vpop.f32.mrb[86].mxu0 }
 0x57c   :  { %v5604_v8 = vpop.f32.mrb[87].mxu0 }
 0x57d   :  { %v4689_v33 = vadd.f32 %v5602_v56, %v4624_v21  ;;  %v5605_v31 = vadd.f32 %v5604_v8, %v5603_v29 }
 0x57f   :  { %v4692_v59 = vadd.f32 %v5605_v31, %v4627_v47 }
 0x581   :  { %v5606_v57 = vpop.f32.mrb[88].mxu0 }
 0x582   :  { %v5607_v25 = vpop.f32.mrb[89].mxu0 }
 0x583   :  { %v5608_v6 = vadd.f32 %v5607_v25, %v5606_v57  ;;  %v5609_v48 = vpop.f32.mrb[90].mxu0 }
 0x584   :  { %v5610_v62 = vpop.f32.mrb[91].mxu0 }
 0x585   :  { %v4697_v10 = vadd.f32 %v5608_v6, %v4632_v1  ;;  %v5611_v32 = vadd.f32 %v5610_v62, %v5609_v48  ;;  %v4851_v6 = vld [vmem:[%s9041_s10] sm:$0xf] }
 0x586   :  { %v5496_v48 = vcombine.low %v4851_v6, %v4851_v6 }
 0x587   :  { %v4700_v58 = vadd.f32 %v5611_v32, %v4635_v53 }
 0x588   :  { %v4857_v32 = vsel %vm150_vm0, %v4851_v6, %v5496_v48 }
 0x589   :  { %v5612_v54 = vpop.f32.mrb[92].mxu0 }
 0x58a   :  { %v5613_v45 = vpop.f32.mrb[93].mxu0 }
 0x58b   :  { %v5614_v60 = vadd.f32 %v5613_v45, %v5612_v54  ;;  %v5615_v27 = vpop.f32.mrb[94].mxu0 }
 0x58c   :  { %v5616_v34 = vpop.f32.mrb[95].mxu0 }
 0x58d   :  { %v4705_v11 = vadd.f32 %v5614_v60, %v4640_v4  ;;  %v5617_v37 = vadd.f32 %v5616_v34, %v5615_v27 }
 0x58f   :  { %v4708_v5 = vadd.f32 %v5617_v37, %v4643_v0 }
 0x591   :  { %v5634_v43 = vpop.f32.mrb[96].mxu0 }
 0x592   :  { %v5635_v38 = vpop.f32.mrb[97].mxu0 }
 0x593   :  { %v5636_v28 = vadd.f32 %v5635_v38, %v5634_v43  ;;  %v5637_v17 = vpop.f32.mrb[98].mxu0 }
 0x594   :  { %v5638_v30 = vpop.f32.mrb[99].mxu0 }
 0x595   :  { %v4746_v39 = vadd.f32 %v5636_v28, %v4681_v49  ;;  %v5639_v46 = vadd.f32 %v5638_v30, %v5637_v17 }
 0x597   :  { %v4749_v13 = vadd.f32 %v5639_v46, %v4684_v15  ;;  %v4776_v7 = vmax.f32 %v4746_v39, 0.0 }
 0x599   :  { %v4777_v14 = vmax.f32 %v4749_v13, 0.0  ;;  %v5640_v23 = vpop.f32.mrb[100].mxu0 }
 0x59a   :  { %v5641_v16 = vpop.f32.mrb[101].mxu0 }
 0x59b   :  { %v4784_v44 = vpack.c.bf16 %v4777_v14, %v4776_v7  ;;  %v5642_v2 = vadd.f32 %v5641_v16, %v5640_v23  ;;  %v5643_v26 = vpop.f32.mrb[102].mxu0  ;;  %v6394_v16 = vmov 0.0  }
 0x59c   :  { %v5644_v35 = vpop.f32.mrb[103].mxu0  ;;  %5704 = vmatprep.subr.bf16.mxu0 %v6394_v16  ;;  %5716 = vmatprep.subr.bf16.mxu1 %v6394_v16 }
 0x59d   :  { %v4754_v61 = vadd.f32 %v5642_v2, %v4689_v33  ;;  %v5645_v40 = vadd.f32 %v5644_v35, %v5643_v26  ;;  %4800 = vrot.lane.b32.xlu1 %v4784_v44, %s6391_s26  ;;  %4792 = vrot.lane.b32.xlu0 %v4784_v44, %s6392_s27  ;;  %v6386_v2 = vld [vmem:[%s9043_s15] sm:$0xff]   ;;  %v6387_v26 = vld [vmem:[%s9043_s15 + $0x8] sm:$0xff]  }
 0x59e   :  { %5724 = vmatprep.mubr.msk.bf16.mxu1 %vm6395_vm13, %v6394_v16  ;;  %5717 = vmatpush3.bf16.msra.mxu1 %v6386_v2  ;;  %v6388_v35 = vld [vmem:[%s9043_s15 + $0x10] sm:$0xff]  }
 0x59f   :  { %v4757_v52 = vadd.f32 %v5645_v40, %v4692_v59  ;;  %v4778_v42 = vmax.f32 %v4754_v61, 0.0  ;;  %5718 = vmatprep.subr.bf16.mxu1 %v6394_v16  ;;  %v6389_v61 = vld [vmem:[%s9043_s15 + $0x18] sm:$0xff]  }
 0x5a1   :  { %v4779_v9 = vmax.f32 %v4757_v52, 0.0  ;;  %v5646_v55 = vpop.f32.mrb[104].mxu0  ;;  %4808 = vrot.lane.b32.xlu0 %v4784_v44, %s6393_s12 }
 0x5a2   :  { %v5647_v18 = vpop.f32.mrb[105].mxu0  ;;  %5719 = vmatpush3.bf16.msra.mxu1 %v6387_v26 }
 0x5a3   :  { %v4785_v22 = vpack.c.bf16 %v4779_v9, %v4778_v42  ;;  %v5648_v20 = vadd.f32 %v5647_v18, %v5646_v55  ;;  %v5649_v63 = vpop.f32.mrb[106].mxu0  ;;  %5720 = vmatprep.subr.bf16.mxu1 %v6394_v16 }
 0x5a4   :  { %v5650_v41 = vpop.f32.mrb[107].mxu0 }
 0x5a5   :  { %v4762_v24 = vadd.f32 %v5648_v20, %v4697_v10  ;;  %v5651_v49 = vadd.f32 %v5650_v41, %v5649_v63  ;;  %4802 = vrot.lane.b32.xlu1 %v4785_v22, %s6391_s26  ;;  %4794 = vrot.lane.b32.xlu0 %v4785_v22, %s6392_s27 }
 0x5a6   :  { %5721 = vmatpush3.bf16.msra.mxu1 %v6388_v35 }
 0x5a7   :  { %v4765_v50 = vadd.f32 %v5651_v49, %v4700_v58  ;;  %v4780_v15 = vmax.f32 %v4762_v24, 0.0  ;;  %5722 = vmatprep.subr.bf16.mxu1 %v6394_v16 }
 0x5a9   :  { %v4781_v3 = vmax.f32 %v4765_v50, 0.0  ;;  %v5652_v51 = vpop.f32.mrb[108].mxu0  ;;  %4810 = vrot.lane.b32.xlu1 %v4785_v22, %s6393_s12  ;;  %v4992_v50 = vld [vmem:[%s9044_s11] sm:$0xf] }
 0x5aa   :  { %v5653_v21 = vpop.f32.mrb[109].mxu0  ;;  %5723 = vmatpush3.bf16.msra.mxu1 %v6389_v61 }
 0x5ab   :  { %v4786_v56 = vpack.c.bf16 %v4781_v3, %v4780_v15  ;;  %v5654_v29 = vadd.f32 %v5653_v21, %v5652_v51  ;;  %v5655_v8 = vpop.f32.mrb[110].mxu0  ;;  %v22_v15 = vstv %s9045_s16  ;;  %v5505_v3 = vld [vmem:[%s9046_s13] ss:$0 sm:$0xff] }
 0x5ac   :  { %v5656_v47 = vpop.f32.mrb[111].mxu0  ;;  %23 = vst [vmem:[#allocation2] sm:$0x1] %v22_v15 }
 0x5ad   :  { %v4770_v33 = vadd.f32 %v5654_v29, %v4705_v11  ;;  %v5657_v31 = vadd.f32 %v5656_v47, %v5655_v8  ;;  %4796 = vrot.lane.b32.xlu0 %v4786_v56, %s6392_s27  ;;  %v5507_v29 = vld [vmem:[%s9047_s14] ss:$0 sm:$0xff] }
 0x5af   :  { %v4773_v59 = vadd.f32 %v5657_v31, %v4708_v5  ;;  %v4782_v57 = vmax.f32 %v4770_v33, 0.0 }
 0x5b1   :  { %v4783_v25 = vmax.f32 %v4773_v59, 0.0  ;;  %4804 = vrot.lane.b32.xlu0 %v4786_v56, %s6391_s26 }
 0x5b3   :  { %v4787_v1 = vpack.c.bf16 %v4783_v25, %v4782_v57 }
 0x5b5   :  { %4798 = vrot.lane.b32.xlu1 %v4787_v1, %s6392_s27  ;;  %4812 = vrot.lane.b32.xlu0 %v4786_v56, %s6393_s12 }
 0x5b9   :  { %4806 = vrot.lane.b32.xlu1 %v4787_v1, %s6391_s26 }
 0x5bd   :  { %4814 = vrot.lane.b32.xlu1 %v4787_v1, %s6393_s12 }
 0x60f   :  { %v4793_v62 = vpop.permute.xlu0 %4792  ;;  %v4801_v53 = vpop.permute.xlu1 %4800 }
 0x610   :  { %v4819_v10 = vsel %vm4816_vm10, %v4784_v44, %v4793_v62  ;;  %v4997_v44 = vld [vmem:[%s9042_s1] sm:$0xff] }
 0x611   :  { %v4831_v58 = vsel %vm4829_vm11, %v4819_v10, %v4801_v53  ;;  %5001 = vperm.xlu0 %5942, %v4997_v44  }
 0x613   :  { %v4809_v54 = vpop.permute.xlu0 %4808 }
 0x614   :  { %v4840_v45 = vsel %vm4838_vm12, %v4831_v58, %v4809_v54 }
 0x615   :  { %v4859_v4 = vmul.bf16 %v4857_v32, %v4840_v45 }
 0x617   :  { %v4803_v60 = vpop.permute.xlu1 %4802  ;;  %5696 = vmatprep.mubr.bf16.mxu0 %v4859_v4  ;;  %v4795_v27 = vpop.permute.xlu0 %4794 }
 0x618   :  { %v4822_v34 = vsel %vm4816_vm10, %v4785_v22, %v4795_v27 }
 0x619   :  { %v4833_v11 = vsel %vm4829_vm11, %v4822_v34, %v4803_v60 }
 0x61b   :  { %v4811_v0 = vpop.permute.xlu1 %4810 }
 0x61c   :  { %v4843_v37 = vsel %vm4838_vm12, %v4833_v11, %v4811_v0 }
 0x61d   :  { %v4860_v5 = vmul.bf16 %v4857_v32, %v4843_v37 }
 0x61f   :  { %5697 = vmatmul.mubr.bf16.vlgmr.msra.gmra.mrb[112].mxu0 %v4860_v5  ;;  %v4797_v19 = vpop.permute.xlu0 %4796 }
 0x620   :  { %v4825_v38 = vsel %vm4816_vm10, %v4786_v56, %v4797_v19 }
 0x623   :  { %v4805_v43 = vpop.permute.xlu0 %4804 }
 0x624   :  { %v4835_v28 = vsel %vm4829_vm11, %v4825_v38, %v4805_v43 }
 0x627   :  { %v4799_v17 = vpop.permute.xlu1 %4798  ;;  %v4813_v30 = vpop.permute.xlu0 %4812 }
 0x628   :  { %v4846_v39 = vsel %vm4838_vm12, %v4835_v28, %v4813_v30  ;;  %v4828_v13 = vsel %vm4816_vm10, %v4787_v1, %v4799_v17  ;;  %v5508_v1 = vld [vmem:[#allocation2] ss:$0 sm:$0xff] }
 0x629   :  { %v4861_v46 = vmul.bf16 %v4857_v32, %v4846_v39 }
 0x62b   :  { %v4807_v12 = vpop.permute.xlu1 %4806  ;;  %5700 = vmatprep.mubr.bf16.mxu0 %v4861_v46 }
 0x62c   :  { %v4837_v36 = vsel %vm4829_vm11, %v4828_v13, %v4807_v12 }
 0x62f   :  { %v4815_v7 = vpop.permute.xlu1 %4814 }
 0x630   :  { %v4849_v14 = vsel %vm4838_vm12, %v4837_v36, %v4815_v7 }
 0x631   :  { %v4862_v23 = vmul.bf16 %v4857_v32, %v4849_v14 }
 0x633   :  { %5701 = vmatmul.mubr.bf16.gmra.mrb[116].mxu0 %v4862_v23 }
 0x634   :  { %5712 = vmatprep.mubr.msk.bf16.mxu0 %vm6395_vm13, %v6394_v16 }
 0x690   :  { %v5002_v51 = vpop.permute.xlu0 %5001 }
 0x691   :  { %v5010_v21 = vmul.f32 %v5505_v3, %v5002_v51 }
 0x6f2   :  { %v5698_v40 = vpop.f32.mrb[112].mxu0 }
 0x6f3   :  { %v4961_v52 = vpop.f32.mrb[113].mxu0 }
 0x6f4   :  { %v5699_v42 = vpop.f32.mrb[114].mxu0 }
 0x6f5   :  { %v4994_v9 = vpack.c.bf16 %v5699_v42, %v5698_v40  ;;  %v4964_v55 = vpop.f32.mrb[115].mxu0 }
 0x6f6   :  { %v4993_v18 = vpack.c.bf16 %v4964_v55, %v4961_v52 }
 0x6f8   :  { %5705 = vmatpush3.bf16.msra.mxu0 %v4993_v18 }
 0x6f9   :  { %5706 = vmatprep.subr.bf16.mxu0 %v6394_v16 }
 0x6fc   :  { %5707 = vmatpush3.bf16.msra.mxu0 %v4994_v9 }
 0x6fd   :  { %5708 = vmatprep.subr.bf16.mxu0 %v6394_v16 }
 0x706   :  { %v5702_v22 = vpop.f32.mrb[116].mxu0 }
 0x707   :  { %v4977_v20 = vpop.f32.mrb[117].mxu0 }
 0x708   :  { %v5703_v63 = vpop.f32.mrb[118].mxu0 }
 0x709   :  { %v4996_v41 = vpack.c.bf16 %v5703_v63, %v5702_v22  ;;  %v4980_v24 = vpop.f32.mrb[119].mxu0 }
 0x70a   :  { %v4995_v49 = vpack.c.bf16 %v4980_v24, %v4977_v20 }
 0x70c   :  { %5709 = vmatpush3.bf16.msra.mxu0 %v4995_v49 }
 0x70d   :  { %5710 = vmatprep.subr.bf16.mxu0 %v6394_v16 }
 0x710   :  { %5711 = vmatpush3.bf16.msra.mxu0 %v4996_v41 }
 0x713   :  { %5713 = vmatmul.mubr.msk.bf16.vlgmr.msra.gmra.mrb[120].mxu0 %vm4829_vm11, %v4992_v50 }
 0x7e6   :  { %v5048_v56 = vpop.f32.mrb[120].mxu0 }
 0x7e7   :  { %v5049_v8 = vadd.f32 %v5048_v56, %v5010_v21  ;;  %v5714_v47 = vpop.f32.mrb[121].mxu0 }
 0x7e8   :  { %v5051_v33 = vpop.f32.mrb[122].mxu0 }
 0x7e9   :  { %v5061_v31 = vadd.f32 %v5507_v29, %v5049_v8  ;;  %v5715_v59 = vpop.f32.mrb[123].mxu0 }
 0x7eb   :  { %v5062_v57 = vmax.f32 %v5061_v31, 0.0 }
 0x7ed   :  { %v5063_v25 = vpack.c.bf16 %v5062_v57, %v5062_v57 }
 0x7ef   :  { %5725 = vmatmul.mubr.msk.bf16.vlgmr.msra.gmra.mrb[32].mxu1 %vm4829_vm11, %v5063_v25 }
 0x8c2   :  { %v5140_v6 = vpop.f32.mrb[32].mxu1 }
 0x8c3   :  { %v5141_v48 = vadd.f32 %v5508_v1, %v5140_v6  ;;  %v5726_v62 = vpop.f32.mrb[33].mxu1 }
 0x8c4   :  { %v5143_v53 = vpop.f32.mrb[34].mxu1 }
 0x8c5   :  { %5147 = vst.msk [vmem:[%s9048_s17] sm:$0xff] %vm5146_vm14, %v5141_v48  ;;  %v5727_v10 = vpop.f32.mrb[35].mxu1 }

</bundles_post_ra>
